<compile_context>
chip_gen: v6e
topology: v6e:2x2x1
jax: 0.10.0
libtpu: 0.0.40
codegen_flags: <defaults>
</compile_context>

<pallas_src>
import functools
import math

import numpy as np
import jax
import jax.numpy as jnp
from jax import lax
from jax.experimental import pallas as pl
from jax.experimental.pallas import tpu as pltpu


def _layernorm(x, gamma, beta, eps):
    mu = jnp.mean(x, axis=-1, keepdims=True)
    var = jnp.mean(jnp.square(x - mu), axis=-1, keepdims=True)
    return (x - mu) * lax.rsqrt(var + eps) * gamma + beta


def _proj_ln(x, w, b, gamma, beta, eps):
    """Linear + LayerNorm.  Tiny contraction dims (1-2) use rank-1 VPU
    accumulation instead of a degenerate MXU dot; larger ones run bf16 MXU."""
    din = x.shape[1]
    if din < 8:
        y = x[:, 0:1] * w[0:1, :]
        for kk in range(1, din):
            y = y + x[:, kk:kk + 1] * w[kk:kk + 1, :]
    else:
        y = jnp.dot(x.astype(w.dtype), w, preferred_element_type=jnp.float32)
    return _layernorm(y + b, gamma, beta, eps)


def _bert_layer(x2, bias, lrefs, n_heads, S, HS):
    """One BertLayer for a single sequence.  x2: [S, HS] f32, bias: [1,1,S]."""
    (wqkv_ref, bqkv_ref, wo_ref, bo_ref, ln1g_ref, ln1b_ref,
     wi_ref, bi_ref, wo2_ref, bo2_ref, ln2g_ref, ln2b_ref) = lrefs
    hd = HS // n_heads
    scale = 1.0 / math.sqrt(hd)
    bf16 = jnp.bfloat16

    # fused QKV projection: a single [S, HS] x [HS, 3HS] MXU matmul
    qkv = jnp.dot(x2.astype(bf16), wqkv_ref[...],
                  preferred_element_type=jnp.float32) + bqkv_ref[...]
    qkv = qkv.reshape(1, S, 3 * HS)

    # heads folded into the (leading) batch dim -> one batched attention
    q = jnp.concatenate([qkv[:, :, h * hd:(h + 1) * hd]
                         for h in range(n_heads)], axis=0)
    k = jnp.concatenate([qkv[:, :, HS + h * hd:HS + (h + 1) * hd]
                         for h in range(n_heads)], axis=0)
    v = jnp.concatenate([qkv[:, :, 2 * HS + h * hd:2 * HS + (h + 1) * hd]
                         for h in range(n_heads)], axis=0)

    s = jnp.einsum('hqd,hkd->hqk', q.astype(bf16), k.astype(bf16),
                   preferred_element_type=jnp.float32) * scale
    s = s + bias                      # additive mask broadcasts over heads/queries
    s = s - jnp.max(s, axis=-1, keepdims=True)
    p = jnp.exp(s)
    p = p * pl.reciprocal(jnp.sum(p, axis=-1, keepdims=True), approx=True)
    ctx = jnp.einsum('hqk,hkd->hqd', p.astype(bf16), v.astype(bf16),
                     preferred_element_type=jnp.float32)      # [n_heads, S, hd]

    # output projection accumulated per head (no lane-dim concat of ctx)
    wo = wo_ref[...]
    acc = jnp.dot(ctx[0].astype(bf16), wo[0:hd, :],
                  preferred_element_type=jnp.float32)
    for h in range(1, n_heads):
        acc = acc + jnp.dot(ctx[h].astype(bf16), wo[h * hd:(h + 1) * hd, :],
                            preferred_element_type=jnp.float32)

    h1 = _layernorm(acc + bo_ref[...] + x2, ln1g_ref[...], ln1b_ref[...], 1e-12)

    inter = jnp.dot(h1.astype(bf16), wi_ref[...],
                    preferred_element_type=jnp.float32) + bi_ref[...]
    # TODO(synk): HF BERT uses exact erf-GELU; tanh approximation used here.
    inter = jax.nn.gelu(inter, approximate=True)
    lo = jnp.dot(inter.astype(bf16), wo2_ref[...],
                 preferred_element_type=jnp.float32) + bo2_ref[...]
    return _layernorm(lo + h1, ln2g_ref[...], ln2b_ref[...], 1e-12)


def _fused_forward_kernel(*refs, n_layers, n_heads, seq_len, hidden_size,
                          apply_sigmoid):
    (ec_ref, ct_ref, ef_ref, cf_ref, bias_ref,
     wcp_ref, bcp_ref, gcp_ref, ecp_ref,
     wct_ref, bct_ref, gct_ref, ect_ref,
     wfc_ref, bfc_ref, gfc_ref, efc_ref,
     wff_ref, bff_ref, gff_ref, eff_ref) = refs[:21]
    pos = 21
    bert_refs = refs[pos:pos + 12 * n_layers]
    pos += 12 * n_layers
    wih_ref, whh_ref, blstm_ref = refs[pos:pos + 3]
    pos += 3
    (w1_ref, b1_ref, g1_ref, e1_ref,
     w2_ref, b2_ref, g2_ref, e2_ref,
     w3_ref, b3_ref) = refs[pos:pos + 10]
    pos += 10
    o_ref = refs[pos]
    xp_ref = refs[pos + 1]

    S = seq_len
    HS = hidden_size
    bf16 = jnp.bfloat16

    # ---- fused input projections + LayerNorm (stay resident in VMEM) ----
    embed_cate = _proj_ln(ec_ref[...], wcp_ref[...], bcp_ref[...],
                          gcp_ref[...], ecp_ref[...], 1e-5)
    embed_cont = _proj_ln(ct_ref[...], wct_ref[...], bct_ref[...],
                          gct_ref[...], ect_ref[...], 1e-5)
    embed_fe = _proj_ln(ef_ref[...], wfc_ref[...], bfc_ref[...],
                        gfc_ref[...], efc_ref[...], 1e-5)
    cont_fe = _proj_ln(cf_ref[...], wff_ref[...], bff_ref[...],
                       gff_ref[...], eff_ref[...], 1e-5)

    seq = jnp.concatenate([embed_cate, embed_cont], axis=-1)          # [S, HS]
    fe_embed = jnp.concatenate([embed_fe, cont_fe], axis=-1)          # [S, HS]

    # ---- BertEncoder self-attention layers ----
    bias = bias_ref[...]                                              # [1, 1, S]
    for l in range(n_layers):
        seq = _bert_layer(seq, bias, bert_refs[12 * l:12 * (l + 1)],
                          n_heads, S, HS)

    # ---- single-layer LSTM: input projection hoisted out of the recurrence ----
    DH = whh_ref.shape[0]                                             # 2 * HS
    ipt = jnp.concatenate([seq, fe_embed], axis=-1)                   # [S, 2*HS]
    xp = jnp.dot(ipt.astype(bf16), wih_ref[...],
                 preferred_element_type=jnp.float32) + blstm_ref[...]  # [S, 4*DH]
    xp_ref[...] = xp                       # gate pre-activations, time along rows
    whh = whh_ref[...]                                                # bf16 [DH, 4*DH]

    def step(t, carry):
        h, c = carry
        gates = xp_ref[pl.ds(t, 1), :] + jnp.dot(
            h.astype(bf16), whh, preferred_element_type=jnp.float32)  # [1, 4*DH]
        ifo = jax.nn.sigmoid(gates[:, :3 * DH])        # gate layout [i, f, o, g]
        g = jnp.tanh(gates[:, 3 * DH:])
        c = ifo[:, DH:2 * DH] * c + ifo[:, :DH] * g
        h = ifo[:, 2 * DH:3 * DH] * jnp.tanh(c)
        return h, c

    h0 = jnp.zeros((1, DH), jnp.float32)
    c0 = jnp.zeros((1, DH), jnp.float32)
    h_last, _ = lax.fori_loop(0, S, step, (h0, c0))

    # ---- regression head (epilogue on the final hidden state) ----
    hh = jnp.dot(h_last.astype(bf16), w1_ref[...],
                 preferred_element_type=jnp.float32) + b1_ref[...]
    hh = jnp.maximum(_layernorm(hh, g1_ref[...], e1_ref[...], 1e-5), 0.0)
    hh = jnp.dot(hh.astype(bf16), w2_ref[...],
                 preferred_element_type=jnp.float32) + b2_ref[...]
    hh = jnp.maximum(_layernorm(hh, g2_ref[...], e2_ref[...], 1e-5), 0.0)
    out = jnp.sum(hh * w3_ref[...], axis=-1, keepdims=True) + b3_ref[...]
    if apply_sigmoid:
        out = jax.nn.sigmoid(out)
    o_ref[...] = out.reshape(1, 1, 1)


# ----------------------- parameter init -----------------------
def init_params(key, args):
    HS = args['hidden_size']
    HD = args['hidden_dim']
    emb_dim = HD // 2
    all_dims = sum(args['n_embdings'].values()) + 3
    n_org = len(args['org_feats'])
    n_fe = len(args['fe_feats']) + 1
    n_conti = len(args['conti_feats'])

    keys = iter(jax.random.split(key, 64))

    def lin(din, dout, scale=0.1):
        w = scale * jax.random.normal(next(keys), (din, dout), jnp.float32)
        b = 0.01 * jax.random.normal(next(keys), (dout,), jnp.float32)
        return w, b

    def ln(d):
        return jnp.ones((d,), jnp.float32), jnp.zeros((d,), jnp.float32)

    params = {}
    emb = 0.1 * jax.random.normal(next(keys), (all_dims, emb_dim), jnp.float32)
    params['emb'] = emb.at[0].set(0.0)  # padding_idx=0

    d_cate = HS // 8 * 7
    d_cont = HS // 8 + HS % 8
    w, b = lin(emb_dim * n_org, d_cate); g, be = ln(d_cate)
    params['cate_proj'] = (w, b, g, be)
    w, b = lin(1, d_cont); g, be = ln(d_cont)
    params['embedding_conti'] = (w, b, g, be)
    w, b = lin(emb_dim * n_fe, HS // 2); g, be = ln(HS // 2)
    params['fe_cate'] = (w, b, g, be)
    w, b = lin(n_conti - 1, HS // 2 + HS % 2); g, be = ln(HS // 2 + HS % 2)
    params['fe_conti'] = (w, b, g, be)

    params['bert_layers'] = []
    for _ in range(args['bert_layers']):
        lp = {}
        lp['wq'], lp['bq'] = lin(HS, HS)
        lp['wk'], lp['bk'] = lin(HS, HS)
        lp['wv'], lp['bv'] = lin(HS, HS)
        lp['wo'], lp['bo'] = lin(HS, HS)
        lp['ln1_g'], lp['ln1_b'] = ln(HS)
        lp['wi'], lp['bi'] = lin(HS, HS)     # intermediate_size == hidden_size
        lp['wo2'], lp['bo2'] = lin(HS, HS)
        lp['ln2_g'], lp['ln2_b'] = ln(HS)
        params['bert_layers'].append(lp)

    D = HS * 2  # LSTM: input = hidden = hidden_size * 2, n_layers = 1
    wih = 0.1 * jax.random.normal(next(keys), (D, 4 * D), jnp.float32)
    whh = 0.1 * jax.random.normal(next(keys), (D, 4 * D), jnp.float32)
    b_ih = 0.01 * jax.random.normal(next(keys), (4 * D,), jnp.float32)
    b_hh = 0.01 * jax.random.normal(next(keys), (4 * D,), jnp.float32)
    params['lstm'] = {'wih': wih, 'whh': whh, 'b': b_ih + b_hh}

    w1, b1 = lin(D, D); g1, be1 = ln(D)
    w2, b2 = lin(D, D); g2, be2 = ln(D)
    w3, b3 = lin(D, 1)
    params['reg'] = {'w1': w1, 'b1': b1, 'g1': g1, 'be1': be1,
                     'w2': w2, 'b2': b2, 'g2': g2, 'be2': be2,
                     'w3t': w3.reshape(1, -1), 'b3': b3.reshape(1, 1)}
    return params


# ----------------------- forward (gathers in plain JAX, rest in one kernel) -----------------------
def attn_lstm_forward(params, cate, conti, mask, interaction, args):
    B, S = interaction.shape
    HS = args['hidden_size']
    n_heads = args['n_heads']
    n_layers = args['bert_layers']
    bf16 = jnp.bfloat16

    sizes = list(args['n_embdings'].values())
    field_dims = np.array([0, *np.cumsum(sizes)[:-1]]) + 2

    cate_off = {}
    for i, kk in enumerate(cate.keys()):
        v = cate[kk] + int(field_dims[i])
        cate_off[kk] = jnp.where(v == int(field_dims[i]), 0, v)

    inter = interaction[:, :, None]
    c = jnp.stack([cate_off[col] for col in args['org_feats']], axis=2)
    fe = jnp.stack([cate_off[col] for col in args['fe_feats']], axis=2)
    fe = jnp.concatenate([inter, fe], axis=2)

    # embedding gathers stay in plain JAX (tiny tables); everything else is fused.
    emb = params['emb']
    embed_cate = emb[c].reshape(B * S, -1)
    embed_fe = emb[fe].reshape(B * S, -1)
    cont_time = conti['Time'].reshape(B * S, 1)
    cont_fe = jnp.stack([conti[cn] for cn in conti.keys() if cn != 'Time'],
                        axis=2).reshape(B * S, -1)
    bias = ((1.0 - mask.astype(jnp.float32)) * -10000.0).reshape(B, 1, S)

    def row(v):
        return v.reshape(1, -1)

    wcp, bcp, gcp, ecp = params['cate_proj']
    wct, bct, gct, ect = params['embedding_conti']
    wfc, bfc, gfc, efc = params['fe_cate']
    wff, bff, gff, eff = params['fe_conti']
    proj_args = [
        wcp.astype(bf16), row(bcp), row(gcp), row(ecp),
        wct, row(bct), row(gct), row(ect),            # din=1: f32 VPU path
        wfc.astype(bf16), row(bfc), row(gfc), row(efc),
        wff, row(bff), row(gff), row(eff),            # din=2: f32 VPU path
    ]

    bert_args = []
    for lp in params['bert_layers']:
        wqkv = jnp.concatenate([lp['wq'], lp['wk'], lp['wv']], axis=1).astype(bf16)
        bqkv = jnp.concatenate([lp['bq'], lp['bk'], lp['bv']]).reshape(1, -1)
        bert_args += [
            wqkv, bqkv,
            lp['wo'].astype(bf16), row(lp['bo']),
            row(lp['ln1_g']), row(lp['ln1_b']),
            lp['wi'].astype(bf16), row(lp['bi']),
            lp['wo2'].astype(bf16), row(lp['bo2']),
            row(lp['ln2_g']), row(lp['ln2_b']),
        ]

    lstmp = params['lstm']
    DH = lstmp['whh'].shape[0]

    def reorder_gates(w):   # PyTorch gate order [i, f, g, o] -> kernel [i, f, o, g]
        return jnp.concatenate([w[..., 0:DH], w[..., DH:2 * DH],
                                w[..., 3 * DH:4 * DH], w[..., 2 * DH:3 * DH]],
                               axis=-1)

    lstm_args = [reorder_gates(lstmp['wih']).astype(bf16),
                 reorder_gates(lstmp['whh']).astype(bf16),
                 reorder_gates(lstmp['b']).reshape(1, -1)]

    rp = params['reg']
    reg_args = [rp['w1'].astype(bf16), row(rp['b1']), row(rp['g1']), row(rp['be1']),
                rp['w2'].astype(bf16), row(rp['b2']), row(rp['g2']), row(rp['be2']),
                rp['w3t'], rp['b3']]

    data_args = [embed_cate, cont_time, embed_fe, cont_fe, bias]
    param_args = proj_args + bert_args + lstm_args + reg_args

    data_specs = [
        pl.BlockSpec((S, embed_cate.shape[1]), lambda b: (b, 0)),
        pl.BlockSpec((S, 1), lambda b: (b, 0)),
        pl.BlockSpec((S, embed_fe.shape[1]), lambda b: (b, 0)),
        pl.BlockSpec((S, cont_fe.shape[1]), lambda b: (b, 0)),
        pl.BlockSpec((1, 1, S), lambda b: (b, 0, 0)),
    ]
    # all parameter arrays are 2-D; full-array blocks resident in VMEM
    param_specs = [pl.BlockSpec(a.shape, lambda b: (0, 0)) for a in param_args]

    out = pl.pallas_call(
        functools.partial(_fused_forward_kernel,
                          n_layers=n_layers, n_heads=n_heads, seq_len=S,
                          hidden_size=HS, apply_sigmoid=bool(args['isinfer'])),
        out_shape=jax.ShapeDtypeStruct((B, 1, 1), jnp.float32),
        grid=(B,),
        in_specs=data_specs + param_specs,
        out_specs=pl.BlockSpec((1, 1, 1), lambda b: (b, 0, 0)),
        scratch_shapes=[pltpu.VMEM((S, 4 * DH), jnp.float32)],
        compiler_params=pltpu.CompilerParams(
            dimension_semantics=("parallel",),
            vmem_limit_bytes=32 * 1024 * 1024),
    )(*data_args, *param_args)

    out = out.reshape(B, -1)
    if out.shape[0] == 1:
        return out[0]
    return out.squeeze()


if __name__ == "__main__":
    args = dict(
        hidden_dim=32,
        hidden_size=32,
        n_layers=1,
        n_heads=2,
        drop_out=0.0,
        max_seq_len=8,
        bert_layers=1,
        pos=True,
        isinfer=True,
        n_embdings={'a': 5, 'b': 7, 'c': 4, 'd': 6, 'e': 3},
        org_feats=['a', 'b', 'c'],
        fe_feats=['d', 'e'],
        conti_feats=['Time', 'X1', 'X2'],
    )
    B, S = 2, args['max_seq_len']

    key = jax.random.PRNGKey(0)
    kp, kd = jax.random.split(key)
    params = init_params(kp, args)

    dkeys = iter(jax.random.split(kd, 16))
    cate = {k: jax.random.randint(next(dkeys), (B, S), 0, v, dtype=jnp.int32)
            for k, v in args['n_embdings'].items()}
    conti = {k: jax.random.uniform(next(dkeys), (B, S), jnp.float32)
             for k in args['conti_feats']}
    interaction = jax.random.randint(next(dkeys), (B, S), 0, 3, dtype=jnp.int32)
    mask = jnp.concatenate(
        [jnp.ones((B, S - 2), jnp.float32), jnp.zeros((B, 2), jnp.float32)], axis=1)

    out = attn_lstm_forward(params, cate, conti, mask, interaction, args)
    jax.block_until_ready(out)
    print("KERNEL_OK")
</pallas_src>

<mosaic_0001>
module attributes {stable_mosaic.version = 11 : i64} {
  func.func @_fused_forward_kernel(%arg0: i32, %arg1: memref<8x48xf32, #tpu.memory_space<vmem>>, %arg2: memref<8x1xf32, #tpu.memory_space<vmem>>, %arg3: memref<8x48xf32, #tpu.memory_space<vmem>>, %arg4: memref<8x2xf32, #tpu.memory_space<vmem>>, %arg5: memref<1x1x8xf32, #tpu.memory_space<vmem>>, %arg6: memref<48x28xbf16, #tpu.memory_space<vmem>>, %arg7: memref<1x28xf32, #tpu.memory_space<vmem>>, %arg8: memref<1x28xf32, #tpu.memory_space<vmem>>, %arg9: memref<1x28xf32, #tpu.memory_space<vmem>>, %arg10: memref<1x4xf32, #tpu.memory_space<vmem>>, %arg11: memref<1x4xf32, #tpu.memory_space<vmem>>, %arg12: memref<1x4xf32, #tpu.memory_space<vmem>>, %arg13: memref<1x4xf32, #tpu.memory_space<vmem>>, %arg14: memref<48x16xbf16, #tpu.memory_space<vmem>>, %arg15: memref<1x16xf32, #tpu.memory_space<vmem>>, %arg16: memref<1x16xf32, #tpu.memory_space<vmem>>, %arg17: memref<1x16xf32, #tpu.memory_space<vmem>>, %arg18: memref<2x16xf32, #tpu.memory_space<vmem>>, %arg19: memref<1x16xf32, #tpu.memory_space<vmem>>, %arg20: memref<1x16xf32, #tpu.memory_space<vmem>>, %arg21: memref<1x16xf32, #tpu.memory_space<vmem>>, %arg22: memref<32x96xbf16, #tpu.memory_space<vmem>>, %arg23: memref<1x96xf32, #tpu.memory_space<vmem>>, %arg24: memref<32x32xbf16, #tpu.memory_space<vmem>>, %arg25: memref<1x32xf32, #tpu.memory_space<vmem>>, %arg26: memref<1x32xf32, #tpu.memory_space<vmem>>, %arg27: memref<1x32xf32, #tpu.memory_space<vmem>>, %arg28: memref<32x32xbf16, #tpu.memory_space<vmem>>, %arg29: memref<1x32xf32, #tpu.memory_space<vmem>>, %arg30: memref<32x32xbf16, #tpu.memory_space<vmem>>, %arg31: memref<1x32xf32, #tpu.memory_space<vmem>>, %arg32: memref<1x32xf32, #tpu.memory_space<vmem>>, %arg33: memref<1x32xf32, #tpu.memory_space<vmem>>, %arg34: memref<64x256xbf16, #tpu.memory_space<vmem>>, %arg35: memref<64x256xbf16, #tpu.memory_space<vmem>>, %arg36: memref<1x256xf32, #tpu.memory_space<vmem>>, %arg37: memref<64x64xbf16, #tpu.memory_space<vmem>>, %arg38: memref<1x64xf32, #tpu.memory_space<vmem>>, %arg39: memref<1x64xf32, #tpu.memory_space<vmem>>, %arg40: memref<1x64xf32, #tpu.memory_space<vmem>>, %arg41: memref<64x64xbf16, #tpu.memory_space<vmem>>, %arg42: memref<1x64xf32, #tpu.memory_space<vmem>>, %arg43: memref<1x64xf32, #tpu.memory_space<vmem>>, %arg44: memref<1x64xf32, #tpu.memory_space<vmem>>, %arg45: memref<1x64xf32, #tpu.memory_space<vmem>>, %arg46: memref<1x1xf32, #tpu.memory_space<vmem>>, %arg47: memref<1x1x1xf32, #tpu.memory_space<vmem>>, %arg48: memref<8x256xf32, #tpu.memory_space<vmem>>) attributes {dimension_semantics = [#tpu.dimension_semantics<parallel>], iteration_bounds = array<i64: 2>, scalar_prefetch = 0 : i64, scratch_operands = 1 : i64, tpu.core_type = #tpu.core_type<tc>, window_params = [{transform_indices = @transform_0, window_bounds = array<i64: 8, 48>}, {transform_indices = @transform_1, window_bounds = array<i64: 8, 1>}, {transform_indices = @transform_2, window_bounds = array<i64: 8, 48>}, {transform_indices = @transform_3, window_bounds = array<i64: 8, 2>}, {transform_indices = @transform_4, window_bounds = array<i64: 1, 1, 8>}, {pipeline_mode = #tpu.pipeline_mode<synchronous>, transform_indices = @transform_5, window_bounds = array<i64: 48, 28>}, {pipeline_mode = #tpu.pipeline_mode<synchronous>, transform_indices = @transform_6, window_bounds = array<i64: 1, 28>}, {pipeline_mode = #tpu.pipeline_mode<synchronous>, transform_indices = @transform_7, window_bounds = array<i64: 1, 28>}, {pipeline_mode = #tpu.pipeline_mode<synchronous>, transform_indices = @transform_8, window_bounds = array<i64: 1, 28>}, {pipeline_mode = #tpu.pipeline_mode<synchronous>, transform_indices = @transform_9, window_bounds = array<i64: 1, 4>}, {pipeline_mode = #tpu.pipeline_mode<synchronous>, transform_indices = @transform_10, window_bounds = array<i64: 1, 4>}, {pipeline_mode = #tpu.pipeline_mode<synchronous>, transform_indices = @transform_11, window_bounds = array<i64: 1, 4>}, {pipeline_mode = #tpu.pipeline_mode<synchronous>, transform_indices = @transform_12, window_bounds = array<i64: 1, 4>}, {pipeline_mode = #tpu.pipeline_mode<synchronous>, transform_indices = @transform_13, window_bounds = array<i64: 48, 16>}, {pipeline_mode = #tpu.pipeline_mode<synchronous>, transform_indices = @transform_14, window_bounds = array<i64: 1, 16>}, {pipeline_mode = #tpu.pipeline_mode<synchronous>, transform_indices = @transform_15, window_bounds = array<i64: 1, 16>}, {pipeline_mode = #tpu.pipeline_mode<synchronous>, transform_indices = @transform_16, window_bounds = array<i64: 1, 16>}, {pipeline_mode = #tpu.pipeline_mode<synchronous>, transform_indices = @transform_17, window_bounds = array<i64: 2, 16>}, {pipeline_mode = #tpu.pipeline_mode<synchronous>, transform_indices = @transform_18, window_bounds = array<i64: 1, 16>}, {pipeline_mode = #tpu.pipeline_mode<synchronous>, transform_indices = @transform_19, window_bounds = array<i64: 1, 16>}, {pipeline_mode = #tpu.pipeline_mode<synchronous>, transform_indices = @transform_20, window_bounds = array<i64: 1, 16>}, {pipeline_mode = #tpu.pipeline_mode<synchronous>, transform_indices = @transform_21, window_bounds = array<i64: 32, 96>}, {pipeline_mode = #tpu.pipeline_mode<synchronous>, transform_indices = @transform_22, window_bounds = array<i64: 1, 96>}, {pipeline_mode = #tpu.pipeline_mode<synchronous>, transform_indices = @transform_23, window_bounds = array<i64: 32, 32>}, {pipeline_mode = #tpu.pipeline_mode<synchronous>, transform_indices = @transform_24, window_bounds = array<i64: 1, 32>}, {pipeline_mode = #tpu.pipeline_mode<synchronous>, transform_indices = @transform_25, window_bounds = array<i64: 1, 32>}, {pipeline_mode = #tpu.pipeline_mode<synchronous>, transform_indices = @transform_26, window_bounds = array<i64: 1, 32>}, {pipeline_mode = #tpu.pipeline_mode<synchronous>, transform_indices = @transform_27, window_bounds = array<i64: 32, 32>}, {pipeline_mode = #tpu.pipeline_mode<synchronous>, transform_indices = @transform_28, window_bounds = array<i64: 1, 32>}, {pipeline_mode = #tpu.pipeline_mode<synchronous>, transform_indices = @transform_29, window_bounds = array<i64: 32, 32>}, {pipeline_mode = #tpu.pipeline_mode<synchronous>, transform_indices = @transform_30, window_bounds = array<i64: 1, 32>}, {pipeline_mode = #tpu.pipeline_mode<synchronous>, transform_indices = @transform_31, window_bounds = array<i64: 1, 32>}, {pipeline_mode = #tpu.pipeline_mode<synchronous>, transform_indices = @transform_32, window_bounds = array<i64: 1, 32>}, {pipeline_mode = #tpu.pipeline_mode<synchronous>, transform_indices = @transform_33, window_bounds = array<i64: 64, 256>}, {pipeline_mode = #tpu.pipeline_mode<synchronous>, transform_indices = @transform_34, window_bounds = array<i64: 64, 256>}, {pipeline_mode = #tpu.pipeline_mode<synchronous>, transform_indices = @transform_35, window_bounds = array<i64: 1, 256>}, {pipeline_mode = #tpu.pipeline_mode<synchronous>, transform_indices = @transform_36, window_bounds = array<i64: 64, 64>}, {pipeline_mode = #tpu.pipeline_mode<synchronous>, transform_indices = @transform_37, window_bounds = array<i64: 1, 64>}, {pipeline_mode = #tpu.pipeline_mode<synchronous>, transform_indices = @transform_38, window_bounds = array<i64: 1, 64>}, {pipeline_mode = #tpu.pipeline_mode<synchronous>, transform_indices = @transform_39, window_bounds = array<i64: 1, 64>}, {pipeline_mode = #tpu.pipeline_mode<synchronous>, transform_indices = @transform_40, window_bounds = array<i64: 64, 64>}, {pipeline_mode = #tpu.pipeline_mode<synchronous>, transform_indices = @transform_41, window_bounds = array<i64: 1, 64>}, {pipeline_mode = #tpu.pipeline_mode<synchronous>, transform_indices = @transform_42, window_bounds = array<i64: 1, 64>}, {pipeline_mode = #tpu.pipeline_mode<synchronous>, transform_indices = @transform_43, window_bounds = array<i64: 1, 64>}, {pipeline_mode = #tpu.pipeline_mode<synchronous>, transform_indices = @transform_44, window_bounds = array<i64: 1, 64>}, {pipeline_mode = #tpu.pipeline_mode<synchronous>, transform_indices = @transform_45, window_bounds = array<i64: 1, 1>}, {transform_indices = @transform_46, window_bounds = array<i64: 1, 1, 1>}]} {
    %c0 = arith.constant 0 : index
    %c0_0 = arith.constant 0 : index
    %0 = vector.load %arg1[%c0, %c0_0] : memref<8x48xf32, #tpu.memory_space<vmem>>, vector<8x48xf32>
    %c0_1 = arith.constant 0 : index
    %c0_2 = arith.constant 0 : index
    %1 = vector.load %arg6[%c0_1, %c0_2] : memref<48x28xbf16, #tpu.memory_space<vmem>>, vector<48x28xbf16>
    %c0_3 = arith.constant 0 : index
    %c0_4 = arith.constant 0 : index
    %2 = vector.load %arg7[%c0_3, %c0_4] : memref<1x28xf32, #tpu.memory_space<vmem>>, vector<1x28xf32>
    %c0_5 = arith.constant 0 : index
    %c0_6 = arith.constant 0 : index
    %3 = vector.load %arg8[%c0_5, %c0_6] : memref<1x28xf32, #tpu.memory_space<vmem>>, vector<1x28xf32>
    %c0_7 = arith.constant 0 : index
    %c0_8 = arith.constant 0 : index
    %4 = vector.load %arg9[%c0_7, %c0_8] : memref<1x28xf32, #tpu.memory_space<vmem>>, vector<1x28xf32>
    %5 = arith.truncf %0 : vector<8x48xf32> to vector<8x48xbf16>
    %cst = arith.constant dense<0.000000e+00> : vector<8x28xf32>
    %6 = tpu.matmul %5, %1, %cst {dimension_numbers = #tpu.dot_dimension_numbers<[1], [0], [0], [1], [0, 0, 1, 1], [], []>} : vector<8x48xbf16>, vector<48x28xbf16>, vector<8x28xf32> -> vector<8x28xf32>
    %7 = vector.broadcast %2 : vector<1x28xf32> to vector<8x28xf32>
    %8 = arith.addf %6, %7 : vector<8x28xf32>
    %cst_9 = arith.constant dense<0.000000e+00> : vector<8xf32>
    %9 = vector.multi_reduction <add>, %8, %cst_9 [1] : vector<8x28xf32> to vector<8xf32>
    %10 = vector.shape_cast %9 : vector<8xf32> to vector<8x1xf32>
    %cst_10 = arith.constant 2.800000e+01 : f32
    %11 = vector.broadcast %cst_10 : f32 to vector<8x1xf32>
    %12 = arith.divf %10, %11 : vector<8x1xf32>
    %13 = vector.broadcast %12 : vector<8x1xf32> to vector<8x28xf32>
    %14 = arith.subf %8, %13 : vector<8x28xf32>
    %15 = arith.mulf %14, %14 : vector<8x28xf32>
    %cst_11 = arith.constant dense<0.000000e+00> : vector<8xf32>
    %16 = vector.multi_reduction <add>, %15, %cst_11 [1] : vector<8x28xf32> to vector<8xf32>
    %17 = vector.shape_cast %16 : vector<8xf32> to vector<8x1xf32>
    %cst_12 = arith.constant 2.800000e+01 : f32
    %18 = vector.broadcast %cst_12 : f32 to vector<8x1xf32>
    %19 = arith.divf %17, %18 : vector<8x1xf32>
    %20 = vector.broadcast %12 : vector<8x1xf32> to vector<8x28xf32>
    %21 = arith.subf %8, %20 : vector<8x28xf32>
    %cst_13 = arith.constant 9.99999974E-6 : f32
    %22 = vector.broadcast %cst_13 : f32 to vector<8x1xf32>
    %23 = arith.addf %19, %22 : vector<8x1xf32>
    %24 = math.rsqrt %23 : vector<8x1xf32>
    %25 = vector.broadcast %24 : vector<8x1xf32> to vector<8x28xf32>
    %26 = arith.mulf %21, %25 : vector<8x28xf32>
    %27 = vector.broadcast %3 : vector<1x28xf32> to vector<8x28xf32>
    %28 = arith.mulf %26, %27 : vector<8x28xf32>
    %29 = vector.broadcast %4 : vector<1x28xf32> to vector<8x28xf32>
    %30 = arith.addf %28, %29 : vector<8x28xf32>
    %c0_14 = arith.constant 0 : index
    %c0_15 = arith.constant 0 : index
    %31 = vector.load %arg2[%c0_14, %c0_15] : memref<8x1xf32, #tpu.memory_space<vmem>>, vector<8x1xf32>
    %c0_16 = arith.constant 0 : index
    %c0_17 = arith.constant 0 : index
    %32 = vector.load %arg10[%c0_16, %c0_17] : memref<1x4xf32, #tpu.memory_space<vmem>>, vector<1x4xf32>
    %c0_18 = arith.constant 0 : index
    %c0_19 = arith.constant 0 : index
    %33 = vector.load %arg11[%c0_18, %c0_19] : memref<1x4xf32, #tpu.memory_space<vmem>>, vector<1x4xf32>
    %c0_20 = arith.constant 0 : index
    %c0_21 = arith.constant 0 : index
    %34 = vector.load %arg12[%c0_20, %c0_21] : memref<1x4xf32, #tpu.memory_space<vmem>>, vector<1x4xf32>
    %c0_22 = arith.constant 0 : index
    %c0_23 = arith.constant 0 : index
    %35 = vector.load %arg13[%c0_22, %c0_23] : memref<1x4xf32, #tpu.memory_space<vmem>>, vector<1x4xf32>
    %36 = vector.broadcast %31 : vector<8x1xf32> to vector<8x4xf32>
    %37 = vector.broadcast %32 : vector<1x4xf32> to vector<8x4xf32>
    %38 = arith.mulf %36, %37 : vector<8x4xf32>
    %39 = vector.broadcast %33 : vector<1x4xf32> to vector<8x4xf32>
    %40 = arith.addf %38, %39 : vector<8x4xf32>
    %cst_24 = arith.constant dense<0.000000e+00> : vector<8xf32>
    %41 = vector.multi_reduction <add>, %40, %cst_24 [1] : vector<8x4xf32> to vector<8xf32>
    %42 = vector.shape_cast %41 : vector<8xf32> to vector<8x1xf32>
    %cst_25 = arith.constant 4.000000e+00 : f32
    %43 = vector.broadcast %cst_25 : f32 to vector<8x1xf32>
    %44 = arith.divf %42, %43 : vector<8x1xf32>
    %45 = vector.broadcast %44 : vector<8x1xf32> to vector<8x4xf32>
    %46 = arith.subf %40, %45 : vector<8x4xf32>
    %47 = arith.mulf %46, %46 : vector<8x4xf32>
    %cst_26 = arith.constant dense<0.000000e+00> : vector<8xf32>
    %48 = vector.multi_reduction <add>, %47, %cst_26 [1] : vector<8x4xf32> to vector<8xf32>
    %49 = vector.shape_cast %48 : vector<8xf32> to vector<8x1xf32>
    %cst_27 = arith.constant 4.000000e+00 : f32
    %50 = vector.broadcast %cst_27 : f32 to vector<8x1xf32>
    %51 = arith.divf %49, %50 : vector<8x1xf32>
    %52 = vector.broadcast %44 : vector<8x1xf32> to vector<8x4xf32>
    %53 = arith.subf %40, %52 : vector<8x4xf32>
    %cst_28 = arith.constant 9.99999974E-6 : f32
    %54 = vector.broadcast %cst_28 : f32 to vector<8x1xf32>
    %55 = arith.addf %51, %54 : vector<8x1xf32>
    %56 = math.rsqrt %55 : vector<8x1xf32>
    %57 = vector.broadcast %56 : vector<8x1xf32> to vector<8x4xf32>
    %58 = arith.mulf %53, %57 : vector<8x4xf32>
    %59 = vector.broadcast %34 : vector<1x4xf32> to vector<8x4xf32>
    %60 = arith.mulf %58, %59 : vector<8x4xf32>
    %61 = vector.broadcast %35 : vector<1x4xf32> to vector<8x4xf32>
    %62 = arith.addf %60, %61 : vector<8x4xf32>
    %c0_29 = arith.constant 0 : index
    %c0_30 = arith.constant 0 : index
    %63 = vector.load %arg3[%c0_29, %c0_30] : memref<8x48xf32, #tpu.memory_space<vmem>>, vector<8x48xf32>
    %c0_31 = arith.constant 0 : index
    %c0_32 = arith.constant 0 : index
    %64 = vector.load %arg14[%c0_31, %c0_32] : memref<48x16xbf16, #tpu.memory_space<vmem>>, vector<48x16xbf16>
    %c0_33 = arith.constant 0 : index
    %c0_34 = arith.constant 0 : index
    %65 = vector.load %arg15[%c0_33, %c0_34] : memref<1x16xf32, #tpu.memory_space<vmem>>, vector<1x16xf32>
    %c0_35 = arith.constant 0 : index
    %c0_36 = arith.constant 0 : index
    %66 = vector.load %arg16[%c0_35, %c0_36] : memref<1x16xf32, #tpu.memory_space<vmem>>, vector<1x16xf32>
    %c0_37 = arith.constant 0 : index
    %c0_38 = arith.constant 0 : index
    %67 = vector.load %arg17[%c0_37, %c0_38] : memref<1x16xf32, #tpu.memory_space<vmem>>, vector<1x16xf32>
    %68 = arith.truncf %63 : vector<8x48xf32> to vector<8x48xbf16>
    %cst_39 = arith.constant dense<0.000000e+00> : vector<8x16xf32>
    %69 = tpu.matmul %68, %64, %cst_39 {dimension_numbers = #tpu.dot_dimension_numbers<[1], [0], [0], [1], [0, 0, 1, 1], [], []>} : vector<8x48xbf16>, vector<48x16xbf16>, vector<8x16xf32> -> vector<8x16xf32>
    %70 = vector.broadcast %65 : vector<1x16xf32> to vector<8x16xf32>
    %71 = arith.addf %69, %70 : vector<8x16xf32>
    %cst_40 = arith.constant dense<0.000000e+00> : vector<8xf32>
    %72 = vector.multi_reduction <add>, %71, %cst_40 [1] : vector<8x16xf32> to vector<8xf32>
    %73 = vector.shape_cast %72 : vector<8xf32> to vector<8x1xf32>
    %cst_41 = arith.constant 1.600000e+01 : f32
    %74 = vector.broadcast %cst_41 : f32 to vector<8x1xf32>
    %75 = arith.divf %73, %74 : vector<8x1xf32>
    %76 = vector.broadcast %75 : vector<8x1xf32> to vector<8x16xf32>
    %77 = arith.subf %71, %76 : vector<8x16xf32>
    %78 = arith.mulf %77, %77 : vector<8x16xf32>
    %cst_42 = arith.constant dense<0.000000e+00> : vector<8xf32>
    %79 = vector.multi_reduction <add>, %78, %cst_42 [1] : vector<8x16xf32> to vector<8xf32>
    %80 = vector.shape_cast %79 : vector<8xf32> to vector<8x1xf32>
    %cst_43 = arith.constant 1.600000e+01 : f32
    %81 = vector.broadcast %cst_43 : f32 to vector<8x1xf32>
    %82 = arith.divf %80, %81 : vector<8x1xf32>
    %83 = vector.broadcast %75 : vector<8x1xf32> to vector<8x16xf32>
    %84 = arith.subf %71, %83 : vector<8x16xf32>
    %cst_44 = arith.constant 9.99999974E-6 : f32
    %85 = vector.broadcast %cst_44 : f32 to vector<8x1xf32>
    %86 = arith.addf %82, %85 : vector<8x1xf32>
    %87 = math.rsqrt %86 : vector<8x1xf32>
    %88 = vector.broadcast %87 : vector<8x1xf32> to vector<8x16xf32>
    %89 = arith.mulf %84, %88 : vector<8x16xf32>
    %90 = vector.broadcast %66 : vector<1x16xf32> to vector<8x16xf32>
    %91 = arith.mulf %89, %90 : vector<8x16xf32>
    %92 = vector.broadcast %67 : vector<1x16xf32> to vector<8x16xf32>
    %93 = arith.addf %91, %92 : vector<8x16xf32>
    %c0_45 = arith.constant 0 : index
    %c0_46 = arith.constant 0 : index
    %94 = vector.load %arg4[%c0_45, %c0_46] : memref<8x2xf32, #tpu.memory_space<vmem>>, vector<8x2xf32>
    %c0_47 = arith.constant 0 : index
    %c0_48 = arith.constant 0 : index
    %95 = vector.load %arg18[%c0_47, %c0_48] : memref<2x16xf32, #tpu.memory_space<vmem>>, vector<2x16xf32>
    %c0_49 = arith.constant 0 : index
    %c0_50 = arith.constant 0 : index
    %96 = vector.load %arg19[%c0_49, %c0_50] : memref<1x16xf32, #tpu.memory_space<vmem>>, vector<1x16xf32>
    %c0_51 = arith.constant 0 : index
    %c0_52 = arith.constant 0 : index
    %97 = vector.load %arg20[%c0_51, %c0_52] : memref<1x16xf32, #tpu.memory_space<vmem>>, vector<1x16xf32>
    %c0_53 = arith.constant 0 : index
    %c0_54 = arith.constant 0 : index
    %98 = vector.load %arg21[%c0_53, %c0_54] : memref<1x16xf32, #tpu.memory_space<vmem>>, vector<1x16xf32>
    %99 = vector.extract_strided_slice %94 {offsets = [0, 0], sizes = [8, 1], strides = [1, 1]} : vector<8x2xf32> to vector<8x1xf32>
    %100 = vector.extract_strided_slice %95 {offsets = [0, 0], sizes = [1, 16], strides = [1, 1]} : vector<2x16xf32> to vector<1x16xf32>
    %101 = vector.broadcast %99 : vector<8x1xf32> to vector<8x16xf32>
    %102 = vector.broadcast %100 : vector<1x16xf32> to vector<8x16xf32>
    %103 = arith.mulf %101, %102 : vector<8x16xf32>
    %104 = vector.extract_strided_slice %94 {offsets = [0, 1], sizes = [8, 1], strides = [1, 1]} : vector<8x2xf32> to vector<8x1xf32>
    %105 = vector.extract_strided_slice %95 {offsets = [1, 0], sizes = [1, 16], strides = [1, 1]} : vector<2x16xf32> to vector<1x16xf32>
    %106 = vector.broadcast %104 : vector<8x1xf32> to vector<8x16xf32>
    %107 = vector.broadcast %105 : vector<1x16xf32> to vector<8x16xf32>
    %108 = arith.mulf %106, %107 : vector<8x16xf32>
    %109 = arith.addf %103, %108 : vector<8x16xf32>
    %110 = vector.broadcast %96 : vector<1x16xf32> to vector<8x16xf32>
    %111 = arith.addf %109, %110 : vector<8x16xf32>
    %cst_55 = arith.constant dense<0.000000e+00> : vector<8xf32>
    %112 = vector.multi_reduction <add>, %111, %cst_55 [1] : vector<8x16xf32> to vector<8xf32>
    %113 = vector.shape_cast %112 : vector<8xf32> to vector<8x1xf32>
    %cst_56 = arith.constant 1.600000e+01 : f32
    %114 = vector.broadcast %cst_56 : f32 to vector<8x1xf32>
    %115 = arith.divf %113, %114 : vector<8x1xf32>
    %116 = vector.broadcast %115 : vector<8x1xf32> to vector<8x16xf32>
    %117 = arith.subf %111, %116 : vector<8x16xf32>
    %118 = arith.mulf %117, %117 : vector<8x16xf32>
    %cst_57 = arith.constant dense<0.000000e+00> : vector<8xf32>
    %119 = vector.multi_reduction <add>, %118, %cst_57 [1] : vector<8x16xf32> to vector<8xf32>
    %120 = vector.shape_cast %119 : vector<8xf32> to vector<8x1xf32>
    %cst_58 = arith.constant 1.600000e+01 : f32
    %121 = vector.broadcast %cst_58 : f32 to vector<8x1xf32>
    %122 = arith.divf %120, %121 : vector<8x1xf32>
    %123 = vector.broadcast %115 : vector<8x1xf32> to vector<8x16xf32>
    %124 = arith.subf %111, %123 : vector<8x16xf32>
    %cst_59 = arith.constant 9.99999974E-6 : f32
    %125 = vector.broadcast %cst_59 : f32 to vector<8x1xf32>
    %126 = arith.addf %122, %125 : vector<8x1xf32>
    %127 = math.rsqrt %126 : vector<8x1xf32>
    %128 = vector.broadcast %127 : vector<8x1xf32> to vector<8x16xf32>
    %129 = arith.mulf %124, %128 : vector<8x16xf32>
    %130 = vector.broadcast %97 : vector<1x16xf32> to vector<8x16xf32>
    %131 = arith.mulf %129, %130 : vector<8x16xf32>
    %132 = vector.broadcast %98 : vector<1x16xf32> to vector<8x16xf32>
    %133 = arith.addf %131, %132 : vector<8x16xf32>
    %134 = tpu.concatenate %30, %62 in 1 : vector<8x28xf32>, vector<8x4xf32> -> vector<8x32xf32>
    %135 = tpu.concatenate %93, %133 in 1 : vector<8x16xf32>, vector<8x16xf32> -> vector<8x32xf32>
    %c0_60 = arith.constant 0 : index
    %c0_61 = arith.constant 0 : index
    %c0_62 = arith.constant 0 : index
    %136 = vector.load %arg5[%c0_60, %c0_61, %c0_62] : memref<1x1x8xf32, #tpu.memory_space<vmem>>, vector<1x1x8xf32>
    %137 = arith.truncf %134 : vector<8x32xf32> to vector<8x32xbf16>
    %c0_63 = arith.constant 0 : index
    %c0_64 = arith.constant 0 : index
    %138 = vector.load %arg22[%c0_63, %c0_64] : memref<32x96xbf16, #tpu.memory_space<vmem>>, vector<32x96xbf16>
    %cst_65 = arith.constant dense<0.000000e+00> : vector<8x96xf32>
    %139 = tpu.matmul %137, %138, %cst_65 {dimension_numbers = #tpu.dot_dimension_numbers<[1], [0], [0], [1], [0, 0, 1, 1], [], []>} : vector<8x32xbf16>, vector<32x96xbf16>, vector<8x96xf32> -> vector<8x96xf32>
    %c0_66 = arith.constant 0 : index
    %c0_67 = arith.constant 0 : index
    %140 = vector.load %arg23[%c0_66, %c0_67] : memref<1x96xf32, #tpu.memory_space<vmem>>, vector<1x96xf32>
    %141 = vector.broadcast %140 : vector<1x96xf32> to vector<8x96xf32>
    %142 = arith.addf %139, %141 : vector<8x96xf32>
    %143 = vector.shape_cast %142 : vector<8x96xf32> to vector<1x8x96xf32>
    %144 = vector.extract_strided_slice %143 {offsets = [0, 0, 0], sizes = [1, 8, 16], strides = [1, 1, 1]} : vector<1x8x96xf32> to vector<1x8x16xf32>
    %145 = vector.extract_strided_slice %143 {offsets = [0, 0, 16], sizes = [1, 8, 16], strides = [1, 1, 1]} : vector<1x8x96xf32> to vector<1x8x16xf32>
    %146 = tpu.concatenate %144, %145 in 0 : vector<1x8x16xf32>, vector<1x8x16xf32> -> vector<2x8x16xf32>
    %147 = vector.extract_strided_slice %143 {offsets = [0, 0, 32], sizes = [1, 8, 16], strides = [1, 1, 1]} : vector<1x8x96xf32> to vector<1x8x16xf32>
    %148 = vector.extract_strided_slice %143 {offsets = [0, 0, 48], sizes = [1, 8, 16], strides = [1, 1, 1]} : vector<1x8x96xf32> to vector<1x8x16xf32>
    %149 = tpu.concatenate %147, %148 in 0 : vector<1x8x16xf32>, vector<1x8x16xf32> -> vector<2x8x16xf32>
    %150 = vector.extract_strided_slice %143 {offsets = [0, 0, 64], sizes = [1, 8, 16], strides = [1, 1, 1]} : vector<1x8x96xf32> to vector<1x8x16xf32>
    %151 = vector.extract_strided_slice %143 {offsets = [0, 0, 80], sizes = [1, 8, 16], strides = [1, 1, 1]} : vector<1x8x96xf32> to vector<1x8x16xf32>
    %152 = tpu.concatenate %150, %151 in 0 : vector<1x8x16xf32>, vector<1x8x16xf32> -> vector<2x8x16xf32>
    %153 = arith.truncf %146 : vector<2x8x16xf32> to vector<2x8x16xbf16>
    %154 = arith.truncf %149 : vector<2x8x16xf32> to vector<2x8x16xbf16>
    "tpu.trace_start"() <{level = 10 : i32, message = "hqd,hkd->hqk"}> : () -> ()
    %cst_68 = arith.constant dense<0.000000e+00> : vector<2x8x8xf32>
    %155 = tpu.matmul %153, %154, %cst_68 {dimension_numbers = #tpu.dot_dimension_numbers<[2], [2], [1], [1], [0, 0, 0, 1, 1, 1], [0], [0]>} : vector<2x8x16xbf16>, vector<2x8x16xbf16>, vector<2x8x8xf32> -> vector<2x8x8xf32>
    "tpu.trace_stop"() : () -> ()
    %cst_69 = arith.constant 2.500000e-01 : f32
    %156 = vector.broadcast %cst_69 : f32 to vector<2x8x8xf32>
    %157 = arith.mulf %155, %156 : vector<2x8x8xf32>
    %158 = vector.broadcast %136 : vector<1x1x8xf32> to vector<2x8x8xf32>
    %159 = arith.addf %157, %158 : vector<2x8x8xf32>
    %cst_70 = arith.constant dense<0xFF800000> : vector<2x8xf32>
    %160 = vector.multi_reduction <maximumf>, %159, %cst_70 [2] : vector<2x8x8xf32> to vector<2x8xf32>
    %161 = vector.shape_cast %160 : vector<2x8xf32> to vector<2x8x1xf32>
    %162 = vector.broadcast %161 : vector<2x8x1xf32> to vector<2x8x8xf32>
    %163 = arith.subf %159, %162 : vector<2x8x8xf32>
    %164 = math.exp %163 : vector<2x8x8xf32>
    %cst_71 = arith.constant dense<0.000000e+00> : vector<2x8xf32>
    %165 = vector.multi_reduction <add>, %164, %cst_71 [2] : vector<2x8x8xf32> to vector<2x8xf32>
    %166 = vector.shape_cast %165 : vector<2x8xf32> to vector<2x8x1xf32>
    %167 = tpu.reciprocal %166 {approx = true} : vector<2x8x1xf32> -> vector<2x8x1xf32>
    %168 = vector.broadcast %167 : vector<2x8x1xf32> to vector<2x8x8xf32>
    %169 = arith.mulf %164, %168 : vector<2x8x8xf32>
    %170 = arith.truncf %169 : vector<2x8x8xf32> to vector<2x8x8xbf16>
    %171 = arith.truncf %152 : vector<2x8x16xf32> to vector<2x8x16xbf16>
    "tpu.trace_start"() <{level = 10 : i32, message = "hqk,hkd->hqd"}> : () -> ()
    %cst_72 = arith.constant dense<0.000000e+00> : vector<2x8x16xf32>
    %172 = tpu.matmul %170, %171, %cst_72 {dimension_numbers = #tpu.dot_dimension_numbers<[2], [1], [1], [2], [0, 0, 0, 1, 1, 2], [0], [0]>} : vector<2x8x8xbf16>, vector<2x8x16xbf16>, vector<2x8x16xf32> -> vector<2x8x16xf32>
    "tpu.trace_stop"() : () -> ()
    %c0_73 = arith.constant 0 : index
    %c0_74 = arith.constant 0 : index
    %173 = vector.load %arg24[%c0_73, %c0_74] : memref<32x32xbf16, #tpu.memory_space<vmem>>, vector<32x32xbf16>
    %174 = vector.extract_strided_slice %172 {offsets = [0, 0, 0], sizes = [1, 8, 16], strides = [1, 1, 1]} : vector<2x8x16xf32> to vector<1x8x16xf32>
    %175 = vector.shape_cast %174 : vector<1x8x16xf32> to vector<8x16xf32>
    %176 = arith.truncf %175 : vector<8x16xf32> to vector<8x16xbf16>
    %177 = vector.extract_strided_slice %173 {offsets = [0, 0], sizes = [16, 32], strides = [1, 1]} : vector<32x32xbf16> to vector<16x32xbf16>
    %cst_75 = arith.constant dense<0.000000e+00> : vector<8x32xf32>
    %178 = tpu.matmul %176, %177, %cst_75 {dimension_numbers = #tpu.dot_dimension_numbers<[1], [0], [0], [1], [0, 0, 1, 1], [], []>} : vector<8x16xbf16>, vector<16x32xbf16>, vector<8x32xf32> -> vector<8x32xf32>
    %179 = vector.extract_strided_slice %172 {offsets = [1, 0, 0], sizes = [1, 8, 16], strides = [1, 1, 1]} : vector<2x8x16xf32> to vector<1x8x16xf32>
    %180 = vector.shape_cast %179 : vector<1x8x16xf32> to vector<8x16xf32>
    %181 = arith.truncf %180 : vector<8x16xf32> to vector<8x16xbf16>
    %182 = vector.extract_strided_slice %173 {offsets = [16, 0], sizes = [16, 32], strides = [1, 1]} : vector<32x32xbf16> to vector<16x32xbf16>
    %cst_76 = arith.constant dense<0.000000e+00> : vector<8x32xf32>
    %183 = tpu.matmul %181, %182, %cst_76 {dimension_numbers = #tpu.dot_dimension_numbers<[1], [0], [0], [1], [0, 0, 1, 1], [], []>} : vector<8x16xbf16>, vector<16x32xbf16>, vector<8x32xf32> -> vector<8x32xf32>
    %184 = arith.addf %178, %183 : vector<8x32xf32>
    %c0_77 = arith.constant 0 : index
    %c0_78 = arith.constant 0 : index
    %185 = vector.load %arg25[%c0_77, %c0_78] : memref<1x32xf32, #tpu.memory_space<vmem>>, vector<1x32xf32>
    %186 = vector.broadcast %185 : vector<1x32xf32> to vector<8x32xf32>
    %187 = arith.addf %184, %186 : vector<8x32xf32>
    %188 = arith.addf %187, %134 : vector<8x32xf32>
    %c0_79 = arith.constant 0 : index
    %c0_80 = arith.constant 0 : index
    %189 = vector.load %arg26[%c0_79, %c0_80] : memref<1x32xf32, #tpu.memory_space<vmem>>, vector<1x32xf32>
    %c0_81 = arith.constant 0 : index
    %c0_82 = arith.constant 0 : index
    %190 = vector.load %arg27[%c0_81, %c0_82] : memref<1x32xf32, #tpu.memory_space<vmem>>, vector<1x32xf32>
    %cst_83 = arith.constant dense<0.000000e+00> : vector<8xf32>
    %191 = vector.multi_reduction <add>, %188, %cst_83 [1] : vector<8x32xf32> to vector<8xf32>
    %192 = vector.shape_cast %191 : vector<8xf32> to vector<8x1xf32>
    %cst_84 = arith.constant 3.200000e+01 : f32
    %193 = vector.broadcast %cst_84 : f32 to vector<8x1xf32>
    %194 = arith.divf %192, %193 : vector<8x1xf32>
    %195 = vector.broadcast %194 : vector<8x1xf32> to vector<8x32xf32>
    %196 = arith.subf %188, %195 : vector<8x32xf32>
    %197 = arith.mulf %196, %196 : vector<8x32xf32>
    %cst_85 = arith.constant dense<0.000000e+00> : vector<8xf32>
    %198 = vector.multi_reduction <add>, %197, %cst_85 [1] : vector<8x32xf32> to vector<8xf32>
    %199 = vector.shape_cast %198 : vector<8xf32> to vector<8x1xf32>
    %cst_86 = arith.constant 3.200000e+01 : f32
    %200 = vector.broadcast %cst_86 : f32 to vector<8x1xf32>
    %201 = arith.divf %199, %200 : vector<8x1xf32>
    %202 = vector.broadcast %194 : vector<8x1xf32> to vector<8x32xf32>
    %203 = arith.subf %188, %202 : vector<8x32xf32>
    %cst_87 = arith.constant 9.99999996E-13 : f32
    %204 = vector.broadcast %cst_87 : f32 to vector<8x1xf32>
    %205 = arith.addf %201, %204 : vector<8x1xf32>
    %206 = math.rsqrt %205 : vector<8x1xf32>
    %207 = vector.broadcast %206 : vector<8x1xf32> to vector<8x32xf32>
    %208 = arith.mulf %203, %207 : vector<8x32xf32>
    %209 = vector.broadcast %189 : vector<1x32xf32> to vector<8x32xf32>
    %210 = arith.mulf %208, %209 : vector<8x32xf32>
    %211 = vector.broadcast %190 : vector<1x32xf32> to vector<8x32xf32>
    %212 = arith.addf %210, %211 : vector<8x32xf32>
    %213 = arith.truncf %212 : vector<8x32xf32> to vector<8x32xbf16>
    %c0_88 = arith.constant 0 : index
    %c0_89 = arith.constant 0 : index
    %214 = vector.load %arg28[%c0_88, %c0_89] : memref<32x32xbf16, #tpu.memory_space<vmem>>, vector<32x32xbf16>
    %cst_90 = arith.constant dense<0.000000e+00> : vector<8x32xf32>
    %215 = tpu.matmul %213, %214, %cst_90 {dimension_numbers = #tpu.dot_dimension_numbers<[1], [0], [0], [1], [0, 0, 1, 1], [], []>} : vector<8x32xbf16>, vector<32x32xbf16>, vector<8x32xf32> -> vector<8x32xf32>
    %c0_91 = arith.constant 0 : index
    %c0_92 = arith.constant 0 : index
    %216 = vector.load %arg29[%c0_91, %c0_92] : memref<1x32xf32, #tpu.memory_space<vmem>>, vector<1x32xf32>
    %217 = vector.broadcast %216 : vector<1x32xf32> to vector<8x32xf32>
    %218 = arith.addf %215, %217 : vector<8x32xf32>
    %219 = arith.mulf %218, %218 : vector<8x32xf32>
    %220 = arith.mulf %218, %219 : vector<8x32xf32>
    %cst_93 = arith.constant 4.471500e-02 : f32
    %221 = vector.broadcast %cst_93 : f32 to vector<8x32xf32>
    %222 = arith.mulf %221, %220 : vector<8x32xf32>
    %223 = arith.addf %218, %222 : vector<8x32xf32>
    %cst_94 = arith.constant 0.797884583 : f32
    %224 = vector.broadcast %cst_94 : f32 to vector<8x32xf32>
    %225 = arith.mulf %224, %223 : vector<8x32xf32>
    %226 = math.tanh %225 : vector<8x32xf32>
    %cst_95 = arith.constant 1.000000e+00 : f32
    %227 = vector.broadcast %cst_95 : f32 to vector<8x32xf32>
    %228 = arith.addf %227, %226 : vector<8x32xf32>
    %cst_96 = arith.constant 5.000000e-01 : f32
    %229 = vector.broadcast %cst_96 : f32 to vector<8x32xf32>
    %230 = arith.mulf %229, %228 : vector<8x32xf32>
    %231 = arith.mulf %218, %230 : vector<8x32xf32>
    %232 = arith.truncf %231 : vector<8x32xf32> to vector<8x32xbf16>
    %c0_97 = arith.constant 0 : index
    %c0_98 = arith.constant 0 : index
    %233 = vector.load %arg30[%c0_97, %c0_98] : memref<32x32xbf16, #tpu.memory_space<vmem>>, vector<32x32xbf16>
    %cst_99 = arith.constant dense<0.000000e+00> : vector<8x32xf32>
    %234 = tpu.matmul %232, %233, %cst_99 {dimension_numbers = #tpu.dot_dimension_numbers<[1], [0], [0], [1], [0, 0, 1, 1], [], []>} : vector<8x32xbf16>, vector<32x32xbf16>, vector<8x32xf32> -> vector<8x32xf32>
    %c0_100 = arith.constant 0 : index
    %c0_101 = arith.constant 0 : index
    %235 = vector.load %arg31[%c0_100, %c0_101] : memref<1x32xf32, #tpu.memory_space<vmem>>, vector<1x32xf32>
    %236 = vector.broadcast %235 : vector<1x32xf32> to vector<8x32xf32>
    %237 = arith.addf %234, %236 : vector<8x32xf32>
    %238 = arith.addf %237, %212 : vector<8x32xf32>
    %c0_102 = arith.constant 0 : index
    %c0_103 = arith.constant 0 : index
    %239 = vector.load %arg32[%c0_102, %c0_103] : memref<1x32xf32, #tpu.memory_space<vmem>>, vector<1x32xf32>
    %c0_104 = arith.constant 0 : index
    %c0_105 = arith.constant 0 : index
    %240 = vector.load %arg33[%c0_104, %c0_105] : memref<1x32xf32, #tpu.memory_space<vmem>>, vector<1x32xf32>
    %cst_106 = arith.constant dense<0.000000e+00> : vector<8xf32>
    %241 = vector.multi_reduction <add>, %238, %cst_106 [1] : vector<8x32xf32> to vector<8xf32>
    %242 = vector.shape_cast %241 : vector<8xf32> to vector<8x1xf32>
    %cst_107 = arith.constant 3.200000e+01 : f32
    %243 = vector.broadcast %cst_107 : f32 to vector<8x1xf32>
    %244 = arith.divf %242, %243 : vector<8x1xf32>
    %245 = vector.broadcast %244 : vector<8x1xf32> to vector<8x32xf32>
    %246 = arith.subf %238, %245 : vector<8x32xf32>
    %247 = arith.mulf %246, %246 : vector<8x32xf32>
    %cst_108 = arith.constant dense<0.000000e+00> : vector<8xf32>
    %248 = vector.multi_reduction <add>, %247, %cst_108 [1] : vector<8x32xf32> to vector<8xf32>
    %249 = vector.shape_cast %248 : vector<8xf32> to vector<8x1xf32>
    %cst_109 = arith.constant 3.200000e+01 : f32
    %250 = vector.broadcast %cst_109 : f32 to vector<8x1xf32>
    %251 = arith.divf %249, %250 : vector<8x1xf32>
    %252 = vector.broadcast %244 : vector<8x1xf32> to vector<8x32xf32>
    %253 = arith.subf %238, %252 : vector<8x32xf32>
    %cst_110 = arith.constant 9.99999996E-13 : f32
    %254 = vector.broadcast %cst_110 : f32 to vector<8x1xf32>
    %255 = arith.addf %251, %254 : vector<8x1xf32>
    %256 = math.rsqrt %255 : vector<8x1xf32>
    %257 = vector.broadcast %256 : vector<8x1xf32> to vector<8x32xf32>
    %258 = arith.mulf %253, %257 : vector<8x32xf32>
    %259 = vector.broadcast %239 : vector<1x32xf32> to vector<8x32xf32>
    %260 = arith.mulf %258, %259 : vector<8x32xf32>
    %261 = vector.broadcast %240 : vector<1x32xf32> to vector<8x32xf32>
    %262 = arith.addf %260, %261 : vector<8x32xf32>
    %263 = tpu.concatenate %262, %135 in 1 : vector<8x32xf32>, vector<8x32xf32> -> vector<8x64xf32>
    %264 = arith.truncf %263 : vector<8x64xf32> to vector<8x64xbf16>
    %c0_111 = arith.constant 0 : index
    %c0_112 = arith.constant 0 : index
    %265 = vector.load %arg34[%c0_111, %c0_112] : memref<64x256xbf16, #tpu.memory_space<vmem>>, vector<64x256xbf16>
    %cst_113 = arith.constant dense<0.000000e+00> : vector<8x256xf32>
    %266 = tpu.matmul %264, %265, %cst_113 {dimension_numbers = #tpu.dot_dimension_numbers<[1], [0], [0], [1], [0, 0, 1, 1], [], []>} : vector<8x64xbf16>, vector<64x256xbf16>, vector<8x256xf32> -> vector<8x256xf32>
    %c0_114 = arith.constant 0 : index
    %c0_115 = arith.constant 0 : index
    %267 = vector.load %arg36[%c0_114, %c0_115] : memref<1x256xf32, #tpu.memory_space<vmem>>, vector<1x256xf32>
    %268 = vector.broadcast %267 : vector<1x256xf32> to vector<8x256xf32>
    %269 = arith.addf %266, %268 : vector<8x256xf32>
    %c0_116 = arith.constant 0 : index
    %c0_117 = arith.constant 0 : index
    %270 = vector.load %arg48[%c0_116, %c0_117] : memref<8x256xf32, #tpu.memory_space<vmem>>, vector<8x256xf32>
    tpu.vector_store %arg48[%c0_116, %c0_117], %269 {strides = array<i32>} : memref<8x256xf32, #tpu.memory_space<vmem>>, vector<8x256xf32>,
    %c0_118 = arith.constant 0 : index
    %c0_119 = arith.constant 0 : index
    %271 = vector.load %arg35[%c0_118, %c0_119] : memref<64x256xbf16, #tpu.memory_space<vmem>>, vector<64x256xbf16>
    %cst_120 = arith.constant 0.000000e+00 : f32
    %272 = vector.broadcast %cst_120 : f32 to vector<1x64xf32>
    %cst_121 = arith.constant 0.000000e+00 : f32
    %273 = vector.broadcast %cst_121 : f32 to vector<1x64xf32>
    %c0_i32 = arith.constant 0 : i32
    %c8_i32 = arith.constant 8 : i32
    %274 = arith.addi %c0_i32, %c8_i32 : i32
    %c1_i32 = arith.constant 1 : i32
    %275:2 = scf.for %arg49 = %c0_i32 to %274 step %c1_i32 iter_args(%arg50 = %272, %arg51 = %273) -> (vector<1x64xf32>, vector<1x64xf32>)  : i32 {
      %347 = arith.index_cast %arg49 : i32 to index
      %c0_162 = arith.constant 0 : index
      %348 = vector.load %arg48[%347, %c0_162] : memref<8x256xf32, #tpu.memory_space<vmem>>, vector<1x256xf32>
      %349 = arith.truncf %arg50 : vector<1x64xf32> to vector<1x64xbf16>
      %cst_163 = arith.constant dense<0.000000e+00> : vector<1x256xf32>
      %350 = tpu.matmul %349, %271, %cst_163 {dimension_numbers = #tpu.dot_dimension_numbers<[1], [0], [0], [1], [0, 0, 1, 1], [], []>} : vector<1x64xbf16>, vector<64x256xbf16>, vector<1x256xf32> -> vector<1x256xf32>
      %351 = arith.addf %348, %350 : vector<1x256xf32>
      %352 = vector.extract_strided_slice %351 {offsets = [0, 0], sizes = [1, 192], strides = [1, 1]} : vector<1x256xf32> to vector<1x192xf32>
      %353 = arith.negf %352 : vector<1x192xf32>
      %354 = math.exp %353 : vector<1x192xf32>
      %cst_164 = arith.constant 1.000000e+00 : f32
      %355 = vector.broadcast %cst_164 : f32 to vector<1x192xf32>
      %356 = arith.addf %355, %354 : vector<1x192xf32>
      %357 = arith.divf %355, %356 : vector<1x192xf32>
      %358 = vector.extract_strided_slice %351 {offsets = [0, 192], sizes = [1, 64], strides = [1, 1]} : vector<1x256xf32> to vector<1x64xf32>
      %359 = math.tanh %358 : vector<1x64xf32>
      %360 = vector.extract_strided_slice %357 {offsets = [0, 64], sizes = [1, 64], strides = [1, 1]} : vector<1x192xf32> to vector<1x64xf32>
      %361 = arith.mulf %360, %arg51 : vector<1x64xf32>
      %362 = vector.extract_strided_slice %357 {offsets = [0, 0], sizes = [1, 64], strides = [1, 1]} : vector<1x192xf32> to vector<1x64xf32>
      %363 = arith.mulf %362, %359 : vector<1x64xf32>
      %364 = arith.addf %361, %363 : vector<1x64xf32>
      %365 = vector.extract_strided_slice %357 {offsets = [0, 128], sizes = [1, 64], strides = [1, 1]} : vector<1x192xf32> to vector<1x64xf32>
      %366 = math.tanh %364 : vector<1x64xf32>
      %367 = arith.mulf %365, %366 : vector<1x64xf32>
      scf.yield %367, %364 : vector<1x64xf32>, vector<1x64xf32>
    }
    %c8_i32_122 = arith.constant 8 : i32
    %276 = arith.truncf %275#0 : vector<1x64xf32> to vector<1x64xbf16>
    %c0_123 = arith.constant 0 : index
    %c0_124 = arith.constant 0 : index
    %277 = vector.load %arg37[%c0_123, %c0_124] : memref<64x64xbf16, #tpu.memory_space<vmem>>, vector<64x64xbf16>
    %cst_125 = arith.constant dense<0.000000e+00> : vector<1x64xf32>
    %278 = tpu.matmul %276, %277, %cst_125 {dimension_numbers = #tpu.dot_dimension_numbers<[1], [0], [0], [1], [0, 0, 1, 1], [], []>} : vector<1x64xbf16>, vector<64x64xbf16>, vector<1x64xf32> -> vector<1x64xf32>
    %c0_126 = arith.constant 0 : index
    %c0_127 = arith.constant 0 : index
    %279 = vector.load %arg38[%c0_126, %c0_127] : memref<1x64xf32, #tpu.memory_space<vmem>>, vector<1x64xf32>
    %280 = arith.addf %278, %279 : vector<1x64xf32>
    %c0_128 = arith.constant 0 : index
    %c0_129 = arith.constant 0 : index
    %281 = vector.load %arg39[%c0_128, %c0_129] : memref<1x64xf32, #tpu.memory_space<vmem>>, vector<1x64xf32>
    %c0_130 = arith.constant 0 : index
    %c0_131 = arith.constant 0 : index
    %282 = vector.load %arg40[%c0_130, %c0_131] : memref<1x64xf32, #tpu.memory_space<vmem>>, vector<1x64xf32>
    %cst_132 = arith.constant dense<0.000000e+00> : vector<1xf32>
    %283 = vector.multi_reduction <add>, %280, %cst_132 [1] : vector<1x64xf32> to vector<1xf32>
    %284 = vector.shape_cast %283 : vector<1xf32> to vector<1x1xf32>
    %cst_133 = arith.constant 6.400000e+01 : f32
    %285 = vector.broadcast %cst_133 : f32 to vector<1x1xf32>
    %286 = arith.divf %284, %285 : vector<1x1xf32>
    %287 = vector.broadcast %286 : vector<1x1xf32> to vector<1x64xf32>
    %288 = arith.subf %280, %287 : vector<1x64xf32>
    %289 = arith.mulf %288, %288 : vector<1x64xf32>
    %cst_134 = arith.constant dense<0.000000e+00> : vector<1xf32>
    %290 = vector.multi_reduction <add>, %289, %cst_134 [1] : vector<1x64xf32> to vector<1xf32>
    %291 = vector.shape_cast %290 : vector<1xf32> to vector<1x1xf32>
    %cst_135 = arith.constant 6.400000e+01 : f32
    %292 = vector.broadcast %cst_135 : f32 to vector<1x1xf32>
    %293 = arith.divf %291, %292 : vector<1x1xf32>
    %294 = vector.broadcast %286 : vector<1x1xf32> to vector<1x64xf32>
    %295 = arith.subf %280, %294 : vector<1x64xf32>
    %cst_136 = arith.constant 9.99999974E-6 : f32
    %296 = vector.broadcast %cst_136 : f32 to vector<1x1xf32>
    %297 = arith.addf %293, %296 : vector<1x1xf32>
    %298 = math.rsqrt %297 : vector<1x1xf32>
    %299 = vector.broadcast %298 : vector<1x1xf32> to vector<1x64xf32>
    %300 = arith.mulf %295, %299 : vector<1x64xf32>
    %301 = arith.mulf %300, %281 : vector<1x64xf32>
    %302 = arith.addf %301, %282 : vector<1x64xf32>
    %cst_137 = arith.constant 0.000000e+00 : f32
    %303 = vector.broadcast %cst_137 : f32 to vector<1x64xf32>
    %304 = arith.maximumf %302, %303 : vector<1x64xf32>
    %305 = arith.truncf %304 : vector<1x64xf32> to vector<1x64xbf16>
    %c0_138 = arith.constant 0 : index
    %c0_139 = arith.constant 0 : index
    %306 = vector.load %arg41[%c0_138, %c0_139] : memref<64x64xbf16, #tpu.memory_space<vmem>>, vector<64x64xbf16>
    %cst_140 = arith.constant dense<0.000000e+00> : vector<1x64xf32>
    %307 = tpu.matmul %305, %306, %cst_140 {dimension_numbers = #tpu.dot_dimension_numbers<[1], [0], [0], [1], [0, 0, 1, 1], [], []>} : vector<1x64xbf16>, vector<64x64xbf16>, vector<1x64xf32> -> vector<1x64xf32>
    %c0_141 = arith.constant 0 : index
    %c0_142 = arith.constant 0 : index
    %308 = vector.load %arg42[%c0_141, %c0_142] : memref<1x64xf32, #tpu.memory_space<vmem>>, vector<1x64xf32>
    %309 = arith.addf %307, %308 : vector<1x64xf32>
    %c0_143 = arith.constant 0 : index
    %c0_144 = arith.constant 0 : index
    %310 = vector.load %arg43[%c0_143, %c0_144] : memref<1x64xf32, #tpu.memory_space<vmem>>, vector<1x64xf32>
    %c0_145 = arith.constant 0 : index
    %c0_146 = arith.constant 0 : index
    %311 = vector.load %arg44[%c0_145, %c0_146] : memref<1x64xf32, #tpu.memory_space<vmem>>, vector<1x64xf32>
    %cst_147 = arith.constant dense<0.000000e+00> : vector<1xf32>
    %312 = vector.multi_reduction <add>, %309, %cst_147 [1] : vector<1x64xf32> to vector<1xf32>
    %313 = vector.shape_cast %312 : vector<1xf32> to vector<1x1xf32>
    %cst_148 = arith.constant 6.400000e+01 : f32
    %314 = vector.broadcast %cst_148 : f32 to vector<1x1xf32>
    %315 = arith.divf %313, %314 : vector<1x1xf32>
    %316 = vector.broadcast %315 : vector<1x1xf32> to vector<1x64xf32>
    %317 = arith.subf %309, %316 : vector<1x64xf32>
    %318 = arith.mulf %317, %317 : vector<1x64xf32>
    %cst_149 = arith.constant dense<0.000000e+00> : vector<1xf32>
    %319 = vector.multi_reduction <add>, %318, %cst_149 [1] : vector<1x64xf32> to vector<1xf32>
    %320 = vector.shape_cast %319 : vector<1xf32> to vector<1x1xf32>
    %cst_150 = arith.constant 6.400000e+01 : f32
    %321 = vector.broadcast %cst_150 : f32 to vector<1x1xf32>
    %322 = arith.divf %320, %321 : vector<1x1xf32>
    %323 = vector.broadcast %315 : vector<1x1xf32> to vector<1x64xf32>
    %324 = arith.subf %309, %323 : vector<1x64xf32>
    %cst_151 = arith.constant 9.99999974E-6 : f32
    %325 = vector.broadcast %cst_151 : f32 to vector<1x1xf32>
    %326 = arith.addf %322, %325 : vector<1x1xf32>
    %327 = math.rsqrt %326 : vector<1x1xf32>
    %328 = vector.broadcast %327 : vector<1x1xf32> to vector<1x64xf32>
    %329 = arith.mulf %324, %328 : vector<1x64xf32>
    %330 = arith.mulf %329, %310 : vector<1x64xf32>
    %331 = arith.addf %330, %311 : vector<1x64xf32>
    %cst_152 = arith.constant 0.000000e+00 : f32
    %332 = vector.broadcast %cst_152 : f32 to vector<1x64xf32>
    %333 = arith.maximumf %331, %332 : vector<1x64xf32>
    %c0_153 = arith.constant 0 : index
    %c0_154 = arith.constant 0 : index
    %334 = vector.load %arg45[%c0_153, %c0_154] : memref<1x64xf32, #tpu.memory_space<vmem>>, vector<1x64xf32>
    %335 = arith.mulf %333, %334 : vector<1x64xf32>
    %cst_155 = arith.constant dense<0.000000e+00> : vector<1xf32>
    %336 = vector.multi_reduction <add>, %335, %cst_155 [1] : vector<1x64xf32> to vector<1xf32>
    %337 = vector.shape_cast %336 : vector<1xf32> to vector<1x1xf32>
    %c0_156 = arith.constant 0 : index
    %c0_157 = arith.constant 0 : index
    %338 = vector.load %arg46[%c0_156, %c0_157] : memref<1x1xf32, #tpu.memory_space<vmem>>, vector<1x1xf32>
    %339 = arith.addf %337, %338 : vector<1x1xf32>
    %340 = arith.negf %339 : vector<1x1xf32>
    %341 = math.exp %340 : vector<1x1xf32>
    %cst_158 = arith.constant 1.000000e+00 : f32
    %342 = vector.broadcast %cst_158 : f32 to vector<1x1xf32>
    %343 = arith.addf %342, %341 : vector<1x1xf32>
    %344 = arith.divf %342, %343 : vector<1x1xf32>
    %345 = vector.shape_cast %344 : vector<1x1xf32> to vector<1x1x1xf32>
    %c0_159 = arith.constant 0 : index
    %c0_160 = arith.constant 0 : index
    %c0_161 = arith.constant 0 : index
    %346 = vector.load %arg47[%c0_159, %c0_160, %c0_161] : memref<1x1x1xf32, #tpu.memory_space<vmem>>, vector<1x1x1xf32>
    tpu.vector_store %arg47[%c0_159, %c0_160, %c0_161], %345 {strides = array<i32>} : memref<1x1x1xf32, #tpu.memory_space<vmem>>, vector<1x1x1xf32>,
    return
  }
  func.func @transform_0(%arg0: i32) -> (i32, i32) {
    %c0_i32 = arith.constant 0 : i32
    %c0_i32_0 = arith.constant 0 : i32
    return %arg0, %c0_i32 : i32, i32
  }
  func.func @transform_1(%arg0: i32) -> (i32, i32) {
    %c0_i32 = arith.constant 0 : i32
    %c0_i32_0 = arith.constant 0 : i32
    return %arg0, %c0_i32 : i32, i32
  }
  func.func @transform_2(%arg0: i32) -> (i32, i32) {
    %c0_i32 = arith.constant 0 : i32
    %c0_i32_0 = arith.constant 0 : i32
    return %arg0, %c0_i32 : i32, i32
  }
  func.func @transform_3(%arg0: i32) -> (i32, i32) {
    %c0_i32 = arith.constant 0 : i32
    %c0_i32_0 = arith.constant 0 : i32
    return %arg0, %c0_i32 : i32, i32
  }
  func.func @transform_4(%arg0: i32) -> (i32, i32, i32) {
    %c0_i32 = arith.constant 0 : i32
    %c0_i32_0 = arith.constant 0 : i32
    %c0_i32_1 = arith.constant 0 : i32
    return %arg0, %c0_i32, %c0_i32_0 : i32, i32, i32
  }
  func.func @transform_5(%arg0: i32) -> (i32, i32) {
    %c0_i32 = arith.constant 0 : i32
    %c0_i32_0 = arith.constant 0 : i32
    %c0_i32_1 = arith.constant 0 : i32
    return %c0_i32, %c0_i32_0 : i32, i32
  }
  func.func @transform_6(%arg0: i32) -> (i32, i32) {
    %c0_i32 = arith.constant 0 : i32
    %c0_i32_0 = arith.constant 0 : i32
    %c0_i32_1 = arith.constant 0 : i32
    return %c0_i32, %c0_i32_0 : i32, i32
  }
  func.func @transform_7(%arg0: i32) -> (i32, i32) {
    %c0_i32 = arith.constant 0 : i32
    %c0_i32_0 = arith.constant 0 : i32
    %c0_i32_1 = arith.constant 0 : i32
    return %c0_i32, %c0_i32_0 : i32, i32
  }
  func.func @transform_8(%arg0: i32) -> (i32, i32) {
    %c0_i32 = arith.constant 0 : i32
    %c0_i32_0 = arith.constant 0 : i32
    %c0_i32_1 = arith.constant 0 : i32
    return %c0_i32, %c0_i32_0 : i32, i32
  }
  func.func @transform_9(%arg0: i32) -> (i32, i32) {
    %c0_i32 = arith.constant 0 : i32
    %c0_i32_0 = arith.constant 0 : i32
    %c0_i32_1 = arith.constant 0 : i32
    return %c0_i32, %c0_i32_0 : i32, i32
  }
  func.func @transform_10(%arg0: i32) -> (i32, i32) {
    %c0_i32 = arith.constant 0 : i32
    %c0_i32_0 = arith.constant 0 : i32
    %c0_i32_1 = arith.constant 0 : i32
    return %c0_i32, %c0_i32_0 : i32, i32
  }
  func.func @transform_11(%arg0: i32) -> (i32, i32) {
    %c0_i32 = arith.constant 0 : i32
    %c0_i32_0 = arith.constant 0 : i32
    %c0_i32_1 = arith.constant 0 : i32
    return %c0_i32, %c0_i32_0 : i32, i32
  }
  func.func @transform_12(%arg0: i32) -> (i32, i32) {
    %c0_i32 = arith.constant 0 : i32
    %c0_i32_0 = arith.constant 0 : i32
    %c0_i32_1 = arith.constant 0 : i32
    return %c0_i32, %c0_i32_0 : i32, i32
  }
  func.func @transform_13(%arg0: i32) -> (i32, i32) {
    %c0_i32 = arith.constant 0 : i32
    %c0_i32_0 = arith.constant 0 : i32
    %c0_i32_1 = arith.constant 0 : i32
    return %c0_i32, %c0_i32_0 : i32, i32
  }
  func.func @transform_14(%arg0: i32) -> (i32, i32) {
    %c0_i32 = arith.constant 0 : i32
    %c0_i32_0 = arith.constant 0 : i32
    %c0_i32_1 = arith.constant 0 : i32
    return %c0_i32, %c0_i32_0 : i32, i32
  }
  func.func @transform_15(%arg0: i32) -> (i32, i32) {
    %c0_i32 = arith.constant 0 : i32
    %c0_i32_0 = arith.constant 0 : i32
    %c0_i32_1 = arith.constant 0 : i32
    return %c0_i32, %c0_i32_0 : i32, i32
  }
  func.func @transform_16(%arg0: i32) -> (i32, i32) {
    %c0_i32 = arith.constant 0 : i32
    %c0_i32_0 = arith.constant 0 : i32
    %c0_i32_1 = arith.constant 0 : i32
    return %c0_i32, %c0_i32_0 : i32, i32
  }
  func.func @transform_17(%arg0: i32) -> (i32, i32) {
    %c0_i32 = arith.constant 0 : i32
    %c0_i32_0 = arith.constant 0 : i32
    %c0_i32_1 = arith.constant 0 : i32
    return %c0_i32, %c0_i32_0 : i32, i32
  }
  func.func @transform_18(%arg0: i32) -> (i32, i32) {
    %c0_i32 = arith.constant 0 : i32
    %c0_i32_0 = arith.constant 0 : i32
    %c0_i32_1 = arith.constant 0 : i32
    return %c0_i32, %c0_i32_0 : i32, i32
  }
  func.func @transform_19(%arg0: i32) -> (i32, i32) {
    %c0_i32 = arith.constant 0 : i32
    %c0_i32_0 = arith.constant 0 : i32
    %c0_i32_1 = arith.constant 0 : i32
    return %c0_i32, %c0_i32_0 : i32, i32
  }
  func.func @transform_20(%arg0: i32) -> (i32, i32) {
    %c0_i32 = arith.constant 0 : i32
    %c0_i32_0 = arith.constant 0 : i32
    %c0_i32_1 = arith.constant 0 : i32
    return %c0_i32, %c0_i32_0 : i32, i32
  }
  func.func @transform_21(%arg0: i32) -> (i32, i32) {
    %c0_i32 = arith.constant 0 : i32
    %c0_i32_0 = arith.constant 0 : i32
    %c0_i32_1 = arith.constant 0 : i32
    return %c0_i32, %c0_i32_0 : i32, i32
  }
  func.func @transform_22(%arg0: i32) -> (i32, i32) {
    %c0_i32 = arith.constant 0 : i32
    %c0_i32_0 = arith.constant 0 : i32
    %c0_i32_1 = arith.constant 0 : i32
    return %c0_i32, %c0_i32_0 : i32, i32
  }
  func.func @transform_23(%arg0: i32) -> (i32, i32) {
    %c0_i32 = arith.constant 0 : i32
    %c0_i32_0 = arith.constant 0 : i32
    %c0_i32_1 = arith.constant 0 : i32
    return %c0_i32, %c0_i32_0 : i32, i32
  }
  func.func @transform_24(%arg0: i32) -> (i32, i32) {
    %c0_i32 = arith.constant 0 : i32
    %c0_i32_0 = arith.constant 0 : i32
    %c0_i32_1 = arith.constant 0 : i32
    return %c0_i32, %c0_i32_0 : i32, i32
  }
  func.func @transform_25(%arg0: i32) -> (i32, i32) {
    %c0_i32 = arith.constant 0 : i32
    %c0_i32_0 = arith.constant 0 : i32
    %c0_i32_1 = arith.constant 0 : i32
    return %c0_i32, %c0_i32_0 : i32, i32
  }
  func.func @transform_26(%arg0: i32) -> (i32, i32) {
    %c0_i32 = arith.constant 0 : i32
    %c0_i32_0 = arith.constant 0 : i32
    %c0_i32_1 = arith.constant 0 : i32
    return %c0_i32, %c0_i32_0 : i32, i32
  }
  func.func @transform_27(%arg0: i32) -> (i32, i32) {
    %c0_i32 = arith.constant 0 : i32
    %c0_i32_0 = arith.constant 0 : i32
    %c0_i32_1 = arith.constant 0 : i32
    return %c0_i32, %c0_i32_0 : i32, i32
  }
  func.func @transform_28(%arg0: i32) -> (i32, i32) {
    %c0_i32 = arith.constant 0 : i32
    %c0_i32_0 = arith.constant 0 : i32
    %c0_i32_1 = arith.constant 0 : i32
    return %c0_i32, %c0_i32_0 : i32, i32
  }
  func.func @transform_29(%arg0: i32) -> (i32, i32) {
    %c0_i32 = arith.constant 0 : i32
    %c0_i32_0 = arith.constant 0 : i32
    %c0_i32_1 = arith.constant 0 : i32
    return %c0_i32, %c0_i32_0 : i32, i32
  }
  func.func @transform_30(%arg0: i32) -> (i32, i32) {
    %c0_i32 = arith.constant 0 : i32
    %c0_i32_0 = arith.constant 0 : i32
    %c0_i32_1 = arith.constant 0 : i32
    return %c0_i32, %c0_i32_0 : i32, i32
  }
  func.func @transform_31(%arg0: i32) -> (i32, i32) {
    %c0_i32 = arith.constant 0 : i32
    %c0_i32_0 = arith.constant 0 : i32
    %c0_i32_1 = arith.constant 0 : i32
    return %c0_i32, %c0_i32_0 : i32, i32
  }
  func.func @transform_32(%arg0: i32) -> (i32, i32) {
    %c0_i32 = arith.constant 0 : i32
    %c0_i32_0 = arith.constant 0 : i32
    %c0_i32_1 = arith.constant 0 : i32
    return %c0_i32, %c0_i32_0 : i32, i32
  }
  func.func @transform_33(%arg0: i32) -> (i32, i32) {
    %c0_i32 = arith.constant 0 : i32
    %c0_i32_0 = arith.constant 0 : i32
    %c0_i32_1 = arith.constant 0 : i32
    return %c0_i32, %c0_i32_0 : i32, i32
  }
  func.func @transform_34(%arg0: i32) -> (i32, i32) {
    %c0_i32 = arith.constant 0 : i32
    %c0_i32_0 = arith.constant 0 : i32
    %c0_i32_1 = arith.constant 0 : i32
    return %c0_i32, %c0_i32_0 : i32, i32
  }
  func.func @transform_35(%arg0: i32) -> (i32, i32) {
    %c0_i32 = arith.constant 0 : i32
    %c0_i32_0 = arith.constant 0 : i32
    %c0_i32_1 = arith.constant 0 : i32
    return %c0_i32, %c0_i32_0 : i32, i32
  }
  func.func @transform_36(%arg0: i32) -> (i32, i32) {
    %c0_i32 = arith.constant 0 : i32
    %c0_i32_0 = arith.constant 0 : i32
    %c0_i32_1 = arith.constant 0 : i32
    return %c0_i32, %c0_i32_0 : i32, i32
  }
  func.func @transform_37(%arg0: i32) -> (i32, i32) {
    %c0_i32 = arith.constant 0 : i32
    %c0_i32_0 = arith.constant 0 : i32
    %c0_i32_1 = arith.constant 0 : i32
    return %c0_i32, %c0_i32_0 : i32, i32
  }
  func.func @transform_38(%arg0: i32) -> (i32, i32) {
    %c0_i32 = arith.constant 0 : i32
    %c0_i32_0 = arith.constant 0 : i32
    %c0_i32_1 = arith.constant 0 : i32
    return %c0_i32, %c0_i32_0 : i32, i32
  }
  func.func @transform_39(%arg0: i32) -> (i32, i32) {
    %c0_i32 = arith.constant 0 : i32
    %c0_i32_0 = arith.constant 0 : i32
    %c0_i32_1 = arith.constant 0 : i32
    return %c0_i32, %c0_i32_0 : i32, i32
  }
  func.func @transform_40(%arg0: i32) -> (i32, i32) {
    %c0_i32 = arith.constant 0 : i32
    %c0_i32_0 = arith.constant 0 : i32
    %c0_i32_1 = arith.constant 0 : i32
    return %c0_i32, %c0_i32_0 : i32, i32
  }
  func.func @transform_41(%arg0: i32) -> (i32, i32) {
    %c0_i32 = arith.constant 0 : i32
    %c0_i32_0 = arith.constant 0 : i32
    %c0_i32_1 = arith.constant 0 : i32
    return %c0_i32, %c0_i32_0 : i32, i32
  }
  func.func @transform_42(%arg0: i32) -> (i32, i32) {
    %c0_i32 = arith.constant 0 : i32
    %c0_i32_0 = arith.constant 0 : i32
    %c0_i32_1 = arith.constant 0 : i32
    return %c0_i32, %c0_i32_0 : i32, i32
  }
  func.func @transform_43(%arg0: i32) -> (i32, i32) {
    %c0_i32 = arith.constant 0 : i32
    %c0_i32_0 = arith.constant 0 : i32
    %c0_i32_1 = arith.constant 0 : i32
    return %c0_i32, %c0_i32_0 : i32, i32
  }
  func.func @transform_44(%arg0: i32) -> (i32, i32) {
    %c0_i32 = arith.constant 0 : i32
    %c0_i32_0 = arith.constant 0 : i32
    %c0_i32_1 = arith.constant 0 : i32
    return %c0_i32, %c0_i32_0 : i32, i32
  }
  func.func @transform_45(%arg0: i32) -> (i32, i32) {
    %c0_i32 = arith.constant 0 : i32
    %c0_i32_0 = arith.constant 0 : i32
    %c0_i32_1 = arith.constant 0 : i32
    return %c0_i32, %c0_i32_0 : i32, i32
  }
  func.func @transform_46(%arg0: i32) -> (i32, i32, i32) {
    %c0_i32 = arith.constant 0 : i32
    %c0_i32_0 = arith.constant 0 : i32
    %c0_i32_1 = arith.constant 0 : i32
    return %arg0, %c0_i32, %c0_i32_0 : i32, i32, i32
  }
}

</mosaic_0001>

<bundles_post_ra>
// kernel: tpu_custom_call.1
= control target key start
LH: loop header
LB: loop body
LE: loop exit
PB: predicated region body
PF: predicated region fallthrough
CT: control target
= control target key end

     0   :  { %s5209_s6 = smov 1   ;;  %s5210_s10 = smov 2   ;;  %s6138_s0 = inlined_call_operand.smem [shape: u32[47], index: -1, kind: input, shape index: {}] }
   0x1   :  { %s5305_s5 = sld [smem:[%s6138_s0]]   ;;  %s5211_s14 = smov 3  }
   0x2   :  { %s5310_s9 = sld [smem:[%s6138_s0 + %s5209_s6]]   ;;  %s5212_s18 = smov 4  }
   0x3   :  { %s5315_s13 = sld [smem:[%s6138_s0 + %s5210_s10]]   ;;  %s5213_s22 = smov 5  }
   0x4   :  { %s5320_s17 = sld [smem:[%s6138_s0 + %s5211_s14]]   ;;  %s5214_s26 = smov 6  }
   0x5   :  { %s5325_s21 = sld [smem:[%s6138_s0 + %s5212_s18]]   ;;  %s5215_s30 = smov 7  }
   0x6   :  { %s5330_s25 = sld [smem:[%s6138_s0 + %s5213_s22]]   ;;  %s5216_s4 = smov 8  }
   0x7   :  { %6163 = sst [smem:[#allocation59_spill]] %s5305_s5  ;;  %s5217_s10 = smov 9  }
   0x8   :  { %6164 = sst [smem:[#allocation60_spill]] %s5310_s9  ;;  %s5218_s15 = smov 10  }
   0x9   :  { %6165 = sst [smem:[#allocation61_spill]] %s5315_s13  ;;  %s5219_s20 = smov 11  }
   0xa   :  { %6166 = sst [smem:[#allocation62_spill]] %s5320_s17  ;;  %s5221_s1 = smov 13  }
   0xb   :  { %6167 = sst [smem:[#allocation63_spill]] %s5325_s21  ;;  %s5222_s7 = smov 14  }
   0xc   :  { %6168 = sst [smem:[#allocation64_spill]] %s5330_s25  ;;  %s5224_s22 = smov 16  }
   0xd   :  { %s5335_s29 = sld [smem:[%s6138_s0 + %s5214_s26]]   ;;  %s5220_s26 = smov 12  }
   0xe   :  { %s5340_s3 = sld [smem:[%s6138_s0 + %s5215_s30]]   ;;  %s5225_s28 = smov 17  }
   0xf   :  { %s5345_s8 = sld [smem:[%s6138_s0 + %s5216_s4]]  }
  0x10   :  { %s5350_s14 = sld [smem:[%s6138_s0 + %s5217_s10]]   ;;  %s5254_s10 = smov 46  }
  0x11   :  { %s5355_s19 = sld [smem:[%s6138_s0 + %s5218_s15]]   ;;  %s5223_s15 = smov 15  }
  0x12   :  { %s5360_s24 = sld [smem:[%s6138_s0 + %s5219_s20]]  }
  0x13   :  { %s5365_s30 = sld [smem:[%s6138_s0 + %s5220_s26]]  }
  0x14   :  { %6169 = sst [smem:[#allocation65_spill]] %s5340_s3 }
  0x15   :  { %6170 = sst [smem:[#allocation66_spill]] %s5345_s8 }
  0x16   :  { %6171 = sst [smem:[#allocation67_spill]] %s5350_s14 }
  0x17   :  { %6172 = sst [smem:[#allocation68_spill]] %s5355_s19 }
  0x18   :  { %6173 = sst [smem:[#allocation69_spill]] %s5360_s24 }
  0x19   :  { %s5370_s6 = sld [smem:[%s6138_s0 + %s5221_s1]]  }
  0x1a   :  { %s5375_s12 = sld [smem:[%s6138_s0 + %s5222_s7]]   ;;  %s5226_s7 = smov 18  }
  0x1b   :  { %s5380_s20 = sld [smem:[%s6138_s0 + %s5223_s15]]   ;;  %s5227_s15 = smov 19  }
  0x1c   :  { %s5385_s27 = sld [smem:[%s6138_s0 + %s5224_s22]]   ;;  %s5228_s22 = smov 20  }
  0x1d   :  { %s5390_s4 = sld [smem:[%s6138_s0 + %s5225_s28]]   ;;  %s5229_s28 = smov 21  }
  0x1e   :  { %s5395_s17 = sld [smem:[%s6138_s0 + %s5226_s7]]   ;;  %s5230_s7 = smov 22  }
  0x1f   :  { %6174 = sst [smem:[#allocation70_spill]] %s5370_s6 }
  0x20   :  { %6175 = sst [smem:[#allocation71_spill]] %s5375_s12 }
  0x21   :  { %6176 = sst [smem:[#allocation72_spill]] %s5380_s20 }
  0x22   :  { %6177 = sst [smem:[#allocation73_spill]] %s5385_s27 }
  0x23   :  { %6178 = sst [smem:[#allocation74_spill]] %s5390_s4 }
  0x24   :  { %6179 = sst [smem:[#allocation75_spill]] %s5395_s17 }
  0x25   :  { %s5400_s6 = sld [smem:[%s6138_s0 + %s5227_s15]]   ;;  %s5231_s15 = smov 23  }
  0x26   :  { %s5405_s25 = sld [smem:[%s6138_s0 + %s5228_s22]]   ;;  %s5232_s22 = smov 24  }
  0x27   :  { %s5410_s9 = sld [smem:[%s6138_s0 + %s5229_s28]]   ;;  %s5233_s28 = smov 25  }
  0x28   :  { %s5415_s21 = sld [smem:[%s6138_s0 + %s5230_s7]]   ;;  %s5234_s7 = smov 26  }
  0x29   :  { %s5420_s5 = sld [smem:[%s6138_s0 + %s5231_s15]]   ;;  %s5235_s15 = smov 27  }
  0x2a   :  { %s5430_s17 = sld [smem:[%s6138_s0 + %s5233_s28]]   ;;  %s5237_s28 = smov 29  }
  0x2b   :  { %6180 = sst [smem:[#allocation76_spill]] %s5400_s6 }
  0x2c   :  { %6181 = sst [smem:[#allocation77_spill]] %s5405_s25 }
  0x2d   :  { %6182 = sst [smem:[#allocation78_spill]] %s5410_s9 }
  0x2e   :  { %6183 = sst [smem:[#allocation79_spill]] %s5415_s21 }
  0x2f   :  { %6184 = sst [smem:[#allocation80_spill]] %s5420_s5 }
  0x30   :  { %s5425_s25 = sld [smem:[%s6138_s0 + %s5232_s22]]   ;;  %s5236_s22 = smov 28  }
  0x31   :  { %6186 = sst [smem:[#allocation82_spill]] %s5430_s17 }
  0x32   :  { %s5435_s21 = sld [smem:[%s6138_s0 + %s5234_s7]]   ;;  %s5238_s7 = smov 30  }
  0x33   :  { %s5440_s27 = sld [smem:[%s6138_s0 + %s5235_s15]]   ;;  %s5239_s15 = smov 31  }
  0x34   :  { %s5450_s12 = sld [smem:[%s6138_s0 + %s5237_s28]]   ;;  %s5241_s28 = smov 33  }
  0x35   :  { %s5460_s24 = sld [smem:[%s6138_s0 + %s5239_s15]]   ;;  %s5243_s15 = smov 35  }
  0x36   :  { %6185 = sst [smem:[#allocation81_spill]] %s5425_s25 }
  0x37   :  { %s5445_s25 = sld [smem:[%s6138_s0 + %s5236_s22]]   ;;  %s5240_s22 = smov 32  }
  0x38   :  { %6187 = sst [smem:[#allocation83_spill]] %s5435_s21 }
  0x39   :  { %s5455_s21 = sld [smem:[%s6138_s0 + %s5238_s7]]   ;;  %s5242_s7 = smov 34  }
  0x3a   :  { %6189 = sst [smem:[#allocation85_spill]] %s5450_s12 }
  0x3b   :  { %6191 = sst [smem:[#allocation87_spill]] %s5460_s24 }
  0x3c   :  { %s5470_s14 = sld [smem:[%s6138_s0 + %s5241_s28]]   ;;  %s5245_s28 = smov 37  }
  0x3d   :  { %6188 = sst [smem:[#allocation84_spill]] %s5445_s25 }
  0x3e   :  { %s5465_s25 = sld [smem:[%s6138_s0 + %s5240_s22]]   ;;  %s5244_s22 = smov 36  }
  0x3f   :  { %6190 = sst [smem:[#allocation86_spill]] %s5455_s21 }
  0x40   :  { %s5475_s21 = sld [smem:[%s6138_s0 + %s5242_s7]]   ;;  %s5246_s7 = smov 38  }
  0x41   :  { %s5480_s24 = sld [smem:[%s6138_s0 + %s5243_s15]]   ;;  %s5247_s15 = smov 39  }
  0x42   :  { %6193 = sst [smem:[#allocation89_spill]] %s5470_s14 }
  0x43   :  { %s5490_s14 = sld [smem:[%s6138_s0 + %s5245_s28]]   ;;  %s5249_s28 = smov 41  }
  0x44   :  { %6192 = sst [smem:[#allocation88_spill]] %s5465_s25 }
  0x45   :  { %s5485_s25 = sld [smem:[%s6138_s0 + %s5244_s22]]   ;;  %s5248_s22 = smov 40  }
  0x46   :  { %6194 = sst [smem:[#allocation90_spill]] %s5475_s21 }
  0x47   :  { %6195 = sst [smem:[#allocation91_spill]] %s5480_s24 }
  0x48   :  { %s5495_s21 = sld [smem:[%s6138_s0 + %s5246_s7]]   ;;  %s5250_s7 = smov 42  }
  0x49   :  { %6197 = sst [smem:[#allocation93_spill]] %s5490_s14 }
  0x4a   :  { %s5500_s24 = sld [smem:[%s6138_s0 + %s5247_s15]]   ;;  %s5251_s15 = smov 43  }
  0x4b   :  { %6196 = sst [smem:[#allocation92_spill]] %s5485_s25 }
  0x4c   :  { %s5505_s25 = sld [smem:[%s6138_s0 + %s5248_s22]]   ;;  %s5252_s22 = smov 44  }
  0x4d   :  { %s5510_s14 = sld [smem:[%s6138_s0 + %s5249_s28]]   ;;  %s5253_s28 = smov 45  }
  0x4e   :  { %6198 = sst [smem:[#allocation94_spill]] %s5495_s21 }
  0x4f   :  { %s5515_s21 = sld [smem:[%s6138_s0 + %s5250_s7]]  }
  0x50   :  { %6199 = sst [smem:[#allocation95_spill]] %s5500_s24 }
  0x51   :  { %s5520_s24 = sld [smem:[%s6138_s0 + %s5251_s15]]  }
  0x52   :  { %6200 = sst [smem:[#allocation96_spill]] %s5505_s25 }
  0x53   :  { %6201 = sst [smem:[#allocation97_spill]] %s5510_s14 }
  0x54   :  { %s5525_s25 = sld [smem:[%s6138_s0 + %s5252_s22]]  }
  0x55   :  { %6202 = sst [smem:[#allocation98_spill]] %s5515_s21 }
  0x56   :  { %s3650_s14 = sld [smem:[%s6138_s0 + %s5253_s28]]  }
  0x57   :  { %6203 = sst [smem:[#allocation99_spill]] %s5520_s24 }
  0x58   :  { %s5533_s21 = sld [smem:[%s6138_s0 + %s5254_s10]]  }
  0x5a   :  { %6204 = sst [smem:[#allocation100_spill]] %s5525_s25 }
  0x5c   :  { %v98_v0 = vstv %s3650_s14 }
  0x5d   :  { %99 = vst [vmem:[#allocation3] sm:$0x1] %v98_v0 }
  0x5e   :  { %100 = vsyncpa [#allocation5], 0 }
  0x5f   :  { %102 = vsyncpa [#allocation5 + $0x1], 0 }
  0x60   :  { %103 = vsyncpa [#allocation7], 0 }
  0x61   :  { %105 = vsyncpa [#allocation7 + $0x1], 0 }
  0x62   :  { %106 = vsyncpa [#allocation10], 0 }
  0x63   :  { %107 = vsyncpa [#allocation13], 0 }
  0x64   :  { %108 = vsyncpa [#allocation16], 0 }
  0x65   :  { %109 = vsyncpa [#allocation19], 0 }
  0x66   :  { %110 = vsyncpa [#allocation22], 0 }
  0x67   :  { %111 = vsyncpa [#allocation25], 0 }
  0x68   :  { %112 = vsyncpa [#allocation28], 0 }
  0x69   :  { %113 = vsyncpa [#allocation31], 0 }
  0x6a   :  { %114 = vsyncpa [#allocation34], 0 }
  0x6b   :  { %115 = vsyncpa [#allocation37], 0 }
  0x6c   :  { %116 = vsyncpa [#allocation40], 0 }
  0x6d   :  { %117 = vsyncpa [#allocation43], 0  ;;  %s5535_s0 = smov 0   ;;  %s5537_s14 = smov 0  }
  0x6e   :  { %s5539_s15 = smov 0   ;;  %s5541_s16 = smov 0  }
  0x6f LB: > { %s6205_s13 = sld [smem:[#allocation61_spill]]  ;;  %s5255_s18 = smov [#allocation9]   ;;  %s5183_s0 = sphi %s5535_s0, %s6291_s0   ;;  %s5195_s16 = sphi %s5541_s16, %s6294_s16   ;;  %s5191_s15 = sphi %s5539_s15, %s6293_s15   ;;  %s5187_s14 = sphi %s5537_s14, %s6292_s14  }
  0x70   : > { %s1161_s22 = sshll.u32 %s5255_s18, 4  ;;  %s5556_s23 = sadd.s32 4294967295, %s5195_s16   ;;  %s1162_s22 = int_to_ptr.vmem [resolvable:$true] %s1161_s22 }
  0x71   : > { %p3654_p0 = scmp.ge.s32.totalorder %s5195_s16, 1  ;;  %p6146_p1 = scmp.eq.s32.totalorder %s5556_s23, 0 }
  0x72   : > { %p1145_p2 = scmp.lt.s32.totalorder %s5195_s16, 3  ;;  %s5256_s28 = smov [#allocation12]  }
  0x73   : > { %s1183_s1 = sshll.u32 %s5256_s28, 4  ;;  %s5257_s2 = smov [#allocation15]   ;;  %s5567_s1 = int_to_ptr.vmem [resolvable:$true] %s1183_s1 }
  0x74   : > { %p5561_p3 = pnand %p3654_p0, %p1145_p2  ;;  %s1205_s10 = sshll.u32 %s5257_s2, 4  ;;  %s5575_s10 = int_to_ptr.vmem [resolvable:$true] %s1205_s10 }
  0x75   : > { %s5258_s11 = smov [#allocation18]   ;;  %s4400_s28 = scalar_lea.vmem %s1162_s22, 16 }
  0x76   : > { %s6206_s26 = scalar_select %p5561_p3, 1, 0 }
  0x77   : > { %p4041_p4 = pneg %p5561_p3  ;;  %s5577_s18 = sshll.u32 %s5258_s11, 4  ;;  %s1228_s18 = int_to_ptr.vmem [resolvable:$true] %s5577_s18 }
  0x78   : > { %p4401_p7 = scmp.ne.s32.totalorder %s1162_s22, %s4400_s28  ;;  %s4407_s2 = scalar_lea.vmem %s1162_s22, 32 }
  0x79   : > { %p5571_p5 = pnand %p4041_p4, %p6146_p1  ;;  %p4408_p10 = scmp.lt.s32.totalorder %s1162_s22, %s1162_s22 }
  0x7a   : > { %p4409_p11 = scmp.lt.s32.totalorder %s4407_s2, %s4400_s28 }
  0x7b   : > { %s6207_s7 = scalar_select %p5571_p5, 1, 0 }
  0x7c   : > { %p5581_p6 = pneg %p5571_p5  ;;  %p4410_p12 = por %p4409_p11, %p4408_p10 }
  0x7e   : > { %s6208_s25 = scalar_select %p5581_p6, 1, 0 }
  0x7f   : > { %p4403_p8 = pnand %p4401_p7, %p5581_p6 }
  0x81   : > { %p4404_p9 = pneg %p4403_p8 }
  0x83   : > { %p4411_p13 = pnand %p4410_p12, %p4404_p9 }
  0x85   : > { %4414 = shalt.err (!%p4411_p13)
}
  0x86   : > { %4044 = dma.hbm_to_vmem [thread:$0]  (!%p5571_p5), %s5335_s29, 16, %s1162_s22, [#allocation10]  }
  0x87   : > { %s4426_s11 = scalar_lea.vmem %s5567_s1, 16  ;;  %s4433_s24 = scalar_lea.vmem %s5567_s1, 32 }
  0x88   : > { %p4427_p0 = scmp.ne.s32.totalorder %s5567_s1, %s4426_s11  ;;  %p4434_p7 = scmp.lt.s32.totalorder %s5567_s1, %s5567_s1 }
  0x89   : > { %p4435_p8 = scmp.lt.s32.totalorder %s4433_s24, %s4426_s11 }
  0x8a   : > { %p4429_p2 = pnand %p4427_p0, %p5581_p6 }
  0x8b   : > { %p4436_p9 = por %p4435_p8, %p4434_p7 }
  0x8c   : > { %p4430_p4 = pneg %p4429_p2 }
  0x8e   : > { %p4437_p10 = pnand %p4436_p9, %p4430_p4 }
  0x90   : > { %4440 = shalt.err (!%p4437_p10)
}
  0x91   : > { %s6209_s8 = sld [smem:[#allocation66_spill]]  ;;  %s4452_s22 = scalar_lea.vmem %s5575_s10, 16 }
  0x92   : > { %p4453_p11 = scmp.ne.s32.totalorder %s5575_s10, %s4452_s22  ;;  %s4459_s28 = scalar_lea.vmem %s5575_s10, 32 }
  0x93   : > { %p4460_p0 = scmp.lt.s32.totalorder %s5575_s10, %s5575_s10  ;;  %p4461_p2 = scmp.lt.s32.totalorder %s4459_s28, %s4452_s22 }
  0x94   : > { %p4455_p12 = pnand %p4453_p11, %p5581_p6 }
  0x95   : > { %p4462_p4 = por %p4461_p2, %p4460_p0 }
  0x96   : > { %p4456_p13 = pneg %p4455_p12 }
  0x97   : > { %4050 = dma.hbm_to_vmem [thread:$0]  (!%p5571_p5), %s6209_s8, 16, %s5567_s1, [#allocation13]  }
  0x98   : > { %p4463_p7 = pnand %p4462_p4, %p4456_p13 }
  0x9a   : > { %4466 = shalt.err (!%p4463_p7)
}
  0x9b   : > { %s6210_s19 = sld [smem:[#allocation68_spill]]  ;;  %s5259_s24 = smov [#allocation21]  }
  0x9c   : > { %s1252_s1 = sshll.u32 %s5259_s24, 4  ;;  %s4478_s2 = scalar_lea.vmem %s1228_s18, 16  ;;  %s1253_s1 = int_to_ptr.vmem [resolvable:$true] %s1252_s1 }
  0x9d   : > { %p4479_p8 = scmp.ne.s32.totalorder %s1228_s18, %s4478_s2  ;;  %s4485_s11 = scalar_lea.vmem %s1228_s18, 32 }
  0x9e   : > { %p4486_p11 = scmp.lt.s32.totalorder %s1228_s18, %s1228_s18  ;;  %p4487_p12 = scmp.lt.s32.totalorder %s4485_s11, %s4478_s2 }
  0x9f   : > { %p4481_p9 = pnand %p4479_p8, %p5581_p6 }
  0xa0   : > { %p4488_p13 = por %p4487_p12, %p4486_p11 }
  0xa1   : > { %4056 = dma.hbm_to_vmem [thread:$0]  (!%p5571_p5), %s6210_s19, 16, %s5575_s10, [#allocation16]  }
  0xa2   : > { %p4482_p10 = pneg %p4481_p9 }
  0xa4   : > { %p4489_p0 = pnand %p4488_p13, %p4482_p10 }
  0xa6   : > { %4492 = shalt.err (!%p4489_p0)
}
  0xa7   : > { %4062 = dma.hbm_to_vmem [thread:$0]  (!%p5571_p5), %s5365_s30, 16, %s1228_s18, [#allocation19]  }
  0xa8   : > { %s4504_s10 = scalar_lea.vmem %s1253_s1, 16  ;;  %s4511_s22 = scalar_lea.vmem %s1253_s1, 32 }
  0xa9   : > { %p4505_p2 = scmp.ne.s32.totalorder %s1253_s1, %s4504_s10  ;;  %p4512_p8 = scmp.lt.s32.totalorder %s1253_s1, %s1253_s1 }
  0xaa   : > { %p4513_p9 = scmp.lt.s32.totalorder %s4511_s22, %s4504_s10 }
  0xab   : > { %p4507_p4 = pnand %p4505_p2, %p5581_p6 }
  0xac   : > { %p4514_p1 = por %p4513_p9, %p4512_p8 }
  0xad   : > { %p4508_p7 = pneg %p4507_p4 }
  0xaf   : > { %p4515_p3 = pnand %p4514_p1, %p4508_p7 }
  0xb1   : > { %4518 = shalt.err (!%p4515_p3)
}
  0xb2   : > { %s6211_s20 = sld [smem:[#allocation72_spill]]  ;;  %s5260_s28 = smov [#allocation24]  }
  0xb3   : > { %s1274_s24 = sshll.u32 %s5260_s28, 4  ;;  %s5261_s18 = smov [#allocation27]   ;;  %s1275_s24 = int_to_ptr.vmem [resolvable:$true] %s1274_s24 }
  0xb4   : > { %s1296_s2 = sshll.u32 %s5261_s18, 4  ;;  %s4530_s11 = scalar_lea.vmem %s1275_s24, 32  ;;  %s1297_s2 = int_to_ptr.vmem [resolvable:$true] %s1296_s2 }
  0xb5   : > { %p4531_p10 = scmp.ne.s32.totalorder %s1275_s24, %s4530_s11  ;;  %p4538_p13 = scmp.lt.s32.totalorder %s1275_s24, %s1275_s24 }
  0xb6   : > { %p4539_p0 = scmp.lt.s32.totalorder %s4530_s11, %s4530_s11 }
  0xb7   : > { %p4533_p11 = pnand %p4531_p10, %p5581_p6 }
  0xb8   : > { %4068 = dma.hbm_to_vmem [thread:$0]  (!%p5571_p5), %s6211_s20, 16, %s1253_s1, [#allocation22]  }
  0xb9   : > { %p4534_p12 = pneg %p4533_p11  ;;  %p4540_p2 = por %p4539_p0, %p4538_p13 }
  0xbb   : > { %p4541_p1 = pnand %p4540_p2, %p4534_p12 }
  0xbd   : > { %4544 = shalt.err (!%p4541_p1)
}
  0xbe   : > { %s6212_s4 = sld [smem:[#allocation74_spill]]  ;;  %s4556_s1 = scalar_lea.vmem %s1297_s2, 16 }
  0xbf   : > { %p4557_p3 = scmp.ne.s32.totalorder %s1297_s2, %s4556_s1  ;;  %s4563_s10 = scalar_lea.vmem %s1297_s2, 32 }
  0xc0   : > { %p4564_p8 = scmp.lt.s32.totalorder %s1297_s2, %s1297_s2  ;;  %p4565_p9 = scmp.lt.s32.totalorder %s4563_s10, %s4556_s1 }
  0xc1   : > { %p4559_p4 = pnand %p4557_p3, %p5581_p6 }
  0xc2   : > { %p4566_p10 = por %p4565_p9, %p4564_p8 }
  0xc3   : > { %p4560_p7 = pneg %p4559_p4 }
  0xc4   : > { %4074 = dma.hbm_to_vmem [thread:$0]  (!%p5571_p5), %s6212_s4, 32, %s1275_s24, [#allocation25]  }
  0xc5   : > { %p4567_p11 = pnand %p4566_p10, %p4560_p7 }
  0xc7   : > { %4570 = shalt.err (!%p4567_p11)
}
  0xc8   : > { %s6213_s6 = sld [smem:[#allocation76_spill]]  ;;  %s5262_s22 = smov [#allocation30]  }
  0xc9   : > { %s1317_s28 = sshll.u32 %s5262_s22, 4  ;;  %s1318_s28 = int_to_ptr.vmem [resolvable:$true] %s1317_s28 }
  0xca   : > { %s4582_s24 = scalar_lea.vmem %s1318_s28, 256  ;;  %p4590_p2 = scmp.lt.s32.totalorder %s1318_s28, %s1318_s28 }
  0xcb   : > { %p4583_p12 = scmp.ne.s32.totalorder %s1318_s28, %s4582_s24  ;;  %p4591_p1 = scmp.lt.s32.totalorder %s4582_s24, %s4582_s24 }
  0xcd   : > { %p4585_p13 = pnand %p4583_p12, %p5581_p6  ;;  %p4592_p3 = por %p4591_p1, %p4590_p2 }
  0xce   : > { %4080 = dma.hbm_to_vmem [thread:$0]  (!%p5571_p5), %s6213_s6, 16, %s1297_s2, [#allocation28]  }
  0xcf   : > { %p4586_p0 = pneg %p4585_p13 }
  0xd1   : > { %p4593_p4 = pnand %p4592_p3, %p4586_p0 }
  0xd3   : > { %4596 = shalt.err (!%p4593_p4)
}
  0xd4   : > { %s6148_s18 = smov 64   ;;  %s6214_s9 = sld [smem:[#allocation78_spill]] }
  0xd5   : > { %s6150_s11 = smov 4   ;;  %s5265_s2 = smov [#allocation33]  }
  0xd6   : > { %s1341_s1 = sshll.u32 %s5265_s2, 4  ;;  %s5266_s10 = smov [#allocation36]   ;;  %s1342_s1 = int_to_ptr.vmem [resolvable:$true] %s1341_s1 }
  0xd7   : > { %s1366_s22 = sshll.u32 %s5266_s10, 4  ;;  %s4608_s24 = scalar_lea.vmem %s1342_s1, 256  ;;  %s1367_s22 = int_to_ptr.vmem [resolvable:$true] %s1366_s22 }
  0xd8   : > { %p4609_p7 = scmp.ne.s32.totalorder %s1342_s1, %s4608_s24  ;;  %p4616_p10 = scmp.lt.s32.totalorder %s1342_s1, %s1342_s1 }
  0xd9   : > { %p4617_p11 = scmp.lt.s32.totalorder %s4608_s24, %s4608_s24 }
  0xda   : > { %4086 = dma.hbm_to_vmem [thread:$0]  (!%p5571_p5), %s6214_s9, 256, %s1318_s28, [#allocation31], %s6148_s18, %s6148_s18, %s6150_s11  }
  0xdb   : > { %p4611_p8 = pnand %p4609_p7, %p5581_p6  ;;  %p4618_p12 = por %p4617_p11, %p4616_p10 }
  0xdd   : > { %p4612_p9 = pneg %p4611_p8 }
  0xdf   : > { %p4619_p13 = pnand %p4618_p12, %p4612_p9 }
  0xe1   : > { %4622 = shalt.err (!%p4619_p13)
}
  0xe2   : > { %s6215_s5 = sld [smem:[#allocation80_spill]]  ;;  %s4634_s28 = scalar_lea.vmem %s1367_s22, 16 }
  0xe3   : > { %p4635_p0 = scmp.ne.s32.totalorder %s1367_s22, %s4634_s28  ;;  %s4641_s2 = scalar_lea.vmem %s1367_s22, 32 }
  0xe4   : > { %p4642_p3 = scmp.lt.s32.totalorder %s1367_s22, %s1367_s22  ;;  %p4643_p4 = scmp.lt.s32.totalorder %s4641_s2, %s4634_s28 }
  0xe5   : > { %p4637_p2 = pnand %p4635_p0, %p5581_p6 }
  0xe6   : > { %p4644_p7 = por %p4643_p4, %p4642_p3 }
  0xe7   : > { %p4638_p1 = pneg %p4637_p2 }
  0xe8   : > { %4092 = dma.hbm_to_vmem [thread:$0]  (!%p5571_p5), %s6215_s5, 256, %s1342_s1, [#allocation34], %s6148_s18, %s6148_s18, %s6150_s11  }
  0xe9   : > { %p4645_p8 = pnand %p4644_p7, %p4638_p1 }
  0xeb   : > { %4648 = shalt.err (!%p4645_p8)
}
  0xec   : > { %s6216_s17 = sld [smem:[#allocation82_spill]]  ;;  %s5267_s10 = smov [#allocation39]  }
  0xed   : > { %s1387_s24 = sshll.u32 %s5267_s10, 4  ;;  %s5268_s4 = smov [#allocation42]   ;;  %s1388_s24 = int_to_ptr.vmem [resolvable:$true] %s1387_s24 }
  0xee   : > { %s1411_s1 = sshll.u32 %s5268_s4, 4  ;;  %s4660_s18 = scalar_lea.vmem %s1388_s24, 256  ;;  %s1412_s1 = int_to_ptr.vmem [resolvable:$true] %s1411_s1 }
  0xef   : > { %p4661_p9 = scmp.ne.s32.totalorder %s1388_s24, %s4660_s18  ;;  %p4668_p12 = scmp.lt.s32.totalorder %s1388_s24, %s1388_s24 }
  0xf0   : > { %p4669_p13 = scmp.lt.s32.totalorder %s4660_s18, %s4660_s18 }
  0xf1   : > { %p4663_p10 = pnand %p4661_p9, %p5581_p6 }
  0xf2   : > { %4098 = dma.hbm_to_vmem [thread:$0]  (!%p5571_p5), %s6216_s17, 16, %s1367_s22, [#allocation37]  }
  0xf3   : > { %p4664_p11 = pneg %p4663_p10  ;;  %p4670_p0 = por %p4669_p13, %p4668_p12 }
  0xf5   : > { %p4671_p2 = pnand %p4670_p0, %p4664_p11 }
  0xf7   : > { %4674 = shalt.err (!%p4671_p2)
}
  0xf8   : > { %s6217_s22 = smov 64   ;;  %s4686_s4 = scalar_lea.vmem %s1412_s1, 256 }
  0xf9   : > { %4104 = dma.hbm_to_vmem [thread:$0]  (!%p5571_p5), %s5440_s27, 256, %s1388_s24, [#allocation40], %s6217_s22, %s6217_s22, %s6150_s11  }
  0xfa   : > { %p4687_p1 = scmp.ne.s32.totalorder %s1412_s1, %s4686_s4  ;;  %p4694_p7 = scmp.lt.s32.totalorder %s1412_s1, %s1412_s1 }
  0xfb   : > { %p4695_p8 = scmp.lt.s32.totalorder %s4686_s4, %s4686_s4 }
  0xfc   : > { %p4689_p3 = pnand %p4687_p1, %p5581_p6 }
  0xfd   : > { %p4696_p9 = por %p4695_p8, %p4694_p7 }
  0xfe   : > { %p4690_p4 = pneg %p4689_p3 }
 0x100   : > { %p4697_p10 = pnand %p4696_p9, %p4690_p4 }
 0x102   : > { %4700 = shalt.err (!%p4697_p10)
}
 0x103   : > { %s6218_s12 = sld [smem:[#allocation85_spill]]  ;;  %s5671_s18 = sadd.s32 1, %s5195_s16  }
 0x104   : > { %s130_s28 = sadd.s32 1, %s5191_s15  ;;  %s127_s2 = ssub.s32 %s5195_s16, %s5671_s18 }
 0x105   : > { %p137_p11 = scmp.ne.s32.totalorder %s5191_s15, %s5187_s14  ;;  %p128_p12 = scmp.eq.s32.totalorder %s127_s2, 0 }
 0x106   : > { %p138_p13 = scmp.eq.s32.totalorder %s5195_s16, 0  ;;  %p143_p0 = scmp.ne.s32.totalorder %s5187_s14, %s5183_s0 }
 0x107   : > { %p4148_p2 = scmp.lt.s32.totalorder %s5195_s16, 2  ;;  %p6219_p3 = scmp.eq.s32.totalorder %s5556_s23, 0 }
 0x108   : > { %s5683_s10 = scalar_select %p128_p12, %s5191_s15, %s130_s28  }
 0x109   : > { %4110 = dma.hbm_to_vmem [thread:$0]  (!%p5571_p5), %s6218_s12, 256, %s1412_s1, [#allocation43], %s6217_s22, %s6217_s22, %s6150_s11  }
 0x10a   : > { %p139_p1 = por %p138_p13, %p137_p11  ;;  %p5687_p4 = por %p6219_p3, %p143_p0 }
 0x10b   : > { %s5692_s1 = sand.u32 1, %s5191_s15   ;;  %s6151_s4 = sshll.u32 %s5195_s16, 7 }
 0x10c   : > { %s6220_s24 = scalar_select %p5687_p4, 1, 0 }
 0x10d   : > { %s6153_s11 = sshll.u32 %s5692_s1, 3  ;;  %p5696_p7 = pnand %p4148_p2, %p139_p1 }
 0x10e   : > { %s1508_s0 = sand.u32 1, %s5195_s16   ;;  %s5704_s28 = scalar_lea.hbm %s6205_s13, %s6151_s4 }
 0x10f   : > { %s6221_s2 = scalar_select %p5696_p7, 1, 0 }
 0x110   : > { %s1512_s5 = scalar_lea.vmem [#allocation6], %s6153_s11  ;;  %s5708_s8 = scalar_lea.sflag [#allocation7], %s1508_s0 }
 0x111   : > { %s1519_s6 = sshll.u32 %s1512_s5, 4  ;;  %s4701_s9 = scalar_lea.hbm %s5704_s28, 128  ;;  %s1520_s6 = int_to_ptr.vmem [resolvable:$true] %s1519_s6 }
 0x112   : > { %p4702_p8 = scmp.ne.s32.totalorder %s5704_s28, %s4701_s9  ;;  %p5714_p9 = pneg %p5696_p7 }
 0x113   : > { %s4706_s4 = scalar_lea.hbm %s6205_s13, 256  ;;  %p4707_p12 = scmp.lt.s32.totalorder %s5704_s28, %s6205_s13 }
 0x114   : > { %s6222_s12 = scalar_select %p5714_p9, 1, 0 }
 0x115   : > { %p4704_p10 = pnand %p5714_p9, %p4702_p8  ;;  %p4708_p13 = scmp.lt.s32.totalorder %s4706_s4, %s4701_s9 }
 0x117   : > { %p4705_p11 = pneg %p4704_p10  ;;  %p4709_p0 = por %p4708_p13, %p4707_p12 }
 0x119   : > { %p4710_p2 = pnand %p4709_p0, %p4705_p11 }
 0x11b   : > { %4713 = shalt.err (!%p4710_p2)
}
 0x11c   : > { %s4714_s5 = scalar_lea.vmem %s1520_s6, 128  ;;  %s5269_s0 = smov [#allocation6]  }
 0x11d   : > { %p4715_p1 = scmp.ne.s32.totalorder %s1520_s6, %s4714_s5  ;;  %s4719_s11 = sshll.u32 %s5269_s0, 4  ;;  %s4720_s11 = int_to_ptr.vmem [resolvable:$false] %s4719_s11 }
 0x11e   : > { %s4721_s17 = scalar_lea.vmem %s4720_s11, 256  ;;  %p4722_p5 = scmp.lt.s32.totalorder %s1520_s6, %s4720_s11 }
 0x11f   : > { %p4717_p3 = pnand %p4715_p1, %p5714_p9  ;;  %p4723_p6 = scmp.lt.s32.totalorder %s4721_s17, %s4714_s5 }
 0x121   : > { %p4718_p4 = pneg %p4717_p3  ;;  %p4724_p8 = por %p4723_p6, %p4722_p5 }
 0x123   : > { %p4725_p10 = pnand %p4724_p8, %p4718_p4 }
 0x125   : > { %4728 = shalt.err (!%p4725_p10)
}
 0x126   : > { %4120 = dma.hbm_to_vmem [thread:$0]  (!%p5696_p7), %s5704_s28, 128, %s1520_s6, %s5708_s8  }
 0x127   : > { %s5270_s9 = smov [#allocation11]   ;;  %s5271_s13 = smov [#allocation14]  }
 0x128   : > { %s1172_s4 = sshll.u32 %s5270_s9, 4  ;;  %s1194_s19 = sshll.u32 %s5271_s13, 4  ;;  %s1173_s4 = int_to_ptr.vmem [resolvable:$true] %s1172_s4  ;;  %s1195_s19 = int_to_ptr.vmem [resolvable:$true] %s1194_s19 }
 0x129   : > { %s4740_s20 = scalar_lea.vmem %s1173_s4, 16  ;;  %p6223_p12 = scmp.ne.s32.totalorder %s6208_s25, 0 }
 0x12a   : > { %p4741_p11 = scmp.ne.s32.totalorder %s1173_s4, %s4740_s20  ;;  %s4747_s17 = scalar_lea.vmem %s1173_s4, 32 }
 0x12b   : > { %p4748_p5 = scmp.lt.s32.totalorder %s1173_s4, %s1173_s4  ;;  %p4749_p6 = scmp.lt.s32.totalorder %s4747_s17, %s4740_s20 }
 0x12c   : > { %p4743_p13 = pnand %p4741_p11, %p6223_p12 }
 0x12d   : > { %p4750_p4 = por %p4749_p6, %p4748_p5 }
 0x12e   : > { %p4744_p0 = pneg %p4743_p13 }
 0x130   : > { %p4751_p2 = pnand %p4750_p4, %p4744_p0 }
 0x132   : > { %4754 = shalt.err (!%p4751_p2)
}
 0x133   : > { %p6224_p1 = scmp.ne.s32.totalorder %s6207_s7, 0  ;;  %s6225_s3 = sld [smem:[#allocation65_spill]] }
 0x134   : > { %s4766_s6 = scalar_lea.vmem %s1195_s19, 16  ;;  %s4773_s13 = scalar_lea.vmem %s1195_s19, 32 }
 0x135   : > { %p4767_p3 = scmp.ne.s32.totalorder %s1195_s19, %s4766_s6  ;;  %p4774_p11 = scmp.lt.s32.totalorder %s1195_s19, %s1195_s19 }
 0x136   : > { %p4775_p13 = scmp.lt.s32.totalorder %s4773_s13, %s4766_s6 }
 0x137   : > { %p4769_p8 = pnand %p4767_p3, %p6223_p12 }
 0x138   : > { %p4776_p7 = por %p4775_p13, %p4774_p11 }
 0x139   : > { %4047 = dma.hbm_to_vmem [thread:$0]  (!%p6224_p1), %s6225_s3, 16, %s1173_s4, [#allocation10]  }
 0x13a   : > { %p4770_p10 = pneg %p4769_p8 }
 0x13c   : > { %p4777_p9 = pnand %p4776_p7, %p4770_p10 }
 0x13e   : > { %4780 = shalt.err (!%p4777_p9)
}
 0x13f   : > { %s6226_s20 = sld [smem:[#allocation67_spill]]  ;;  %s5272_s11 = smov [#allocation17]  }
 0x140   : > { %s1216_s28 = sshll.u32 %s5272_s11, 4  ;;  %s5273_s5 = smov [#allocation20]   ;;  %s1217_s28 = int_to_ptr.vmem [resolvable:$true] %s1216_s28 }
 0x141   : > { %s1241_s0 = sshll.u32 %s5273_s5, 4  ;;  %s4792_s9 = scalar_lea.vmem %s1217_s28, 16  ;;  %s1242_s0 = int_to_ptr.vmem [resolvable:$true] %s1241_s0 }
 0x142   : > { %p4793_p0 = scmp.ne.s32.totalorder %s1217_s28, %s4792_s9  ;;  %s4799_s4 = scalar_lea.vmem %s1217_s28, 32 }
 0x143   : > { %p4800_p4 = scmp.lt.s32.totalorder %s1217_s28, %s1217_s28  ;;  %p4801_p2 = scmp.lt.s32.totalorder %s4799_s4, %s4792_s9 }
 0x144   : > { %p4795_p5 = pnand %p4793_p0, %p6223_p12 }
 0x145   : > { %4053 = dma.hbm_to_vmem [thread:$0]  (!%p6224_p1), %s6226_s20, 16, %s1195_s19, [#allocation13]  }
 0x146   : > { %p4796_p6 = pneg %p4795_p5  ;;  %p4802_p7 = por %p4801_p2, %p4800_p4 }
 0x148   : > { %p4803_p9 = pnand %p4802_p7, %p4796_p6 }
 0x14a   : > { %4806 = shalt.err (!%p4803_p9)
}
 0x14b   : > { %s6227_s17 = sld [smem:[#allocation69_spill]]  ;;  %s4818_s19 = scalar_lea.vmem %s1242_s0, 16 }
 0x14c   : > { %p4819_p3 = scmp.ne.s32.totalorder %s1242_s0, %s4818_s19  ;;  %s4825_s6 = scalar_lea.vmem %s1242_s0, 32 }
 0x14d   : > { %p4826_p11 = scmp.lt.s32.totalorder %s1242_s0, %s1242_s0  ;;  %p4827_p13 = scmp.lt.s32.totalorder %s4825_s6, %s4818_s19 }
 0x14e   : > { %p4821_p8 = pnand %p4819_p3, %p6223_p12 }
 0x14f   : > { %p4828_p0 = por %p4827_p13, %p4826_p11 }
 0x150   : > { %p4822_p10 = pneg %p4821_p8 }
 0x151   : > { %4059 = dma.hbm_to_vmem [thread:$0]  (!%p6224_p1), %s6227_s17, 16, %s1217_s28, [#allocation16]  }
 0x152   : > { %p4829_p5 = pnand %p4828_p0, %p4822_p10 }
 0x154   : > { %4832 = shalt.err (!%p4829_p5)
}
 0x155   : > { %s6228_s13 = sld [smem:[#allocation71_spill]]  ;;  %s5274_s20 = smov [#allocation23]  }
 0x156   : > { %s1263_s11 = sshll.u32 %s5274_s20, 4  ;;  %s5275_s28 = smov [#allocation26]   ;;  %s1264_s11 = int_to_ptr.vmem [resolvable:$true] %s1263_s11 }
 0x157   : > { %s1285_s5 = sshll.u32 %s5275_s28, 4  ;;  %s4844_s9 = scalar_lea.vmem %s1264_s11, 16  ;;  %s1286_s5 = int_to_ptr.vmem [resolvable:$true] %s1285_s5 }
 0x158   : > { %p4845_p6 = scmp.ne.s32.totalorder %s1264_s11, %s4844_s9  ;;  %s4851_s4 = scalar_lea.vmem %s1264_s11, 32 }
 0x159   : > { %p4852_p7 = scmp.lt.s32.totalorder %s1264_s11, %s1264_s11  ;;  %p4853_p9 = scmp.lt.s32.totalorder %s4851_s4, %s4844_s9 }
 0x15a   : > { %p4847_p4 = pnand %p4845_p6, %p6223_p12 }
 0x15b   : > { %4065 = dma.hbm_to_vmem [thread:$0]  (!%p6224_p1), %s6228_s13, 16, %s1242_s0, [#allocation19]  }
 0x15c   : > { %p4848_p2 = pneg %p4847_p4  ;;  %p4854_p3 = por %p4853_p9, %p4852_p7 }
 0x15e   : > { %p4855_p8 = pnand %p4854_p3, %p4848_p2 }
 0x160   : > { %4858 = shalt.err (!%p4855_p8)
}
 0x161   : > { %s6229_s17 = sld [smem:[#allocation73_spill]]  ;;  %s4870_s0 = scalar_lea.vmem %s1286_s5, 16 }
 0x162   : > { %p4871_p10 = scmp.ne.s32.totalorder %s1286_s5, %s4870_s0  ;;  %s4877_s19 = scalar_lea.vmem %s1286_s5, 32 }
 0x163   : > { %p4878_p0 = scmp.lt.s32.totalorder %s1286_s5, %s1286_s5  ;;  %p4879_p5 = scmp.lt.s32.totalorder %s4877_s19, %s4870_s0 }
 0x164   : > { %p4873_p11 = pnand %p4871_p10, %p6223_p12 }
 0x165   : > { %p4880_p6 = por %p4879_p5, %p4878_p0 }
 0x166   : > { %p4874_p13 = pneg %p4873_p11 }
 0x167   : > { %4071 = dma.hbm_to_vmem [thread:$0]  (!%p6224_p1), %s6229_s17, 16, %s1264_s11, [#allocation22]  }
 0x168   : > { %p4881_p4 = pnand %p4880_p6, %p4874_p13 }
 0x16a   : > { %4884 = shalt.err (!%p4881_p4)
}
 0x16b   : > { %s6230_s6 = sld [smem:[#allocation75_spill]]  ;;  %s5276_s13 = smov [#allocation29]  }
 0x16c   : > { %s1307_s20 = sshll.u32 %s5276_s13, 4  ;;  %s5277_s11 = smov [#allocation32]   ;;  %s1308_s20 = int_to_ptr.vmem [resolvable:$true] %s1307_s20 }
 0x16d   : > { %s1331_s28 = sshll.u32 %s5277_s11, 4  ;;  %s4896_s9 = scalar_lea.vmem %s1308_s20, 16  ;;  %s1332_s28 = int_to_ptr.vmem [resolvable:$true] %s1331_s28 }
 0x16e   : > { %p4897_p2 = scmp.ne.s32.totalorder %s1308_s20, %s4896_s9  ;;  %s4903_s4 = scalar_lea.vmem %s1308_s20, 32 }
 0x16f   : > { %p4904_p3 = scmp.lt.s32.totalorder %s1308_s20, %s1308_s20  ;;  %p4905_p8 = scmp.lt.s32.totalorder %s4903_s4, %s4896_s9 }
 0x170   : > { %p4899_p7 = pnand %p4897_p2, %p6223_p12 }
 0x171   : > { %4077 = dma.hbm_to_vmem [thread:$0]  (!%p6224_p1), %s6230_s6, 16, %s1286_s5, [#allocation25]  }
 0x172   : > { %p4900_p9 = pneg %p4899_p7  ;;  %p4906_p10 = por %p4905_p8, %p4904_p3 }
 0x174   : > { %p4907_p11 = pnand %p4906_p10, %p4900_p9 }
 0x176   : > { %4910 = shalt.err (!%p4907_p11)
}
 0x177   : > { %s6231_s17 = sld [smem:[#allocation77_spill]]  ;;  %s4922_s5 = scalar_lea.vmem %s1332_s28, 16 }
 0x178   : > { %p4923_p13 = scmp.ne.s32.totalorder %s1332_s28, %s4922_s5  ;;  %s4929_s0 = scalar_lea.vmem %s1332_s28, 32 }
 0x179   : > { %p4930_p6 = scmp.lt.s32.totalorder %s1332_s28, %s1332_s28  ;;  %p4931_p4 = scmp.lt.s32.totalorder %s4929_s0, %s4922_s5 }
 0x17a   : > { %p4925_p0 = pnand %p4923_p13, %p6223_p12 }
 0x17b   : > { %p4932_p2 = por %p4931_p4, %p4930_p6 }
 0x17c   : > { %p4926_p5 = pneg %p4925_p0 }
 0x17d   : > { %4083 = dma.hbm_to_vmem [thread:$0]  (!%p6224_p1), %s6231_s17, 16, %s1308_s20, [#allocation28]  }
 0x17e   : > { %p4933_p7 = pnand %p4932_p2, %p4926_p5 }
 0x180   : > { %4936 = shalt.err (!%p4933_p7)
}
 0x181   : > { %s6232_s19 = sld [smem:[#allocation79_spill]]  ;;  %s5278_s6 = smov [#allocation35]  }
 0x182   : > { %s1355_s13 = sshll.u32 %s5278_s6, 4  ;;  %s5279_s20 = smov [#allocation38]   ;;  %s1356_s13 = int_to_ptr.vmem [resolvable:$true] %s1355_s13 }
 0x183   : > { %s1377_s11 = sshll.u32 %s5279_s20, 4  ;;  %s4948_s9 = scalar_lea.vmem %s1356_s13, 16  ;;  %s1378_s11 = int_to_ptr.vmem [resolvable:$true] %s1377_s11 }
 0x184   : > { %p4949_p9 = scmp.ne.s32.totalorder %s1356_s13, %s4948_s9  ;;  %s4955_s4 = scalar_lea.vmem %s1356_s13, 32 }
 0x185   : > { %p4956_p10 = scmp.lt.s32.totalorder %s1356_s13, %s1356_s13  ;;  %p4957_p11 = scmp.lt.s32.totalorder %s4955_s4, %s4948_s9 }
 0x186   : > { %p4951_p3 = pnand %p4949_p9, %p6223_p12 }
 0x187   : > { %4089 = dma.hbm_to_vmem [thread:$0]  (!%p6224_p1), %s6232_s19, 16, %s1332_s28, [#allocation31]  }
 0x188   : > { %p4952_p8 = pneg %p4951_p3  ;;  %p4958_p13 = por %p4957_p11, %p4956_p10 }
 0x18a   : > { %p4959_p0 = pnand %p4958_p13, %p4952_p8 }
 0x18c   : > { %4962 = shalt.err (!%p4959_p0)
}
 0x18d   : > { %s6233_s17 = sld [smem:[#allocation81_spill]]  ;;  %s4974_s28 = scalar_lea.vmem %s1378_s11, 16 }
 0x18e   : > { %p4975_p5 = scmp.ne.s32.totalorder %s1378_s11, %s4974_s28  ;;  %s4981_s5 = scalar_lea.vmem %s1378_s11, 32 }
 0x18f   : > { %p4982_p2 = scmp.lt.s32.totalorder %s1378_s11, %s1378_s11  ;;  %p4983_p7 = scmp.lt.s32.totalorder %s4981_s5, %s4974_s28 }
 0x190   : > { %p4977_p6 = pnand %p4975_p5, %p6223_p12 }
 0x191   : > { %p4984_p9 = por %p4983_p7, %p4982_p2 }
 0x192   : > { %p4978_p4 = pneg %p4977_p6 }
 0x193   : > { %4095 = dma.hbm_to_vmem [thread:$0]  (!%p6224_p1), %s6233_s17, 16, %s1356_s13, [#allocation34]  }
 0x194   : > { %p4985_p3 = pnand %p4984_p9, %p4978_p4 }
 0x196   : > { %4988 = shalt.err (!%p4985_p3)
}
 0x197   : > { %s6234_s0 = sld [smem:[#allocation83_spill]]  ;;  %s5280_s19 = smov [#allocation41]  }
 0x198   : > { %s1401_s6 = sshll.u32 %s5280_s19, 4  ;;  %s5281_s13 = smov [#allocation44]   ;;  %s1402_s6 = int_to_ptr.vmem [resolvable:$true] %s1401_s6 }
 0x199   : > { %s1454_s20 = sshll.u32 %s5281_s13, 4  ;;  %s5000_s9 = scalar_lea.vmem %s1402_s6, 16  ;;  %s1455_s20 = int_to_ptr.vmem [resolvable:$true] %s1454_s20 }
 0x19a   : > { %p5001_p8 = scmp.ne.s32.totalorder %s1402_s6, %s5000_s9  ;;  %s5007_s4 = scalar_lea.vmem %s1402_s6, 32 }
 0x19b   : > { %p5008_p13 = scmp.lt.s32.totalorder %s1402_s6, %s1402_s6  ;;  %p5009_p0 = scmp.lt.s32.totalorder %s5007_s4, %s5000_s9 }
 0x19c   : > { %p5003_p10 = pnand %p5001_p8, %p6223_p12 }
 0x19d   : > { %4101 = dma.hbm_to_vmem [thread:$0]  (!%p6224_p1), %s6234_s0, 16, %s1378_s11, [#allocation37]  }
 0x19e   : > { %p5004_p11 = pneg %p5003_p10  ;;  %p5010_p5 = por %p5009_p0, %p5008_p13 }
 0x1a0   : > { %p5011_p6 = pnand %p5010_p5, %p5004_p11 }
 0x1a2   : > { %5014 = shalt.err (!%p5011_p6)
}
 0x1a3   : > { %s6235_s17 = sld [smem:[#allocation84_spill]]  ;;  %s5026_s11 = scalar_lea.vmem %s1455_s20, 512 }
 0x1a4   : > { %p5027_p4 = scmp.ne.s32.totalorder %s1455_s20, %s5026_s11  ;;  %p5034_p9 = scmp.lt.s32.totalorder %s1455_s20, %s1455_s20 }
 0x1a5   : > { %p5035_p3 = scmp.lt.s32.totalorder %s5026_s11, %s5026_s11 }
 0x1a6   : > { %p5029_p2 = pnand %p5027_p4, %p6223_p12 }
 0x1a7   : > { %p5036_p8 = por %p5035_p3, %p5034_p9 }
 0x1a8   : > { %p5030_p7 = pneg %p5029_p2 }
 0x1a9   : > { %4107 = dma.hbm_to_vmem [thread:$0]  (!%p6224_p1), %s6235_s17, 16, %s1402_s6, [#allocation40]  }
 0x1aa   : > { %p5037_p10 = pnand %p5036_p8, %p5030_p7 }
 0x1ac   : > { %5040 = shalt.err (!%p5037_p10)
}
 0x1ad   : > { %s6236_s28 = smov 4   ;;  %s6237_s5 = sld [smem:[#allocation96_spill]] }
 0x1ae   : > { %s6238_s0 = sld [smem:[#allocation59_spill]]  ;;  %s6240_s25 = sshll.u32 %s5195_s16, 7 }
 0x1af   : > { %s6241_s13 = sshll.u32 %s5692_s1, 3  ;;  %s3684_s4 = sshll.u32 %s5195_s16, 4 }
 0x1b0   : > { %s1487_s7 = scalar_lea.vmem [#allocation4], %s6241_s13  ;;  %s1484_s17 = scalar_lea.sflag [#allocation5], %s5692_s1 }
 0x1b1   : > { %s1494_s9 = sshll.u32 %s1487_s7, 4  ;;  %p6242_p11 = scmp.ne.s32.totalorder %s6222_s12, 0  ;;  %s1495_s9 = int_to_ptr.vmem [resolvable:$true] %s1494_s9 }
 0x1b3   : > { %4113 = dma.hbm_to_vmem [thread:$0]  (!%p6224_p1), %s6237_s5, 512, %s1455_s20, [#allocation43], %s6217_s22, %s6217_s22, %s6236_s28  }
 0x1b4   : > { %s6239_s19 = smov %s6238_s0  ;;  %s5795_s6 = scalar_lea.hbm %s6238_s0, %s6240_s25 }
 0x1b5   : > { %s5041_s11 = scalar_lea.hbm %s5795_s6, 128  ;;  %s5046_s3 = scalar_lea.hbm %s6239_s19, 256 }
 0x1b6   : > { %p5042_p12 = scmp.ne.s32.totalorder %s5795_s6, %s5041_s11  ;;  %p5047_p5 = scmp.lt.s32.totalorder %s5795_s6, %s6239_s19 }
 0x1b7   : > { %p5048_p1 = scmp.lt.s32.totalorder %s5046_s3, %s5041_s11 }
 0x1b8   : > { %p5044_p13 = pnand %p5042_p12, %p6242_p11 }
 0x1b9   : > { %p5049_p6 = por %p5048_p1, %p5047_p5 }
 0x1ba   : > { %p5045_p0 = pneg %p5044_p13 }
 0x1bc   : > { %p5050_p4 = pnand %p5049_p6, %p5045_p0 }
 0x1be   : > { %5053 = shalt.err (!%p5050_p4)
}
 0x1bf   : > { %s5054_s22 = scalar_lea.vmem %s1495_s9, 128  ;;  %s5282_s20 = smov [#allocation4]  }
 0x1c0   : > { %p5055_p2 = scmp.ne.s32.totalorder %s1495_s9, %s5054_s22  ;;  %s5059_s16 = sshll.u32 %s5282_s20, 4  ;;  %s5060_s16 = int_to_ptr.vmem [resolvable:$false] %s5059_s16 }
 0x1c1   : > { %s5061_s28 = scalar_lea.vmem %s5060_s16, 256  ;;  %p5062_p3 = scmp.lt.s32.totalorder %s1495_s9, %s5060_s16 }
 0x1c2   : > { %p5057_p7 = pnand %p5055_p2, %p6242_p11  ;;  %p5063_p8 = scmp.lt.s32.totalorder %s5061_s28, %s5054_s22 }
 0x1c4   : > { %p5058_p9 = pneg %p5057_p7  ;;  %p5064_p10 = por %p5063_p8, %p5062_p3 }
 0x1c6   : > { %p5065_p12 = pnand %p5064_p10, %p5058_p9 }
 0x1c8   : > { %5068 = shalt.err (!%p5065_p12)
}
 0x1c9   : > { %p6243_p13 = scmp.ne.s32.totalorder %s6221_s2, 0  ;;  %s6244_s3 = sld [smem:[#allocation63_spill]] }
 0x1ca   : > { %s1536_s0 = scalar_lea.vmem [#allocation8], %s5692_s1 }
 0x1cb   : > { %4117 = dma.hbm_to_vmem [thread:$0]  (!%p6243_p13), %s5795_s6, 128, %s1495_s9, %s1484_s17  }
 0x1cc   : > { %s1543_s25 = sshll.u32 %s1536_s0, 4  ;;  %s1544_s25 = int_to_ptr.vmem [resolvable:$true] %s1543_s25 }
 0x1cf   : > { %s1541_s5 = scalar_lea.hbm %s6244_s3, %s3684_s4  ;;  %s5074_s7 = scalar_lea.hbm %s6244_s3, 32 }
 0x1d0   : > { %s5069_s13 = scalar_lea.hbm %s1541_s5, 16  ;;  %p5075_p6 = scmp.lt.s32.totalorder %s1541_s5, %s6244_s3 }
 0x1d1   : > { %p5070_p0 = scmp.ne.s32.totalorder %s1541_s5, %s5069_s13  ;;  %p5076_p4 = scmp.lt.s32.totalorder %s5074_s7, %s5069_s13 }
 0x1d3   : > { %p5072_p5 = pnand %p5070_p0, %p6242_p11  ;;  %p5077_p2 = por %p5076_p4, %p5075_p6 }
 0x1d5   : > { %p5073_p1 = pneg %p5072_p5 }
 0x1d7   : > { %p5078_p7 = pnand %p5077_p2, %p5073_p1 }
 0x1d9   : > { %5081 = shalt.err (!%p5078_p7)
}
 0x1da   : > { %s5082_s11 = scalar_lea.vmem %s1544_s25, 16  ;;  %s5283_s1 = smov [#allocation8]  }
 0x1db   : > { %p5083_p9 = scmp.ne.s32.totalorder %s1544_s25, %s5082_s11  ;;  %s5087_s6 = sshll.u32 %s5283_s1, 4  ;;  %s5088_s6 = int_to_ptr.vmem [resolvable:$false] %s5087_s6 }
 0x1dc   : > { %s5089_s9 = scalar_lea.vmem %s5088_s6, 32  ;;  %p5090_p10 = scmp.lt.s32.totalorder %s1544_s25, %s5088_s6 }
 0x1dd   : > { %p5085_p3 = pnand %p5083_p9, %p6242_p11  ;;  %p5091_p12 = scmp.lt.s32.totalorder %s5089_s9, %s5082_s11 }
 0x1df   : > { %p5086_p8 = pneg %p5085_p3  ;;  %p5092_p0 = por %p5091_p12, %p5090_p10 }
 0x1e1   : > { %p5093_p5 = pnand %p5092_p0, %p5086_p8 }
 0x1e3   : > { %5096 = shalt.err (!%p5093_p5)
}
 0x1e4   : > { %4123 = dma.hbm_to_vmem [thread:$0]  (!%p6243_p13), %s1541_s5, 16, %s1544_s25, %s5708_s8  }
 0x1e5   : > { %p6245_p1 = scmp.ne.s32.totalorder %s6206_s26, 0 }
 0x1e6   : > { %s5827_s12 = sand.u32 (!%p6245_p1), 1, %s5187_s14   ;;  %p6246_p11 = scmp.ne.s32.totalorder (!%p6245_p1), %s6220_s24, 0 }
 0x1e7   : > { %1552 = sbr.rel (%p6245_p1) target bundleno = 5475 (0x1563), region = 204  ;;  %s3686_s4 = sshll.u32 (!%p6245_p1), %s5827_s12, 3 }
 0x1e8   : > { %s1555_s17 = scalar_lea.sflag (!%p6245_p1), [#allocation5], %s5827_s12  ;;  %s5831_s22 = scalar_lea.vmem (!%p6245_p1), [#allocation4], %s3686_s4 }
 0x1ec   : > { %5126 = dma.done.wait (%p6246_p11), %s1555_s17, 128  }
 0x1ed   : > { %5128 = vsyncadd (%p6246_p11), %s1555_s17, 4294967168  ;;  %s1563_s8 = sand.u32 1, %s5556_s23   ;;  %s5838_s2 = scalar_lea.vmem [#allocation6], %s3686_s4 }
 0x1ee   : > { %s1564_s26 = scalar_lea.sflag [#allocation7], %s1563_s8 }
 0x1ef   : > { %5130 = dma.done.wait (%p6246_p11), %s1564_s26, 144  }
 0x1f0   : > { %5132 = vsyncadd (%p6246_p11), %s1564_s26, 4294967152  ;;  %s1575_s20 = scalar_lea.vmem [#allocation8], %s5827_s12  ;;  %p6247_p13 = scmp.eq.s32.totalorder %s5556_s23, 0 }
 0x1f2   : > { %5134 = dma.done.wait (%p6247_p13), [#allocation10], 32   ;;  %p6248_p6 = pmov %p6247_p13 }
 0x1f4   : > { %5136 = vsyncadd (%p6248_p6), [#allocation10], 4294967264  ;;  %p6249_p4 = pmov %p6248_p6 }
 0x1f6   : > { %5138 = dma.done.wait (%p6249_p4), [#allocation13], 32   ;;  %p6250_p2 = pmov %p6249_p4 }
 0x1f8   : > { %5140 = vsyncadd (%p6250_p2), [#allocation13], 4294967264  ;;  %p6251_p7 = pmov %p6250_p2 }
 0x1f9   : > { %p6252_p9 = pmov %p6250_p2 }
 0x1fa   : > { %5142 = dma.done.wait (%p6251_p7), [#allocation16], 32  }
 0x1fb   : > { %5144 = vsyncadd (%p6252_p9), [#allocation16], 4294967264  ;;  %p6253_p3 = pmov %p6250_p2 }
 0x1fc   : > { %p6254_p8 = pmov %p6250_p2 }
 0x1fd   : > { %5146 = dma.done.wait (%p6253_p3), [#allocation19], 32  }
 0x1fe   : > { %5148 = vsyncadd (%p6254_p8), [#allocation19], 4294967264  ;;  %p6255_p10 = pmov %p6250_p2 }
 0x1ff   : > { %p6256_p12 = pmov %p6250_p2 }
 0x200   : > { %5150 = dma.done.wait (%p6255_p10), [#allocation22], 32  }
 0x201   : > { %5152 = vsyncadd (%p6256_p12), [#allocation22], 4294967264  ;;  %p6257_p0 = pmov %p6250_p2 }
 0x203   : > { %5154 = dma.done.wait (%p6257_p0), [#allocation25], 48   ;;  %p6258_p5 = pmov %p6257_p0 }
 0x204   : > { %p6259_p1 = pmov %p6257_p0 }
 0x205   : > { %5156 = vsyncadd (%p6258_p5), [#allocation25], 4294967248 }
 0x206   : > { %5158 = dma.done.wait (%p6259_p1), [#allocation28], 32   ;;  %p6260_p11 = pmov %p6257_p0 }
 0x207   : > { %p6261_p13 = pmov %p6257_p0 }
 0x208   : > { %5160 = vsyncadd (%p6260_p11), [#allocation28], 4294967264 }
 0x209   : > { %5162 = dma.done.wait (%p6261_p13), [#allocation31], 272   ;;  %p6262_p6 = pmov %p6257_p0 }
 0x20a   : > { %p6263_p4 = pmov %p6257_p0 }
 0x20b   : > { %5164 = vsyncadd (%p6262_p6), [#allocation31], 4294967024 }
 0x20c   : > { %5166 = dma.done.wait (%p6263_p4), [#allocation34], 272   ;;  %p6264_p2 = pmov %p6257_p0 }
 0x20d   : > { %p6265_p7 = pmov %p6257_p0 }
 0x20e   : > { %5168 = vsyncadd (%p6264_p2), [#allocation34], 4294967024 }
 0x20f   : > { %5170 = dma.done.wait (%p6265_p7), [#allocation37], 32   ;;  %p6266_p9 = pmov %p6257_p0 }
 0x210   : > { %p6267_p3 = pmov %p6257_p0 }
 0x211   : > { %5172 = vsyncadd (%p6266_p9), [#allocation37], 4294967264 }
 0x212   : > { %5174 = dma.done.wait (%p6267_p3), [#allocation40], 272   ;;  %p6268_p8 = pmov %p6257_p0 }
 0x213   : > { %p6269_p10 = pmov %p6257_p0 }
 0x214   : > { %5176 = vsyncadd (%p6268_p8), [#allocation40], 4294967024 }
 0x215   : > { %5178 = dma.done.wait (%p6269_p10), [#allocation43], 768   ;;  %p6270_p12 = pmov %p6257_p0 }
 0x216   : > { %s6271_s24 = sld [smem:[#allocation60_spill]]  ;;  %p1795_p0 = scmp.lt.s32.totalorder %s5556_s23, 1  ;;  %v5284_v1 = vmov 0   ;;  %v5285_v2 = vmov 0.0   ;;  %vm5286_vm0 = vmmov 0   ;;  %v1807_v15 = vld [vmem:[%s5831_s22] sm:$0xff] }
 0x217   : > { %5180 = vsyncadd (%p6270_p12), [#allocation43], 4294966528  ;;  %s6272_s16 = sld [smem:[#allocation90_spill]]  ;;  %4314 = vset.pattern.permute.xlu0 %v5284_v1  ;;  %3835 = vmatprep.subr.bf16.mxu0 %v5285_v2  ;;  %vm1842_vm1 = vcmask 392192   ;;  %v1817_v16 = vpack.c.bf16 %v1807_v15, %v1807_v15  ;;  %v3721_v17 = vld [vmem:[#allocation14] ss:$0 sm:$0xff] }
 0x218   : > { %s6296_s23 = smov (!%p1795_p0, %s5556_s23), 1  ;;  %3841 = vmatprep.mubr.msk.bf16.mxu0 %vm5286_vm0, %v5285_v2  ;;  %3845 = vmatprep.subr.bf16.mxu1 %v5285_v2  ;;  %s6274_s5 = sld [smem:[#allocation64_spill]]  ;;  %v3722_v19 = vld [vmem:[#allocation15] ss:$0 sm:$0xff]  ;;  %vm1939_vm2 = vcmask 31744   ;;  %vm1886_vm3 = vcmask 228352  }
 0x219   : > { %3851 = vmatprep.mubr.msk.bf16.mxu1 %vm5286_vm0, %v5285_v2  ;;  %4315 = vset.pattern.permute.xlu1 %v5284_v1  ;;  %s3712_s0 = sshll.u32 %s6296_s23, 3  ;;  %s1805_s25 = scalar_lea.vmem %s5533_s21, %s6296_s23  ;;  %v3714_v23 = vld [vmem:[#allocation9] ss:$0 sm:$0xff]  ;;  %v4320_v40 = vld [vmem:[#allocation30 + $0x8] sm:$0xff]   ;;  %v3724_v48 = vld [vmem:[#allocation18] ss:$0 sm:$0xff] }
 0x21a   : > { %v4321_v44 = vld [vmem:[#allocation30] sm:$0xff]   ;;  %v3723_v46 = vld [vmem:[#allocation17] ss:$0 sm:$0xff]  ;;  %s5287_s7 = smov 28   ;;  %s6275_s11 = sld [smem:[#allocation70_spill]]  ;;  %vm2169_vm4 = vcmask 261120  }
 0x21b   : > { %v3719_v56 = vld [vmem:[#allocation11] ss:$0 sm:$0xff]  ;;  %v3720_v58 = vld [vmem:[#allocation12] ss:$0 sm:$0xff]  ;;  %s5288_s1 = smov 112   ;;  %s5289_s6 = smov 96  }
 0x21c   : > { %s1798_s13 = scalar_lea.vmem %s6271_s24, %s3712_s0  ;;  %vm2046_vm5 = vcmask 130048   ;;  %vm2327_vm6 = vcmask 64512   ;;  %s5290_s9 = smov 64   ;;  %vm2357_vm7 = vcmask 1043456   ;;  %vm2831_vm8 = vcmask 523264  }
 0x21d   : > { %s6273_s28 = smov %s6272_s16  ;;  %v5912_v3 = vld [vmem:[%s6272_s16] sm:$0xff]  ;;  %s6276_s12 = sld [smem:[#allocation62_spill]] }
 0x21e   : > { %v5915_v4 = vld [vmem:[%s6273_s28 + $0x8] sm:$0xff]  ;;  %v5918_v5 = vld [vmem:[%s6273_s28 + $0x10] sm:$0xff]  ;;  %v5921_v6 = vld [vmem:[%s6273_s28 + $0x18] sm:$0xff]  ;;  %s6277_s17 = sld [smem:[#allocation86_spill]]  ;;  %s5292_s22 = smov 16  }
 0x21f   : > { %v5924_v7 = vld [vmem:[%s6273_s28 + $0x20] sm:$0xff]  ;;  %v5927_v8 = vld [vmem:[%s6273_s28 + $0x28] sm:$0xff]  ;;  %v5930_v9 = vld [vmem:[%s6273_s28 + $0x30] sm:$0xff]  ;;  %s6278_s8 = sld [smem:[#allocation89_spill]]  ;;  %s5293_s26 = smov 32  }
 0x220   : > { %v5933_v10 = vld [vmem:[%s6273_s28 + $0x38] sm:$0xff]  ;;  %v1915_v11 = vld [vmem:[%s1798_s13] sm:$0xff]  ;;  %v4317_v12 = vld [vmem:[%s6274_s5 + $0x10] sm:$0xff]   ;;  %s6281_s24 = sld [smem:[#allocation91_spill]]  ;;  %s6058_s16 = smov 0  }
 0x221   : > { %1922 = vperm.xlu0 %4314, %v1915_v11   ;;  %3836 = vmatpush3.bf16.msra.mxu0 %v4317_v12  ;;  %v4318_v13 = vld [vmem:[%s6274_s5 + $0x8] sm:$0xff]   ;;  %v4319_v14 = vld [vmem:[%s6274_s5] sm:$0xff]   ;;  %v4322_v63 = vld [vmem:[%s6275_s11 + $0x10] sm:$0xff]  }
 0x222   : > { %3837 = vmatprep.subr.bf16.mxu0 %v5285_v2  ;;  %3846 = vmatpush3.bf16.msra.mxu1 %v4322_v63  ;;  %v4323_v0 = vld [vmem:[%s6275_s11 + $0x8] sm:$0xff]   ;;  %v4324_v11 = vld [vmem:[%s6275_s11] sm:$0xff]  }
 0x223   : > { %3847 = vmatprep.subr.bf16.mxu1 %v5285_v2  ;;  %v1968_v12 = vld [vmem:[%s5838_s2] sm:$0xff]  ;;  %s1802_s4 = scalar_lea.vmem %s6276_s12, %s3712_s0  ;;  %s6279_s2 = sld [smem:[#allocation87_spill]] }
 0x225   : > { %3838 = vmatpush3.bf16.msra.mxu0 %v4318_v13  ;;  %v1978_v13 = vpack.c.bf16 %v1968_v12, %v1968_v12 }
 0x226   : > { %3839 = vmatprep.subr.bf16.mxu0 %v5285_v2  ;;  %3848 = vmatpush3.bf16.msra.mxu1 %v4323_v0 }
 0x227   : > { %3849 = vmatprep.subr.bf16.mxu1 %v5285_v2 }
 0x229   : > { %3840 = vmatpush3.bf16.msra.mxu0 %v4319_v14  ;;  %v3735_v14 = vld [vmem:[#allocation32] ss:$0 sm:$0xff] }
 0x22a   : > { %3855 = vmatprep.subr.bf16.mxu0 %v5285_v2  ;;  %3850 = vmatpush3.bf16.msra.mxu1 %v4324_v11 }
 0x22b   : > { %3863 = vmatprep.subr.bf16.mxu1 %v5285_v2 }
 0x22c   : > { %3842 = vmatmul.mubr.msk.bf16.vlgmr.msra.gmra.mxu0 %vm1842_vm1, %v1817_v16 }
 0x22d   : > { %3859 = vmatprep.mubr.msk.bf16.mxu0 %vm5286_vm0, %v5285_v2  ;;  %3856 = vmatpush3.bf16.msra.mxu0 %v4320_v40 }
 0x22e   : > { %3857 = vmatprep.subr.bf16.mxu0 %v5285_v2  ;;  %3852 = vmatmul.mubr.msk.bf16.vlgmr.msra.gmra.mxu1 %vm1842_vm1, %v1978_v13 }
 0x22f   : > { %3865 = vmatprep.mubr.msk.bf16.mxu1 %vm5286_vm0, %v5285_v2 }
 0x231   : > { %3858 = vmatpush3.bf16.msra.mxu0 %v4321_v44 }
 0x232   : > { %3869 = vmatprep.subr.bf16.mxu0 %v5285_v2 }
 0x29c   : > { %v1923_v18 = vpop.permute.xlu0 %1922 }
 0x29d   : > { %v1931_v20 = vmul.f32 %v3721_v17, %v1923_v18 }
 0x29f   : > { %v1938_v21 = vadd.f32 %v3722_v19, %v1931_v20 }
 0x2a1   : > { %v1940_v22 = vsel %vm1939_vm2, %v1938_v21, 0.0 }
 0x2a2   : > { %1941 = vadd.xlane.f32.xlu0 %v1940_v22 }
 0x2ec   : > { %v1880_v24 = vpop.f32.mrf.mxu0 }
 0x2ed   : > { %v1881_v25 = vadd.f32 %v3714_v23, %v1880_v24 }
 0x2ee   : > { %v3843_v26 = vpop.f32.mrf.mxu0 }
 0x2ef   : > { %v1887_v27 = vsel %vm1886_vm3, %v1881_v25, 0.0 }
 0x2f0   : > { %1888 = vadd.xlane.f32.xlu1 %v1887_v27  ;;  %v1883_v28 = vpop.f32.mrf.mxu0 }
 0x2f2   : > { %v3844_v29 = vpop.f32.mrf.mxu0 }
 0x32b   : > { %v1942_v30 = vpop.xlane.xlu0 %1941 }
 0x32c   : > { %v1944_v31 = vmul.f32 0.25, %v1942_v30 }
 0x32e   : > { %v1945_v32 = vsub.f32 %v1938_v21, %v1944_v31 }
 0x330   : > { %v1946_v33 = vmul.f32 %v1945_v32, %v1945_v32 }
 0x332   : > { %v1947_v34 = vsel %vm1939_vm2, %v1946_v33, 0.0 }
 0x333   : > { %1948 = vadd.xlane.f32.xlu1 %v1947_v34 }
 0x379   : > { %v1889_v35 = vpop.xlane.xlu1 %1888 }
 0x37a   : > { %v1891_v36 = vmul.f32 0.035714287, %v1889_v35 }
 0x37c   : > { %v1892_v37 = vsub.f32 %v1881_v25, %v1891_v36  ;;  %v5974_v25 = vpop.f32.mrf.mxu1 }
 0x37e   : > { %v1893_v38 = vmul.f32 %v1892_v37, %v1892_v37  ;;  %v3853_v26 = vpop.f32.mrf.mxu1 }
 0x380   : > { %v1894_v39 = vsel %vm1886_vm3, %v1893_v38, 0.0  ;;  %v2043_v27 = vpop.f32.mrf.mxu1 }
 0x381   : > { %1895 = vadd.xlane.f32.xlu1 %v1894_v39 }
 0x382   : > { %v3854_v28 = vpop.f32.mrf.mxu1 }
 0x3bc   : > { %v1949_v41 = vpop.xlane.xlu1 %1948 }
 0x3bd   : > { %v1950_v42 = vmul.f32 0.25, %v1949_v41 }
 0x3bf   : > { %v1951_v43 = vadd.f32 1e-05, %v1950_v42 }
 0x3c1   : > { %4343 = vrsqrt.f32 %v1951_v43 }
 0x3ce   : > { %v4344_v45 = vpop.eup %4343 }
 0x3cf   : > { %v1953_v47 = vmul.f32 %v4344_v45, %v1945_v32  ;;  %v3741_v32 = vld [vmem:[%s1575_s20] ss:$0 sm:$0xff]  ;;  %s6280_s20 = sld [smem:[#allocation88_spill]] }
 0x3d1   : > { %v1960_v49 = vmul.f32 %v3723_v46, %v1953_v47 }
 0x3d3   : > { %v1967_v50 = vadd.f32 %v3724_v48, %v1960_v49 }
 0x3d5   : > { %2135 = vrot.lane.b32.xlu1 %v1967_v50, %s5287_s7 }
 0x40a   : > { %v1896_v51 = vpop.xlane.xlu1 %1895 }
 0x40b   : > { %v1897_v52 = vmul.f32 0.035714287, %v1896_v51 }
 0x40d   : > { %v1898_v53 = vadd.f32 1e-05, %v1897_v52 }
 0x40f   : > { %4345 = vrsqrt.f32 %v1898_v53 }
 0x41c   : > { %v4346_v54 = vpop.eup %4345 }
 0x41d   : > { %v1900_v55 = vmul.f32 %v4346_v54, %v1892_v37 }
 0x41f   : > { %v1907_v57 = vmul.f32 %v3719_v56, %v1900_v55 }
 0x421   : > { %v1914_v59 = vadd.f32 %v3720_v58, %v1907_v57 }
 0x447   : > { %v2136_v60 = vpop.permute.xlu1 %2135 }
 0x448   : > { %v5952_v61 = vsel %vm1886_vm3, %v1914_v59, %v2136_v60 }
 0x449   : > { %v2145_v62 = vpack.c.bf16 %v5952_v61, %v5952_v61 }
 0x44b   : > { %3860 = vmatmul.mubr.msk.bf16.vlgmr.msra.gmra.mxu0 %vm2169_vm4, %v2145_v62 }
 0x44c   : > { %3871 = vmatprep.mubr.msk.bf16.mxu0 %vm5286_vm0, %v5285_v2 }
 0x50b   : > { %v2207_v15 = vpop.f32.mrf.mxu0 }
 0x50c   : > { %v2208_v16 = vadd.f32 %v3735_v14, %v2207_v15  ;;  %v4325_v15 = vld [vmem:[#allocation33] sm:$0xff]  }
 0x50d   : > { %v3861_v17 = vpop.f32.mrf.mxu0 }
 0x50e   : > { %2214 = vrot.lane.b32.xlu1 %v2208_v16, %s5288_s1  ;;  %v2217_v19 = vpack.c.bf16 %v2208_v16, %v2208_v16  ;;  %v4326_v16 = vld [vmem:[#allocation33 + $0x8] sm:$0xff]  }
 0x50f   : > { %v2210_v18 = vpop.f32.mrf.mxu0 }
 0x511   : > { %v3862_v20 = vpop.f32.mrf.mxu0 }
 0x512   : > { %2220 = vrot.lane.b32.xlu1 %v2217_v19, %s5289_s6 }
 0x580   : > { %v2215_v21 = vpop.permute.xlu1 %2214 }
 0x581   : > { %v2218_v22 = vpack.c.bf16 %v2215_v21, %v2215_v21 }
 0x583   : > { %2269 = vrot.lane.b32.xlu0 %v2218_v22, %s5289_s6 }
 0x584   : > { %v2221_v23 = vpop.permute.xlu1 %2220 }
 0x585   : > { %v2226_v24 = vsel %vm2046_vm5, %v2221_v23, 0 }
 0x586   : > { %3864 = vmatpush3.bf16.xpose.msra.mxu1 %v2226_v24 }
 0x587   : > { %3875 = vmatprep.subr.bf16.mxu1 %v5285_v2 }
 0x58d   : > { %3866 = vmatmul.mubr.msk.bf16.vlgmr.msra.gmra.mxu1 %vm2046_vm5, %v2217_v19 }
 0x58e   : > { %3877 = vmatprep.mubr.msk.bf16.mxu1 %vm5286_vm0, %v5285_v2 }
 0x5f5   : > { %v2270_v29 = vpop.permute.xlu0 %2269 }
 0x5f6   : > { %v2275_v30 = vsel %vm2046_vm5, %v2270_v29, 0 }
 0x5f7   : > { %3870 = vmatpush3.bf16.xpose.msra.mxu0 %v2275_v30 }
 0x5f8   : > { %3881 = vmatprep.subr.bf16.mxu0 %v5285_v2 }
 0x5fe   : > { %3872 = vmatmul.mubr.msk.bf16.vlgmr.msra.gmra.mxu0 %vm2046_vm5, %v2218_v22 }
 0x5ff   : > { %3883 = vmatprep.mubr.msk.bf16.mxu0 %vm5286_vm0, %v5285_v2 }
 0x64d   : > { %v2262_v31 = vpop.f32.mrf.mxu1 }
 0x64e   : > { %v2317_v33 = vmul.f32 0.25, %v2262_v31 }
 0x64f   : > { %v3867_v34 = vpop.f32.mrf.mxu1 }
 0x650   : > { %v2325_v35 = vadd.f32 %v3741_v32, %v2317_v33  ;;  %v3748_v33 = vld [vmem:[#allocation35] ss:$0 sm:$0xff] }
 0x651   : > { %v2265_v36 = vpop.f32.mrf.mxu1 }
 0x652   : > { %v2328_v37 = vsel %vm2327_vm6, %v2325_v35, -inf }
 0x653   : > { %2329 = vmax.xlane.f32.xlu1 %v2328_v37  ;;  %v3868_v38 = vpop.f32.mrf.mxu1 }
 0x6be   : > { %v2311_v39 = vpop.f32.mrf.mxu0 }
 0x6bf   : > { %v2318_v40 = vmul.f32 0.25, %v2311_v39 }
 0x6c0   : > { %v3873_v41 = vpop.f32.mrf.mxu0 }
 0x6c1   : > { %v2326_v42 = vadd.f32 %v3741_v32, %v2318_v40  ;;  %v5291_v41 = vmov 1  }
 0x6c2   : > { %v2314_v43 = vpop.f32.mrf.mxu0  ;;  %4316 = vset.pattern.permute.xlu0 %v5291_v41 }
 0x6c3   : > { %v2331_v44 = vsel %vm2327_vm6, %v2326_v42, -inf }
 0x6c4   : > { %2332 = vmax.xlane.f32.xlu0 %v2331_v44  ;;  %v3874_v45 = vpop.f32.mrf.mxu0 }
 0x6da   : > { %2401 = vrot.lane.b32.xlu0 %v2218_v22, %s5290_s9 }
 0x6dc   : > { %v2330_v46 = vpop.xlane.xlu1 %2329 }
 0x6dd   : > { %v2334_v47 = vsub.f32 %v2325_v35, %v2330_v46 }
 0x6df   : > { %v2336_v48 = vmul.f32 1.442695, %v2334_v47 }
 0x6e1   : > { %4347 = vpow2.f32 %v2336_v48  ;;  %v4327_v48 = vld [vmem:[#allocation39 + $0x8] sm:$0xff]  }
 0x6ee   : > { %v4348_v49 = vpop.eup %4347 }
 0x6ef   : > { %v2340_v50 = vsel %vm2327_vm6, %v4348_v49, 0.0 }
 0x6f0   : > { %2341 = vadd.xlane.f32.xlu1 %v2340_v50 }
 0x74d   : > { %v2333_v51 = vpop.xlane.xlu0 %2332 }
 0x74e   : > { %v2335_v52 = vsub.f32 %v2326_v42, %v2333_v51  ;;  %v2075_v42 = vld [vmem:[%s1802_s4] sm:$0xff] }
 0x750   : > { %v2338_v53 = vmul.f32 1.442695, %v2335_v52  ;;  %v2085_v52 = vlaneseq }
 0x751   : > { %v2402_v54 = vpop.permute.xlu0 %2401 }
 0x752   : > { %4349 = vpow2.f32 %v2338_v53  ;;  %v2407_v55 = vsel %vm2357_vm7, %v2402_v54, 0  ;;  %v6017_v53 = vshrl.u32 %v2085_v52, 7 }
 0x753   : > { %3882 = vmatpush3.bf16.msra.mxu0 %v2407_v55 }
 0x754   : > { %3893 = vmatprep.subr.bf16.mxu0 %v5285_v2  ;;  %v2087_v54 = vsub.s32 0, %v6017_v53 }
 0x75f   : > { %v4350_v56 = vpop.eup %4349 }
 0x760   : > { %v2343_v57 = vsel %vm2327_vm6, %v4350_v56, 0.0 }
 0x761   : > { %2344 = vadd.xlane.f32.xlu1 %v2343_v57 }
 0x772   : > { %2352 = vrot.lane.b32.xlu1 %v2217_v19, %s5290_s9 }
 0x779   : > { %v2342_v58 = vpop.xlane.xlu1 %2341 }
 0x77a   : > { %4351 = vrcp.f32 %v2342_v58  ;;  %v2096_v58 = vsub.s32 1, %v6017_v53 }
 0x787   : > { %v4352_v59 = vpop.eup %4351 }
 0x788   : > { %v2348_v62 = vmul.f32 %v4352_v59, %v4348_v49  ;;  %v3725_v49 = vld [vmem:[#allocation20] ss:$0 sm:$0xff] }
 0x789   : > { %v6013_v50 = vadd.f32 %v3725_v49, %v5974_v25 }
 0x78a   : > { %v2350_v11 = vpack.c.bf16 %v2348_v62, %v2348_v62 }
 0x78b   : > { %v2047_v51 = vsel %vm2046_vm5, %v6013_v50, 0.0 }
 0x7ea   : > { %v2345_v60 = vpop.xlane.xlu1 %2344 }
 0x7eb   : > { %4353 = vrcp.f32 %v2345_v60 }
 0x7ee   : > { %v2353_v63 = vpop.permute.xlu1 %2352 }
 0x7ef   : > { %v2359_v0 = vsel %vm2357_vm7, %v2353_v63, 0 }
 0x7f0   : > { %3876 = vmatpush3.bf16.msra.mxu1 %v2359_v0 }
 0x7f1   : > { %3887 = vmatprep.subr.bf16.mxu1 %v5285_v2 }
 0x7f3   : > { %3878 = vmatmul.mubr.msk.bf16.vlgmr.msra.gmra.mxu1 %vm2327_vm6, %v2350_v11 }
 0x7f4   : > { %3889 = vmatprep.mubr.msk.bf16.mxu1 %vm5286_vm0, %v5285_v2  ;;  %3888 = vmatpush3.bf16.msra.mxu1 %v4326_v16 }
 0x7f5   : > { %3899 = vmatprep.subr.bf16.mxu1 %v5285_v2 }
 0x7f8   : > { %v4354_v12 = vpop.eup %4353 }
 0x7f9   : > { %v2349_v13 = vmul.f32 %v4354_v12, %v4350_v56  ;;  %v2076_v56 = vld [vmem:[#allocation24] sm:$0x3]  ;;  %v3732_v12 = vld [vmem:[#allocation26] ss:$0 sm:$0xff] }
 0x7fa   : > { %v2088_v60 = vrot.slane %v2076_v56, %v2087_v54  ;;  %v2097_v62 = vrot.slane %v2076_v56, %v2096_v58 }
 0x7fb   : > { %v2351_v14 = vpack.c.bf16 %v2349_v13, %v2349_v13 }
 0x7fd   : > { %3884 = vmatmul.mubr.msk.bf16.vlgmr.msra.gmra.mxu0 %vm2327_vm6, %v2351_v14 }
 0x7fe   : > { %3895 = vmatprep.mubr.msk.bf16.mxu0 %vm5286_vm0, %v5285_v2  ;;  %3894 = vmatpush3.bf16.msra.mxu0 %v4325_v15 }
 0x7ff   : > { %3907 = vmatprep.subr.bf16.mxu0 %v5285_v2 }
 0x8b3   : > { %v2395_v17 = vpop.f32.mrf.mxu1 }
 0x8b4   : > { %v2453_v18 = vpack.c.bf16 %v2395_v17, %v2395_v17  ;;  %v3749_v17 = vld [vmem:[#allocation36] ss:$0 sm:$0xff] }
 0x8b5   : > { %v3879_v19 = vpop.f32.mrf.mxu1 }
 0x8b6   : > { %3896 = vmatmul.mubr.msk.bf16.vlgmr.msra.gmra.mxu0 %vm2046_vm5, %v2453_v18  ;;  %v3750_v19 = vld [vmem:[#allocation38] ss:$0 sm:$0xff] }
 0x8b7   : > { %v2398_v20 = vpop.f32.mrf.mxu1  ;;  %3911 = vmatprep.mubr.msk.bf16.mxu0 %vm5286_vm0, %v5285_v2 }
 0x8b9   : > { %v3880_v21 = vpop.f32.mrf.mxu1 }
 0x8bd   : > { %v2443_v22 = vpop.f32.mrf.mxu0 }
 0x8be   : > { %v2454_v23 = vpack.c.bf16 %v2443_v22, %v2443_v22 }
 0x8bf   : > { %v3885_v24 = vpop.f32.mrf.mxu0 }
 0x8c0   : > { %3890 = vmatmul.mubr.msk.bf16.vlgmr.msra.gmra.mxu1 %vm2046_vm5, %v2454_v23  ;;  %v4329_v23 = vld [vmem:[#allocation42 + $0x8] sm:$0xff]   ;;  %v4330_v24 = vld [vmem:[#allocation42] sm:$0xff]  }
 0x8c1   : > { %v2446_v26 = vpop.f32.mrf.mxu0  ;;  %3903 = vmatprep.mubr.msk.bf16.mxu1 %vm5286_vm0, %v5285_v2  ;;  %3900 = vmatpush3.bf16.msra.mxu1 %v4327_v48 }
 0x8c2   : > { %3901 = vmatprep.subr.bf16.mxu1 %v5285_v2  ;;  %3908 = vmatpush3.bf16.msra.mxu0 %v4329_v23 }
 0x8c3   : > { %v3886_v27 = vpop.f32.mrf.mxu0  ;;  %3909 = vmatprep.subr.bf16.mxu0 %v5285_v2 }
 0x8c6   : > { %3910 = vmatpush3.bf16.msra.mxu0 %v4330_v24 }
 0x976   : > { %v2547_v28 = vpop.f32.mrf.mxu0 }
 0x978   : > { %v3897_v29 = vpop.f32.mrf.mxu0 }
 0x97a   : > { %v2550_v30 = vpop.f32.mrf.mxu0 }
 0x97c   : > { %v3898_v31 = vpop.f32.mrf.mxu0 }
 0x97d   : > { %v3751_v31 = vld [vmem:[#allocation41] ss:$0 sm:$0xff] }
 0x980   : > { %v2498_v32 = vpop.f32.mrf.mxu1 }
 0x981   : > { %v2548_v34 = vadd.f32 %v2547_v28, %v2498_v32 }
 0x982   : > { %v3891_v35 = vpop.f32.mrf.mxu1 }
 0x983   : > { %v2560_v36 = vadd.f32 %v3748_v33, %v2548_v34 }
 0x984   : > { %v2501_v37 = vpop.f32.mrf.mxu1 }
 0x985   : > { %v2561_v38 = vadd.f32 %v2560_v36, %v5952_v61  ;;  %v4328_v61 = vld [vmem:[#allocation39] sm:$0xff]  }
 0x986   : > { %v3892_v39 = vpop.f32.mrf.mxu1  ;;  %3902 = vmatpush3.bf16.msra.mxu1 %v4328_v61 }
 0x987   : > { %v2564_v40 = vsel %vm2169_vm4, %v2561_v38, 0.0 }
 0x988   : > { %2565 = vadd.xlane.f32.xlu1 %v2564_v40 }
 0x999   : > { %2082 = vperm.xlu1 %4315, %v2075_v42  }
 0xa11   : > { %v2566_v43 = vpop.xlane.xlu1 %2565 }
 0xa12   : > { %v2568_v44 = vmul.f32 0.03125, %v2566_v43 }
 0xa14   : > { %v2569_v45 = vsub.f32 %v2561_v38, %v2568_v44 }
 0xa15   : > { %v2083_v25 = vpop.permute.xlu1 %2082 }
 0xa16   : > { %v2570_v46 = vmul.f32 %v2569_v45, %v2569_v45  ;;  %v2089_v63 = vmul.f32 %v2088_v60, %v2083_v25 }
 0xa18   : > { %v2571_v47 = vsel %vm2169_vm4, %v2570_v46, 0.0 }
 0xa19   : > { %2572 = vadd.xlane.f32.xlu0 %v2571_v47 }
 0xa2f   : > { %2091 = vperm.xlu0 %4316, %v2075_v42  }
 0xa4e   : > { %2048 = vadd.xlane.f32.xlu0 %v2047_v51  ;;  %v3755_v51 = vld [vmem:[%s6277_s17] ss:$0 sm:$0xff] }
 0xaa2   : > { %v2573_v55 = vpop.xlane.xlu0 %2572 }
 0xaa3   : > { %v2574_v57 = vmul.f32 0.03125, %v2573_v55 }
 0xaa5   : > { %v2575_v59 = vadd.f32 1e-12, %v2574_v57 }
 0xaa7   : > { %4355 = vrsqrt.f32 %v2575_v59 }
 0xaaa   : > { %v2092_v0 = vpop.permute.xlu0 %2091 }
 0xaab   : > { %v2098_v11 = vmul.f32 %v2097_v62, %v2092_v0 }
 0xaad   : > { %v2099_v13 = vadd.f32 %v2098_v11, %v2089_v63 }
 0xaaf   : > { %v2106_v14 = vadd.f32 %v3732_v12, %v2099_v13  ;;  %v3733_v13 = vld [vmem:[#allocation27] ss:$0 sm:$0xff] }
 0xab1   : > { %v2107_v15 = vsel %vm2046_vm5, %v2106_v14, 0.0 }
 0xab2   : > { %2108 = vadd.xlane.f32.xlu1 %v2107_v15  ;;  %v3734_v15 = vld [vmem:[#allocation29] ss:$0 sm:$0xff] }
 0xab4   : > { %v4356_v16 = vpop.eup %4355 }
 0xab5   : > { %v2577_v18 = vmul.f32 %v4356_v16, %v2569_v45 }
 0xab7   : > { %v2584_v20 = vmul.f32 %v3749_v17, %v2577_v18 }
 0xab9   : > { %v2591_v21 = vadd.f32 %v3750_v19, %v2584_v20 }
 0xabb   : > { %v2592_v22 = vpack.c.bf16 %v2591_v21, %v2591_v21 }
 0xabd   : > { %3904 = vmatmul.mubr.msk.bf16.vlgmr.msra.gmra.mxu1 %vm2169_vm4, %v2592_v22 }
 0xabe   : > { %2867 = vmatprep.mubr.bf16.mxu1 %v5284_v1 }
 0xad7   : > { %v2049_v48 = vpop.xlane.xlu0 %2048 }
 0xad8   : > { %v2051_v61 = vmul.f32 0.0625, %v2049_v48 }
 0xada   : > { %v2052_v55 = vsub.f32 %v6013_v50, %v2051_v61 }
 0xadc   : > { %v2053_v62 = vmul.f32 %v2052_v55, %v2052_v55 }
 0xade   : > { %v2054_v0 = vsel %vm2046_vm5, %v2053_v62, 0.0 }
 0xb3b   : > { %v2109_v26 = vpop.xlane.xlu1 %2108 }
 0xb3c   : > { %v2110_v27 = vmul.f32 0.0625, %v2109_v26  ;;  %v3730_v26 = vld [vmem:[#allocation21] ss:$0 sm:$0xff] }
 0xb3e   : > { %v2111_v28 = vsub.f32 %v2106_v14, %v2110_v27 }
 0xb40   : > { %v2112_v29 = vmul.f32 %v2111_v28, %v2111_v28 }
 0xb42   : > { %v2113_v30 = vsel %vm2046_vm5, %v2112_v29, 0.0 }
 0xb43   : > { %2114 = vadd.xlane.f32.xlu1 %v2113_v30 }
 0xb7d   : > { %v2653_v32 = vpop.f32.mrf.mxu1 }
 0xb7e   : > { %v2654_v33 = vadd.f32 %v3751_v31, %v2653_v32  ;;  %v4333_v32 = vld [vmem:[%s6278_s8 + $0x34] ss:$8 sps:$4 sm:$0xff]  }
 0xb7f   : > { %v3905_v34 = vpop.f32.mrf.mxu1  ;;  %2843 = vmatprep.subr.bf16.mxu1 %v4333_v32 }
 0xb80   : > { %v2659_v35 = vmul.f32 %v2654_v33, %v2654_v33  ;;  %v4331_v34 = vld [vmem:[%s6278_s8 + $0x30] ss:$8 sps:$4 sm:$0xff]  }
 0xb81   : > { %v2656_v36 = vpop.f32.mrf.mxu1  ;;  %2844 = vmatpush1.bf16.msra.mxu1 %v4331_v34 }
 0xb82   : > { %v2660_v1 = vmul.f32 %v2659_v35, %v2654_v33  ;;  %v4336_v35 = vld [vmem:[%s6278_s8 + $0x24] ss:$8 sps:$4 sm:$0xff]   ;;  %v4334_v36 = vld [vmem:[%s6278_s8 + $0x20] ss:$8 sps:$4 sm:$0xff]  }
 0xb83   : > { %v3906_v37 = vpop.f32.mrf.mxu1  ;;  %2845 = vmatprep.subr.bf16.mxu1 %v4336_v35 }
 0xb84   : > { %v2661_v38 = vmul.f32 0.044715, %v2660_v1  ;;  %v4339_v1 = vld [vmem:[%s6278_s8 + $0x14] ss:$8 sps:$4 sm:$0xff]   ;;  %v4337_v37 = vld [vmem:[%s6278_s8 + $0x10] ss:$8 sps:$4 sm:$0xff]  }
 0xb85   : > { %2846 = vmatpush1.bf16.msra.mxu1 %v4334_v36 }
 0xb86   : > { %v2662_v39 = vadd.f32 %v2661_v38, %v2654_v33  ;;  %2847 = vmatprep.subr.bf16.mxu1 %v4339_v1  ;;  %v4342_v38 = vld [vmem:[%s6278_s8 + $0x4] ss:$8 sps:$4 sm:$0xff]  }
 0xb88   : > { %v2663_v40 = vmul.f32 0.7978846, %v2662_v39  ;;  %v4340_v39 = vld [vmem:[%s6278_s8] ss:$8 sps:$4 sm:$0xff]  }
 0xb89   : > { %2848 = vmatpush1.bf16.msra.mxu1 %v4337_v37 }
 0xb8a   : > { %4357 = vtanh.f32 %v2663_v40  ;;  %2849 = vmatprep.subr.bf16.mxu1 %v4342_v38 }
 0xb8d   : > { %2850 = vmatpush1.bf16.msra.mxu1 %v4340_v39 }
 0xb97   : > { %v4358_v41 = vpop.eup %4357 }
 0xb98   : > { %v2665_v42 = vadd.f32 1.0, %v4358_v41 }
 0xb9a   : > { %v2666_v43 = vmul.f32 0.5, %v2665_v42 }
 0xb9c   : > { %v2667_v44 = vmul.f32 %v2666_v43, %v2654_v33 }
 0xb9e   : > { %v2668_v45 = vpack.c.bf16 %v2667_v44, %v2667_v44  ;;  %v3759_v44 = vld [vmem:[%s6279_s2] ss:$0 sm:$0xff] }
 0xba0   : > { %3912 = vmatmul.mubr.msk.bf16.vlgmr.msra.gmra.mxu0 %vm2169_vm4, %v2668_v45 }
 0xbcc   : > { %v2115_v46 = vpop.xlane.xlu1 %2114 }
 0xbcd   : > { %v2116_v47 = vmul.f32 0.0625, %v2115_v46  ;;  %v3760_v46 = vld [vmem:[%s6280_s20] ss:$0 sm:$0xff] }
 0xbcf   : > { %v2117_v49 = vadd.f32 1e-05, %v2116_v47 }
 0xbd1   : > { %4359 = vrsqrt.f32 %v2117_v49 }
 0xbde   : > { %v4360_v11 = vpop.eup %4359 }
 0xbdf   : > { %v2119_v12 = vmul.f32 %v4360_v11, %v2111_v28  ;;  %v3731_v28 = vld [vmem:[#allocation23] ss:$0 sm:$0xff]  ;;  %v6056_v11 = vmov 0.0  }
 0xbe1   : > { %v2126_v14 = vmul.f32 %v3733_v13, %v2119_v12 }
 0xbe3   : > { %v2133_v16 = vadd.f32 %v3734_v15, %v2126_v14 }
 0xc60   : > { %v2729_v52 = vpop.f32.mrf.mxu0 }
 0xc61   : > { %v2730_v56 = vadd.f32 %v3755_v51, %v2729_v52  ;;  %v2779_v52 = vld [vmem:[%s6281_s24] sm:$0x3] }
 0xc62   : > { %v3913_v57 = vpop.f32.mrf.mxu0 }
 0xc63   : > { %v2735_v59 = vadd.f32 %v2730_v56, %v2591_v21  ;;  %v2788_v56 = vrot.slane %v2779_v52, %v2096_v58 }
 0xc64   : > { %v2732_v60 = vpop.f32.mrf.mxu0 }
 0xc65   : > { %v2738_v25 = vsel %vm2169_vm4, %v2735_v59, 0.0 }
 0xc66   : > { %2739 = vadd.xlane.f32.xlu1 %v2738_v25  ;;  %v3914_v63 = vpop.f32.mrf.mxu0 }
 0xc6a   : > { %2055 = vadd.xlane.f32.xlu1 %v2054_v0  ;;  %v6054_v0 = vmov 0.0  }
 0xc7b   : > { %2140 = vrot.lane.b32.xlu1 %v2133_v16, %s5292_s22 }
 0xcef   : > { %v2740_v50 = vpop.xlane.xlu1 %2739 }
 0xcf0   : > { %v2741_v17 = vmul.f32 0.03125, %v2740_v50 }
 0xcf2   : > { %v2742_v18 = vsub.f32 %v2735_v59, %v2741_v17 }
 0xcf3   : > { %v2056_v19 = vpop.xlane.xlu1 %2055 }
 0xcf4   : > { %v2057_v20 = vmul.f32 0.0625, %v2056_v19  ;;  %v2743_v21 = vmul.f32 %v2742_v18, %v2742_v18 }
 0xcf6   : > { %v2058_v22 = vadd.f32 1e-05, %v2057_v20  ;;  %v2744_v23 = vsel %vm2169_vm4, %v2743_v21, 0.0 }
 0xcf7   : > { %2745 = vadd.xlane.f32.xlu0 %v2744_v23  ;;  %v2141_v31 = vpop.permute.xlu1 %2140 }
 0xcf8   : > { %4361 = vrsqrt.f32 %v2058_v22 }
 0xd05   : > { %v4362_v24 = vpop.eup %4361 }
 0xd06   : > { %v2060_v27 = vmul.f32 %v4362_v24, %v2052_v55  ;;  %v2784_v55 = vrot.slane %v2779_v52, %v2087_v54 }
 0xd08   : > { %v2067_v29 = vmul.f32 %v3730_v26, %v2060_v27 }
 0xd0a   : > { %v2074_v30 = vadd.f32 %v3731_v28, %v2067_v29 }
 0xd0c   : > { %v2143_v33 = vsel %vm2046_vm5, %v2074_v30, %v2141_v31 }
 0xd0d   : > { %2766 = vrot.lane.b32.xlu1 %v2143_v33, %s5293_s26 }
 0xd7f   : > { %v2767_v61 = vpop.permute.xlu1 %2766 }
 0xd80   : > { %v2746_v40 = vpop.xlane.xlu0 %2745 }
 0xd81   : > { %v2747_v41 = vmul.f32 0.03125, %v2746_v40 }
 0xd83   : > { %v2748_v42 = vadd.f32 1e-12, %v2747_v41 }
 0xd85   : > { %4363 = vrsqrt.f32 %v2748_v42 }
 0xd92   : > { %v4364_v43 = vpop.eup %4363 }
 0xd93   : > { %v2750_v45 = vmul.f32 %v4364_v43, %v2742_v18 }
 0xd95   : > { %v2757_v47 = vmul.f32 %v3759_v44, %v2750_v45 }
 0xd97   : > { %v2764_v48 = vadd.f32 %v3760_v46, %v2757_v47 }
 0xd99   : > { %v2769_v49 = vsel %vm2169_vm4, %v2764_v48, %v2767_v61 }
 0xd9a   : > { %v2770_v51 = vpack.c.bf16 %v2769_v49, %v2769_v49 }
 0xd9c   : > { %3769 = vmatmul.mubr.msk.bf16.vlgmr.msra.gmra.mxu1 %vm2831_vm8, %v2770_v51 }
 0xe5c   : > { %v2869_v57 = vpop.f32.mrf.mxu1 }
 0xe5d   : > { %v2870_v59 = vadd.f32 %v2869_v57, %v2784_v55 }
 0xe5e   : > { %v2871_v60 = vpop.f32.mrf.mxu1 }
 0xe5f   : > { %2876 = vst [vmem:[#allocation2] sm:$0xff] %v2870_v59  ;;  %v2872_v25 = vadd.f32 %v2871_v60, %v2788_v56 }
 0xe60   : > { %v2873_v62 = vpop.f32.mrf.mxu1 }
 0xe61   : > { %2877 = vst [vmem:[#allocation2 + $0x8] sm:$0xff] %v2872_v25 }
 0xe62   : > { %v2874_v63 = vpop.f32.mrf.mxu1 }
 0xe63 LB: >> { %v3779_v54 = vcombine.high %v5930_v9, %v5933_v10  ;;  %v3778_v58 = vcombine.low %v5930_v9, %v5933_v10  ;;  %v3777_v12 = vcombine.high %v5924_v7, %v5927_v8  ;;  %v3776_v13 = vcombine.low %v5924_v7, %v5927_v8  ;;  %s2894_s0 = sshra.s32 %s5207_s16, 3  ;;  %s2897_s13 = sand.u32 7, %s5207_s16  ;;  %s5207_s16 = sphi %s6058_s16, %s2891_s16   ;;  %v5203_v11 = vphi %v6056_v11, %v6282_v11   ;;  %v5199_v0 = vphi %v6054_v0, %v3025_v0  }
 0xe64   : >> { %v5294_v14 = vmov 0   ;;  %v3775_v15 = vcombine.high %v5918_v5, %v5921_v6  ;;  %v3774_v16 = vcombine.low %v5918_v5, %v5921_v6  ;;  %v3773_v50 = vcombine.high %v5912_v3, %v5915_v4  ;;  %s3795_s7 = sshll.u32 %s2894_s0, 4  ;;  %s5296_s9 = smov 64  }
 0xe65   : >> { %2955 = vmatprep.subr.bf16.mxu0 %v3779_v54  ;;  %2979 = vmatprep.mubr.bf16.mxu0 %v5294_v14  ;;  %v3772_v17 = vcombine.low %v5912_v3, %v5915_v4  ;;  %v2903_v18 = vpack.c.bf16 %v5203_v11, %v5203_v11  ;;  %v5295_v19 = vmov 1966171168   ;;  %s2900_s1 = sadd.s32 %s3795_s7, %s2897_s13  ;;  %s2891_s16 = sadd.s32 1, %s5207_s16  }
 0xe66   : >> { %2956 = vmatpush1.bf16.msra.mxu0 %v3778_v58  ;;  %v2992_v20 = vunpack.c.l.s4 %v5295_v19  ;;  %s2901_s6 = scalar_lea.vmem [#allocation2], %s2900_s1  ;;  %p2888_p5 = scmp.ge.s32.totalorder %s2891_s16, 8  }
 0xe67   : >> { %2957 = vmatprep.subr.bf16.mxu0 %v3777_v12  ;;  %s6283_s12 = sld [smem:[#allocation92_spill]] (%p2888_p5)  ;;  %3927 = vmatprep.subr.bf16.mxu1 (%p2888_p5), %v5285_v2  ;;  %vm3114_vm9 = vcmask (%p2888_p5), 516096   ;;  %v4377_v56 = vld [vmem:[#allocation44 + $0x18] sm:$0xff] (%p2888_p5)   ;;  %v4378_v57 = vld [vmem:[#allocation44 + $0x10] sm:$0xff] (%p2888_p5)   ;;  %v4379_v59 = vld [vmem:[#allocation44 + $0x8] sm:$0xff] (%p2888_p5)   ;;  %vm3240_vm10 = vcmask (%p2888_p5), 0  }
 0xe68   : >> { %v2993_v21 = vunpack.c.0.s8 %v2992_v20  ;;  %v2902_v30 = vld [vmem:[%s2901_s6] ss:$8 sm:$0x3]  ;;  %s6284_s4 = sld [smem:[#allocation93_spill]] (%p2888_p5)  ;;  %3935 = vmatprep.mubr.msk.bf16.mxu1 (%p2888_p5), %vm5286_vm0, %v5285_v2  ;;  %3928 = vmatpush3.bf16.msra.mxu1 (%p2888_p5), %v4377_v56 }
 0xe69   : > { %s6285_s17 = sld [smem:[#allocation94_spill]] (%p2888_p5)  ;;  %3929 = vmatprep.subr.bf16.mxu1 (%p2888_p5), %v5285_v2  ;;  %v4380_v60 = vld [vmem:[#allocation44] sm:$0xff] (%p2888_p5)  }
 0xe6a   : >> { %2958 = vmatpush1.bf16.msra.mxu0 %v3776_v13  ;;  %v2996_v23 = vsub.s32 %v2993_v21, %v6017_v53  ;;  %s6286_s22 = sld [smem:[#allocation95_spill]] (%p2888_p5) }
 0xe6b   : >> { %2959 = vmatprep.subr.bf16.mxu0 %v3775_v15  ;;  %s6287_s26 = sld [smem:[#allocation97_spill]] (%p2888_p5) }
 0xe6c   : > { %3930 = vmatpush3.bf16.msra.mxu1 (%p2888_p5), %v4378_v57  ;;  %s6288_s2 = sld [smem:[#allocation98_spill]] (%p2888_p5) }
 0xe6d   : > { %v4373_v46 = vld [vmem:[%s6283_s12 + $0x18] sm:$0xff] (%p2888_p5)   ;;  %v4374_v47 = vld [vmem:[%s6283_s12 + $0x10] sm:$0xff] (%p2888_p5)   ;;  %v4375_v3 = vld [vmem:[%s6283_s12 + $0x8] sm:$0xff] (%p2888_p5)   ;;  %3931 = vmatprep.subr.bf16.mxu1 (%p2888_p5), %v5285_v2  ;;  %s6289_s20 = sld [smem:[#allocation99_spill]] (%p2888_p5) }
 0xe6e   : >> { %2960 = vmatpush1.bf16.msra.mxu0 %v3774_v16  ;;  %v4376_v4 = vld [vmem:[%s6283_s12] sm:$0xff] (%p2888_p5)   ;;  %s6290_s24 = sld [smem:[#allocation100_spill]] (%p2888_p5) }
 0xe6f   : >> { %2961 = vmatprep.subr.bf16.mxu0 %v3773_v50  ;;  %v3044_v6 = vld [vmem:[%s6284_s4] sm:$0x1] (%p2888_p5) }
 0xe70   : > { %3932 = vmatpush3.bf16.msra.mxu1 (%p2888_p5), %v4379_v59  ;;  %v3113_v58 = vld [vmem:[%s6286_s22] sm:$0x1] (%p2888_p5) }
 0xe71   : > { %3933 = vmatprep.subr.bf16.mxu1 (%p2888_p5), %v5285_v2  ;;  %v3141_v16 = vld [vmem:[%s6287_s26] sm:$0x1] (%p2888_p5) }
 0xe72   : >> { %2962 = vmatpush1.bf16.msra.mxu0 %v3772_v17 }
 0xe73   : > { %3915 = vmatprep.subr.bf16.mxu0 (%p2888_p5), %v5285_v2 }
 0xe74   : > { %3934 = vmatpush3.bf16.msra.mxu1 (%p2888_p5), %v4380_v60 }
 0xe75   : >> { %3780 = vmatmul.mubr.msk.bf16.vlgmr.msra.gmra.mxu0 %vm2831_vm8, %v2903_v18 }
 0xe76   : > { %3923 = vmatprep.mubr.msk.bf16.mxu0 (%p2888_p5), %vm5286_vm0, %v5285_v2  ;;  %3916 = vmatpush3.bf16.msra.mxu0 (%p2888_p5), %v4373_v46 }
 0xe77   : > { %3917 = vmatprep.subr.bf16.mxu0 (%p2888_p5), %v5285_v2 }
 0xe7a   : > { %3918 = vmatpush3.bf16.msra.mxu0 (%p2888_p5), %v4374_v47 }
 0xe7b   : > { %3919 = vmatprep.subr.bf16.mxu0 (%p2888_p5), %v5285_v2 }
 0xe7e   : > { %3920 = vmatpush3.bf16.msra.mxu0 (%p2888_p5), %v4375_v3 }
 0xe7f   : > { %3921 = vmatprep.subr.bf16.mxu0 (%p2888_p5), %v5285_v2 }
 0xe82   : > { %3922 = vmatpush3.bf16.msra.mxu0 (%p2888_p5), %v4376_v4 }
 0xf35   : >> { %v2981_v22 = vpop.f32.mrf.mxu0 }
 0xf37   : >> { %v2983_v24 = vpop.f32.mrf.mxu0 }
 0xf38   : >> { %v2990_v26 = vcombine.low %v2981_v22, %v2983_v24 }
 0xf39   : >> { %v2985_v27 = vpop.f32.mrf.mxu0 }
 0xf3a   : >> { %v2997_v28 = vrot.slane %v2990_v26, %v2996_v23 }
 0xf3b   : >> { %v2986_v29 = vpop.f32.mrf.mxu0 }
 0xf3c   : >> { %v3004_v31 = vrot.slane %v2997_v28, %v2996_v23 }
 0xf3e   : >> { %v3006_v32 = vadd.f32 %v3004_v31, %v2902_v30  ;;  %v3209_v31 = vld [vmem:[%s6288_s2] sm:$0x1] (%p2888_p5) }
 0xf40   : >> { %3014 = vrot.lane.b32.xlu0 %v3006_v32, %s5296_s9  ;;  %v3781_v33 = vmul.f32 -1.442695, %v3006_v32 }
 0xf42   : >> { %4365 = vpow2.f32 %v3781_v33  ;;  %v3210_v33 = vld [vmem:[%s6289_s20] sm:$0x1] (%p2888_p5) }
 0xf4f   : >> { %v4366_v34 = vpop.eup %4365 }
 0xf50   : >> { %v3010_v35 = vadd.f32 1.0, %v4366_v34 }
 0xf52   : >> { %4367 = vrcp.f32 %v3010_v35 }
 0xf5f   : >> { %v4368_v37 = vpop.eup %4367 }
 0xf60   : >> { %v3019_v40 = vmul.f32 %v5199_v0, %v4368_v37  ;;  %v3028_v43 = vrot.slane %v4368_v37, 1 }
 0xfb2   : >> { %v3015_v36 = vpop.permute.xlu0 %3014 }
 0xfb3   : >> { %v3016_v1 = vrot.slane %v3015_v36, 1  ;;  %v3227_v36 = vld [vmem:[%s6290_s24] sm:$0x1] (%p2888_p5) }
 0xfb5   : >> { %4369 = vtanh.f32 %v3016_v1 }
 0xfc2   : >> { %v4370_v38 = vpop.eup %4369 }
 0xfc3   : >> { %v3020_v39 = vmul.f32 %v4370_v38, %v4368_v37 }
 0xfc5   : >> { %3022 = vrot.lane.b32.xlu0 %v3020_v39, %s5296_s9  ;;  %v3232_v39 = vld [vmem:[#allocation3] sm:$0x1] (%p2888_p5) }
0x1037   : >> { %v3023_v41 = vpop.permute.xlu0 %3022 }
0x1038   : >> { %v3025_v0 = vadd.f32 %v3023_v41, %v3019_v40  }
0x103a   : >> { %4371 = vtanh.f32 %v3025_v0 }
0x1047   : >> { %v4372_v42 = vpop.eup %4371 }
0x1048   : >> { %3031 = vrot.lane.b32.xlu1 %v4372_v42, %s5296_s9 }
0x10b9   : > { %2890 = sbr.rel (!%p2888_p5) target bundleno = 3683 (0xe63), region = 424 }
0x10ba   : >> { %v3032_v44 = vpop.permute.xlu1 %3031 }
0x10bb   : >> { %v3034_v45 = vmul.f32 %v3032_v44, %v3028_v43  }
0x10bd   : >> { %v6282_v11 = vmov %v3034_v45  ;;  %v3035_v5 = vpack.c.bf16 (%p2888_p5), %v3034_v45, %v3034_v45 }
0x10be   : > { %v3112_v11 = vld [vmem:[%s6285_s17] sm:$0x1] }
0x10bf   : > { %3924 = vmatmul.mubr.msk.bf16.vlgmr.msra.gmra.mxu0 %vm2831_vm8, %v3035_v5 }
0x117f   : > { %v3106_v7 = vpop.f32.mrf.mxu0 }
0x1180   : > { %v3107_v8 = vadd.f32 %v3106_v7, %v3044_v6 }
0x1181   : > { %v3925_v9 = vpop.f32.mrf.mxu0 }
0x1182   : > { %v3115_v10 = vsel %vm3114_vm9, %v3107_v8, 0.0 }
0x1183   : > { %3116 = vadd.xlane.f32.xlu0 %v3115_v10  ;;  %v3109_v53 = vpop.f32.mrf.mxu0 }
0x1185   : > { %v3926_v48 = vpop.f32.mrf.mxu0 }
0x120c   : > { %v3117_v61 = vpop.xlane.xlu0 %3116 }
0x120d   : > { %v3119_v49 = vmul.f32 0.015625, %v3117_v61 }
0x120f   : > { %v3120_v51 = vsub.f32 %v3107_v8, %v3119_v49 }
0x1211   : > { %v3121_v52 = vmul.f32 %v3120_v51, %v3120_v51 }
0x1213   : > { %v3122_v55 = vsel %vm3114_vm9, %v3121_v52, 0.0 }
0x1214   : > { %3123 = vadd.xlane.f32.xlu0 %v3122_v55 }
0x129d   : > { %v3124_v25 = vpop.xlane.xlu0 %3123 }
0x129e   : > { %v3125_v62 = vmul.f32 0.015625, %v3124_v25 }
0x12a0   : > { %v3126_v63 = vadd.f32 1e-05, %v3125_v62 }
0x12a2   : > { %4381 = vrsqrt.f32 %v3126_v63 }
0x12af   : > { %v4382_v0 = vpop.eup %4381 }
0x12b0   : > { %v3128_v54 = vmul.f32 %v4382_v0, %v3120_v51 }
0x12b2   : > { %v3129_v12 = vmul.f32 %v3128_v54, %v3112_v11 }
0x12b4   : > { %v3130_v13 = vadd.f32 %v3129_v12, %v3113_v58 }
0x12b6   : > { %v3131_v14 = vmax.f32 %v3130_v13, 0.0 }
0x12b8   : > { %v3132_v15 = vpack.c.bf16 %v3131_v14, %v3131_v14 }
0x12ba   : > { %3936 = vmatmul.mubr.msk.bf16.vlgmr.msra.gmra.mxu1 %vm2831_vm8, %v3132_v15 }
0x137a   : > { %v3203_v50 = vpop.f32.mrf.mxu1 }
0x137b   : > { %v3204_v17 = vadd.f32 %v3203_v50, %v3141_v16 }
0x137c   : > { %v3937_v18 = vpop.f32.mrf.mxu1 }
0x137d   : > { %v3211_v2 = vsel %vm3114_vm9, %v3204_v17, 0.0 }
0x137e   : > { %3212 = vadd.xlane.f32.xlu1 %v3211_v2  ;;  %v3206_v19 = vpop.f32.mrf.mxu1 }
0x1380   : > { %v3938_v20 = vpop.f32.mrf.mxu1 }
0x1407   : > { %v3213_v21 = vpop.xlane.xlu1 %3212 }
0x1408   : > { %v3214_v22 = vmul.f32 0.015625, %v3213_v21 }
0x140a   : > { %v3215_v23 = vsub.f32 %v3204_v17, %v3214_v22 }
0x140c   : > { %v3216_v24 = vmul.f32 %v3215_v23, %v3215_v23 }
0x140e   : > { %v3217_v26 = vsel %vm3114_vm9, %v3216_v24, 0.0 }
0x140f   : > { %3218 = vadd.xlane.f32.xlu1 %v3217_v26 }
0x1498   : > { %v3219_v27 = vpop.xlane.xlu1 %3218 }
0x1499   : > { %v3220_v28 = vmul.f32 0.015625, %v3219_v27 }
0x149b   : > { %v3221_v29 = vadd.f32 1e-05, %v3220_v28 }
0x149d   : > { %4383 = vrsqrt.f32 %v3221_v29 }
0x14aa   : > { %v4384_v30 = vpop.eup %4383 }
0x14ab   : > { %v3223_v32 = vmul.f32 %v4384_v30, %v3215_v23 }
0x14ad   : > { %v3224_v34 = vmul.f32 %v3223_v32, %v3209_v31 }
0x14af   : > { %v3225_v35 = vadd.f32 %v3224_v34, %v3210_v33 }
0x14b1   : > { %v3226_v1 = vmax.f32 %v3225_v35, 0.0 }
0x14b3   : > { %v3228_v37 = vmul.f32 %v3227_v36, %v3226_v1 }
0x14b5   : > { %v3229_v38 = vsel %vm3114_vm9, %v3228_v37, 0.0 }
0x14b6   : > { %3230 = vadd.xlane.f32.xlu0 %v3229_v38 }
0x153f   : > { %v3231_v40 = vpop.xlane.xlu0 %3230 }
0x1540   : > { %v3233_v41 = vadd.f32 %v3232_v39, %v3231_v40 }
0x1542   : > { %v3792_v42 = vmul.f32 -1.442695, %v3233_v41 }
0x1544   : > { %4385 = vpow2.f32 %v3792_v42 }
0x1551   : > { %v4386_v43 = vpop.eup %4385 }
0x1552   : > { %v3237_v44 = vadd.f32 1.0, %v4386_v43 }
0x1554   : > { %4387 = vrcp.f32 %v3237_v44 }
0x1561   : > { %v4388_v45 = vpop.eup %4387 }
0x1562   : > { %3241 = vst.msk [vmem:[%s1805_s25] sm:$0x1] %vm3240_vm10, %v4388_v45 }
0x1563 PF: > { %p120_p1 = scmp.ge.s32.totalorder %s5671_s18, 4   ;;  %s6291_s0 = smov %s5187_s14 }
0x1564   : > { %s6292_s14 = smov %s5191_s15  ;;  %s6293_s15 = smov %s5683_s10 }
0x1565   : > { %s6294_s16 = smov %s5671_s18  ;;  %122 = sbr.rel (!%p120_p1) target bundleno = 111 (0x6f), region = 435 }
0x156a   :  { %3259 = vsyncpa [#allocation5], 1 }
0x156b   :  { %3261 = vsyncpa [#allocation5 + $0x1], 1 }
0x156c   :  { %3262 = vsyncpa [#allocation7], 1 }
0x156d   :  { %3264 = vsyncpa [#allocation7 + $0x1], 1 }
0x156e   :  { %3265 = vsyncpa [#allocation10], 1 }
0x156f   :  { %3266 = vsyncpa [#allocation13], 1 }
0x1570   :  { %3267 = vsyncpa [#allocation16], 1 }
0x1571   :  { %3268 = vsyncpa [#allocation19], 1 }
0x1572   :  { %3269 = vsyncpa [#allocation22], 1 }
0x1573   :  { %3270 = vsyncpa [#allocation25], 1 }
0x1574   :  { %3271 = vsyncpa [#allocation28], 1 }
0x1575   :  { %3272 = vsyncpa [#allocation31], 1 }
0x1576   :  { %3273 = vsyncpa [#allocation34], 1 }
0x1577   :  { %3274 = vsyncpa [#allocation37], 1 }
0x1578   :  { %3275 = vsyncpa [#allocation40], 1 }
0x1579   :  { %3276 = vsyncpa [#allocation43], 1 }

</bundles_post_ra>
